<compile_context>
chip_gen: v5e
topology: v5e:2x2
jax: 0.10.0
libtpu: 0.0.40
codegen_flags: <defaults>
</compile_context>

<pallas_src>
import functools
import math

import jax
import jax.numpy as jnp
from jax.experimental import pallas as pl
from jax.experimental.pallas import tpu as pltpu


# --------------------------------------------------------------------------
# Kernels
# --------------------------------------------------------------------------
def _glu_stem_kernel(x_ref, w_ref, b_ref, gamma_ref, beta_ref,
                     y_ref, stats_ref, *, chunk, out_pad, eps, neg_slope):
    """shared_glu0(x) -> leaky_relu, plus partial sums for the full-batch BN."""
    rows = x_ref.shape[0]
    nchunks = rows // chunk
    two_out = 2 * out_pad

    # Linear (both GLU halves in one lane-aligned matmul) + leaky_relu.
    h = jnp.dot(x_ref[...], w_ref[...], preferred_element_type=jnp.float32)
    h = h + b_ref[...]
    h = jnp.where(h >= 0, h, neg_slope * h)

    # Ghost BatchNorm: per-vbs-chunk batch stats (biased var), fused affine.
    hc = h.reshape(nchunks, chunk, two_out)
    mean = jnp.mean(hc, axis=1, keepdims=True)
    diff = hc - mean
    var = jnp.mean(diff * diff, axis=1, keepdims=True)
    scale = gamma_ref[...] * jax.lax.rsqrt(var + eps)
    hn = (diff * scale + beta_ref[...]).reshape(rows, two_out)

    # GLU gate (halves are lane-aligned at 0 and out_pad), then the
    # FeatureTransformer-level leaky_relu.
    gated = hn[:, :out_pad] * jax.nn.sigmoid(hn[:, out_pad:])
    y = jnp.where(gated >= 0, gated, neg_slope * gated)
    y_ref[...] = y

    # Partial sums for the full-batch (plain) BatchNorm1d that follows.
    s1 = jnp.sum(y, axis=0, keepdims=True)
    s2 = jnp.sum(y * y, axis=0, keepdims=True)
    stats_ref[...] = jnp.concatenate([s1, s2], axis=0)[None]


def _residual_glu_stack_kernel(y_ref, bnsc_ref, bnsh_ref, w_ref, b_ref,
                               gamma_ref, beta_ref, out_ref,
                               *, chunk, out_pad, n_layers, eps, neg_slope,
                               res_scale):
    """Full-batch BN affine, then the fused stack of residual GLU layers."""
    rows = y_ref.shape[0]
    nchunks = rows // chunk
    two_out = 2 * out_pad

    # Full-batch BatchNorm1d, pre-fused into a row-vector affine.
    x = y_ref[...] * bnsc_ref[...] + bnsh_ref[...]

    for l in range(n_layers):                      # unrolled at trace time
        h = jnp.dot(x, w_ref[l], preferred_element_type=jnp.float32)
        h = h + b_ref[l]
        h = jnp.where(h >= 0, h, neg_slope * h)

        hc = h.reshape(nchunks, chunk, two_out)
        mean = jnp.mean(hc, axis=1, keepdims=True)
        diff = hc - mean
        var = jnp.mean(diff * diff, axis=1, keepdims=True)
        scale = gamma_ref[l] * jax.lax.rsqrt(var + eps)
        hn = (diff * scale + beta_ref[l]).reshape(rows, two_out)

        gated = hn[:, :out_pad] * jax.nn.sigmoid(hn[:, out_pad:])
        x = (x + gated) * res_scale

    out_ref[...] = x


# --------------------------------------------------------------------------
# Host-side packing helpers
# --------------------------------------------------------------------------
def _round_up(n, m):
    return (n + m - 1) // m * m


def _pack_half_split_matrix(w, out_dim, out_pad, k_pad):
    """PyTorch Linear weight (2*out_dim, k) -> (k_pad, 2*out_pad) with the two
    output halves at lane-aligned column offsets 0 and out_pad."""
    w = jnp.asarray(w, jnp.float32)
    k = w.shape[1]
    W = jnp.zeros((k_pad, 2 * out_pad), jnp.float32)
    W = W.at[:k, :out_dim].set(w[:out_dim].T)
    W = W.at[:k, out_pad:out_pad + out_dim].set(w[out_dim:].T)
    return W


def _pack_half_split_vector(v, out_dim, out_pad, fill=0.0):
    v = jnp.asarray(v, jnp.float32)
    out = jnp.full((1, 2 * out_pad), fill, jnp.float32)
    out = out.at[0, :out_dim].set(v[:out_dim])
    out = out.at[0, out_pad:out_pad + out_dim].set(v[out_dim:])
    return out


def _choose_chunks_per_group(num_chunks, chunk, in_pad, out_pad,
                             budget_bytes=16 * 1024 * 1024):
    """How many ghost-BN chunks to fuse into one grid step, from a VMEM budget.

    Conservative budget so the double-buffered blocks fit the 64 MiB VMEM of
    v7x; on v5e/v6e (128 MiB) this could be raised further.
    """
    per_row = 4 * (2 * in_pad + 4 * out_pad + 2 * (2 * out_pad))
    max_rows = max(chunk, budget_bytes // max(per_row, 1))
    cpg = max(1, min(num_chunks, max_rows // chunk))
    while num_chunks % cpg:
        cpg -= 1
    return cpg


# --------------------------------------------------------------------------
# Wrapper
# --------------------------------------------------------------------------
def feature_transformer_forward(x, params, *, vbs=128, eps=1e-5,
                                neg_slope=0.01, chunks_per_group=None):
    """Pallas forward for FeatureTransformer (shared GLUs present).

    params:
      w0,b0,g0,be0 : shared_glu0 Linear(inp,2*out) weight/bias + its GBN affine
      bn_g, bn_b   : top-level BatchNorm1d(out_dim) affine
      w,b,g,be     : stacked [L,...] params of the residual GLUs
                     (shared[1:] + independ), each Linear(out, 2*out) + GBN.
    """
    x = jnp.asarray(x, jnp.float32)
    B, inp_dim = x.shape
    w0 = jnp.asarray(params["w0"], jnp.float32)
    out_dim = w0.shape[0] // 2
    n_res = int(params["w"].shape[0])
    assert n_res >= 1

    # torch.chunk(x, max(1, B // vbs), 0) -> equal chunks required here.
    num_chunks = max(1, B // vbs)
    assert B % num_chunks == 0, "batch must split evenly into ghost-BN chunks"
    chunk = B // num_chunks
    assert num_chunks == 1 or chunk % 8 == 0, "chunk rows must be sublane-aligned"

    # Lane-dense padded feature dims.
    in_pad = _round_up(inp_dim, 128)
    out_pad = _round_up(out_dim, 128)
    two_out = 2 * out_pad

    # Chunk-group coarsening (perf feedback #1).
    if chunks_per_group is None:
        chunks_per_group = _choose_chunks_per_group(num_chunks, chunk,
                                                    in_pad, out_pad)
    assert num_chunks % chunks_per_group == 0
    rows = chunks_per_group * chunk
    num_groups = num_chunks // chunks_per_group

    # ---- pack / pad parameters --------------------------------------------
    x_p = jnp.pad(x, ((0, 0), (0, in_pad - inp_dim)))

    w0_p = _pack_half_split_matrix(w0, out_dim, out_pad, in_pad)
    b0_p = _pack_half_split_vector(params["b0"], out_dim, out_pad, 0.0)
    g0_p = _pack_half_split_vector(params["g0"], out_dim, out_pad, 1.0)
    be0_p = _pack_half_split_vector(params["be0"], out_dim, out_pad, 0.0)

    w_p = jnp.stack([_pack_half_split_matrix(params["w"][l], out_dim, out_pad,
                                             out_pad) for l in range(n_res)])
    b_p = jnp.stack([_pack_half_split_vector(params["b"][l], out_dim, out_pad,
                                             0.0) for l in range(n_res)])
    g_p = jnp.stack([_pack_half_split_vector(params["g"][l], out_dim, out_pad,
                                             1.0) for l in range(n_res)])
    be_p = jnp.stack([_pack_half_split_vector(params["be"][l], out_dim, out_pad,
                                              0.0) for l in range(n_res)])

    bn_g_p = jnp.ones((out_pad,), jnp.float32).at[:out_dim].set(
        jnp.asarray(params["bn_g"], jnp.float32))
    bn_b_p = jnp.zeros((out_pad,), jnp.float32).at[:out_dim].set(
        jnp.asarray(params["bn_b"], jnp.float32))

    cparams = pltpu.CompilerParams(dimension_semantics=("parallel",),
                                   vmem_limit_bytes=48 * 1024 * 1024)

    # ---- kernel 1: stem GLU + partial full-batch-BN stats ------------------
    stem_kernel = functools.partial(_glu_stem_kernel, chunk=chunk,
                                    out_pad=out_pad, eps=eps,
                                    neg_slope=neg_slope)
    y_p, stats = pl.pallas_call(
        stem_kernel,
        grid=(num_groups,),
        in_specs=[
            pl.BlockSpec((rows, in_pad), lambda g: (g, 0)),      # x
            pl.BlockSpec((in_pad, two_out), lambda g: (0, 0)),   # W0 (packed)
            pl.BlockSpec((1, two_out), lambda g: (0, 0)),        # b0
            pl.BlockSpec((1, two_out), lambda g: (0, 0)),        # gamma0
            pl.BlockSpec((1, two_out), lambda g: (0, 0)),        # beta0
        ],
        out_specs=[
            pl.BlockSpec((rows, out_pad), lambda g: (g, 0)),     # y
            pl.BlockSpec((1, 2, out_pad), lambda g: (g, 0, 0)),  # partial stats
        ],
        out_shape=(
            jax.ShapeDtypeStruct((B, out_pad), jnp.float32),
            jax.ShapeDtypeStruct((num_groups, 2, out_pad), jnp.float32),
        ),
        compiler_params=cparams,
        cost_estimate=pl.CostEstimate(
            flops=2 * B * in_pad * two_out,
            transcendentals=B * out_pad,
            bytes_accessed=4 * (B * (in_pad + out_pad) + in_pad * two_out)),
    )(x_p, w0_p, b0_p, g0_p, be0_p)

    # ---- combine full-batch BN stats (tiny) --------------------------------
    tot = jnp.sum(stats, axis=0)                       # (2, out_pad)
    mean = tot[0] / B
    var = tot[1] / B - mean * mean                     # biased, as torch BN
    bn_scale = (bn_g_p * jax.lax.rsqrt(var + eps)).reshape(1, out_pad)
    bn_shift = (bn_b_p - mean * bn_scale[0]).reshape(1, out_pad)

    # ---- kernel 2: full-batch BN affine + residual GLU stack ---------------
    res_kernel = functools.partial(_residual_glu_stack_kernel, chunk=chunk,
                                   out_pad=out_pad, n_layers=n_res, eps=eps,
                                   neg_slope=neg_slope,
                                   res_scale=math.sqrt(0.5))
    out_p = pl.pallas_call(
        res_kernel,
        grid=(num_groups,),
        in_specs=[
            pl.BlockSpec((rows, out_pad), lambda g: (g, 0)),           # y
            pl.BlockSpec((1, out_pad), lambda g: (0, 0)),              # bn scale
            pl.BlockSpec((1, out_pad), lambda g: (0, 0)),              # bn shift
            pl.BlockSpec((n_res, out_pad, two_out), lambda g: (0, 0, 0)),  # W
            pl.BlockSpec((n_res, 1, two_out), lambda g: (0, 0, 0)),    # b
            pl.BlockSpec((n_res, 1, two_out), lambda g: (0, 0, 0)),    # gamma
            pl.BlockSpec((n_res, 1, two_out), lambda g: (0, 0, 0)),    # beta
        ],
        out_specs=pl.BlockSpec((rows, out_pad), lambda g: (g, 0)),
        out_shape=jax.ShapeDtypeStruct((B, out_pad), jnp.float32),
        compiler_params=cparams,
        cost_estimate=pl.CostEstimate(
            flops=2 * B * out_pad * two_out * n_res,
            transcendentals=B * out_pad * n_res,
            bytes_accessed=4 * (2 * B * out_pad + n_res * out_pad * two_out)),
    )(y_p, bn_scale, bn_shift, w_p, b_p, g_p, be_p)

    return out_p[:, :out_dim]


# --------------------------------------------------------------------------
# Pure-JAX reference mirroring the PyTorch forward (training-mode BN,
# Dropout = identity)
# --------------------------------------------------------------------------
def _reference(x, p, *, vbs, out_dim, eps=1e-5, neg=0.01):
    B = x.shape[0]

    def gbn(h, gamma, beta):
        nc = max(1, B // vbs)
        outs = []
        for c in jnp.split(h, nc, axis=0):
            mu = c.mean(0, keepdims=True)
            var = ((c - mu) ** 2).mean(0, keepdims=True)
            outs.append((c - mu) / jnp.sqrt(var + eps) * gamma + beta)
        return jnp.concatenate(outs, 0)

    def glu(h, w, b, gamma, beta):
        h = h @ w.T + b
        h = jnp.where(h >= 0, h, neg * h)
        h = gbn(h, gamma, beta)
        return h[:, :out_dim] * jax.nn.sigmoid(h[:, out_dim:])

    h = glu(x, p["w0"], p["b0"], p["g0"], p["be0"])
    h = jnp.where(h >= 0, h, neg * h)
    mu = h.mean(0, keepdims=True)
    var = ((h - mu) ** 2).mean(0, keepdims=True)
    xcur = (h - mu) / jnp.sqrt(var + eps) * p["bn_g"] + p["bn_b"]

    scale = jnp.float32(math.sqrt(0.5))
    for l in range(p["w"].shape[0]):
        g = glu(xcur, p["w"][l], p["b"][l], p["g"][l], p["be"][l])
        xcur = (xcur + g) * scale
    return xcur


# --------------------------------------------------------------------------
if __name__ == "__main__":
    # Small shapes consistent with the module: 2 ghost-BN chunks of vbs=128,
    # n_shared=2 and n_ind=2 -> 3 residual GLU layers after the stem GLU.
    B, inp_dim, out_dim = 256, 32, 64
    vbs = 128
    n_shared, n_ind = 2, 2
    n_res = (n_shared - 1) + n_ind

    key = jax.random.PRNGKey(0)
    ks = jax.random.split(key, 12)

    x = jax.random.normal(ks[0], (B, inp_dim), jnp.float32)
    params = {
        "w0": 0.1 * jax.random.normal(ks[1], (2 * out_dim, inp_dim), jnp.float32),
        "b0": 0.1 * jax.random.normal(ks[2], (2 * out_dim,), jnp.float32),
        "g0": 1.0 + 0.1 * jax.random.normal(ks[3], (2 * out_dim,), jnp.float32),
        "be0": 0.1 * jax.random.normal(ks[4], (2 * out_dim,), jnp.float32),
        "bn_g": 1.0 + 0.1 * jax.random.normal(ks[5], (out_dim,), jnp.float32),
        "bn_b": 0.1 * jax.random.normal(ks[6], (out_dim,), jnp.float32),
        "w": 0.1 * jax.random.normal(ks[7], (n_res, 2 * out_dim, out_dim), jnp.float32),
        "b": 0.1 * jax.random.normal(ks[8], (n_res, 2 * out_dim), jnp.float32),
        "g": 1.0 + 0.1 * jax.random.normal(ks[9], (n_res, 2 * out_dim), jnp.float32),
        "be": 0.1 * jax.random.normal(ks[10], (n_res, 2 * out_dim), jnp.float32),
    }

    # Default (both ghost-BN chunks fused into one grid step) ...
    out = feature_transformer_forward(x, params, vbs=vbs)
    # ... and forced multi-group path (exercises the cross-group full-batch BN).
    out_multi = feature_transformer_forward(x, params, vbs=vbs,
                                            chunks_per_group=1)
    jax.block_until_ready((out, out_multi))

    ref = _reference(x, params, vbs=vbs, out_dim=out_dim)
    assert out.shape == (B, out_dim)
    assert jnp.allclose(out, ref, atol=5e-4, rtol=5e-4), \
        float(jnp.max(jnp.abs(out - ref)))
    assert jnp.allclose(out_multi, ref, atol=5e-4, rtol=5e-4), \
        float(jnp.max(jnp.abs(out_multi - ref)))

    print("KERNEL_OK")
</pallas_src>

<mosaic_0001>
module attributes {stable_mosaic.version = 11 : i64} {
  func.func @_glu_stem_kernel(%arg0: i32, %arg1: memref<256x128xf32, #tpu.memory_space<vmem>>, %arg2: memref<128x256xf32, #tpu.memory_space<vmem>>, %arg3: memref<1x256xf32, #tpu.memory_space<vmem>>, %arg4: memref<1x256xf32, #tpu.memory_space<vmem>>, %arg5: memref<1x256xf32, #tpu.memory_space<vmem>>, %arg6: memref<256x128xf32, #tpu.memory_space<vmem>>, %arg7: memref<1x2x128xf32, #tpu.memory_space<vmem>>) attributes {dimension_semantics = [#tpu.dimension_semantics<parallel>], iteration_bounds = array<i64: 1>, scalar_prefetch = 0 : i64, scratch_operands = 0 : i64, tpu.core_type = #tpu.core_type<tc>, window_params = [{transform_indices = @transform_0, window_bounds = array<i64: 256, 128>}, {pipeline_mode = #tpu.pipeline_mode<synchronous>, transform_indices = @transform_1, window_bounds = array<i64: 128, 256>}, {pipeline_mode = #tpu.pipeline_mode<synchronous>, transform_indices = @transform_2, window_bounds = array<i64: 1, 256>}, {pipeline_mode = #tpu.pipeline_mode<synchronous>, transform_indices = @transform_3, window_bounds = array<i64: 1, 256>}, {pipeline_mode = #tpu.pipeline_mode<synchronous>, transform_indices = @transform_4, window_bounds = array<i64: 1, 256>}, {transform_indices = @transform_5, window_bounds = array<i64: 256, 128>}, {transform_indices = @transform_6, window_bounds = array<i64: 1, 2, 128>}]} {
    %c0 = arith.constant 0 : index
    %c0_0 = arith.constant 0 : index
    %0 = vector.load %arg1[%c0, %c0_0] : memref<256x128xf32, #tpu.memory_space<vmem>>, vector<256x128xf32>
    %c0_1 = arith.constant 0 : index
    %c0_2 = arith.constant 0 : index
    %1 = vector.load %arg2[%c0_1, %c0_2] : memref<128x256xf32, #tpu.memory_space<vmem>>, vector<128x256xf32>
    %cst = arith.constant dense<0.000000e+00> : vector<256x256xf32>
    %2 = tpu.matmul %0, %1, %cst {dimension_numbers = #tpu.dot_dimension_numbers<[1], [0], [0], [1], [0, 0, 1, 1], [], []>} : vector<256x128xf32>, vector<128x256xf32>, vector<256x256xf32> -> vector<256x256xf32>
    %c0_3 = arith.constant 0 : index
    %c0_4 = arith.constant 0 : index
    %3 = vector.load %arg3[%c0_3, %c0_4] : memref<1x256xf32, #tpu.memory_space<vmem>>, vector<1x256xf32>
    %4 = vector.broadcast %3 : vector<1x256xf32> to vector<256x256xf32>
    %5 = arith.addf %2, %4 : vector<256x256xf32>
    %cst_5 = arith.constant 0.000000e+00 : f32
    %6 = vector.broadcast %cst_5 : f32 to vector<256x256xf32>
    %7 = arith.cmpf oge, %5, %6 : vector<256x256xf32>
    %cst_6 = arith.constant 0.00999999977 : f32
    %8 = vector.broadcast %cst_6 : f32 to vector<256x256xf32>
    %9 = arith.mulf %8, %5 : vector<256x256xf32>
    %10 = arith.select %7, %5, %9 : vector<256x256xi1>, vector<256x256xf32>
    %11 = vector.shape_cast %10 : vector<256x256xf32> to vector<2x128x256xf32>
    %cst_7 = arith.constant dense<0.000000e+00> : vector<2x256xf32>
    %12 = vector.multi_reduction <add>, %11, %cst_7 [1] : vector<2x128x256xf32> to vector<2x256xf32>
    %13 = vector.shape_cast %12 : vector<2x256xf32> to vector<2x1x256xf32>
    %cst_8 = arith.constant 1.280000e+02 : f32
    %14 = vector.broadcast %cst_8 : f32 to vector<2x1x256xf32>
    %15 = arith.divf %13, %14 : vector<2x1x256xf32>
    %16 = vector.broadcast %15 : vector<2x1x256xf32> to vector<2x128x256xf32>
    %17 = arith.subf %11, %16 : vector<2x128x256xf32>
    %18 = arith.mulf %17, %17 : vector<2x128x256xf32>
    %cst_9 = arith.constant dense<0.000000e+00> : vector<2x256xf32>
    %19 = vector.multi_reduction <add>, %18, %cst_9 [1] : vector<2x128x256xf32> to vector<2x256xf32>
    %20 = vector.shape_cast %19 : vector<2x256xf32> to vector<2x1x256xf32>
    %cst_10 = arith.constant 1.280000e+02 : f32
    %21 = vector.broadcast %cst_10 : f32 to vector<2x1x256xf32>
    %22 = arith.divf %20, %21 : vector<2x1x256xf32>
    %c0_11 = arith.constant 0 : index
    %c0_12 = arith.constant 0 : index
    %23 = vector.load %arg4[%c0_11, %c0_12] : memref<1x256xf32, #tpu.memory_space<vmem>>, vector<1x256xf32>
    %cst_13 = arith.constant 9.99999974E-6 : f32
    %24 = vector.broadcast %cst_13 : f32 to vector<2x1x256xf32>
    %25 = arith.addf %22, %24 : vector<2x1x256xf32>
    %26 = math.rsqrt %25 : vector<2x1x256xf32>
    %27 = vector.shape_cast %23 : vector<1x256xf32> to vector<1x1x256xf32>
    %28 = vector.broadcast %27 : vector<1x1x256xf32> to vector<2x1x256xf32>
    %29 = arith.mulf %28, %26 : vector<2x1x256xf32>
    %30 = vector.broadcast %29 : vector<2x1x256xf32> to vector<2x128x256xf32>
    %31 = arith.mulf %17, %30 : vector<2x128x256xf32>
    %c0_14 = arith.constant 0 : index
    %c0_15 = arith.constant 0 : index
    %32 = vector.load %arg5[%c0_14, %c0_15] : memref<1x256xf32, #tpu.memory_space<vmem>>, vector<1x256xf32>
    %33 = vector.shape_cast %32 : vector<1x256xf32> to vector<1x1x256xf32>
    %34 = vector.broadcast %33 : vector<1x1x256xf32> to vector<2x128x256xf32>
    %35 = arith.addf %31, %34 : vector<2x128x256xf32>
    %36 = vector.shape_cast %35 : vector<2x128x256xf32> to vector<256x256xf32>
    %37 = vector.extract_strided_slice %36 {offsets = [0, 0], sizes = [256, 128], strides = [1, 1]} : vector<256x256xf32> to vector<256x128xf32>
    %38 = vector.extract_strided_slice %36 {offsets = [0, 128], sizes = [256, 128], strides = [1, 1]} : vector<256x256xf32> to vector<256x128xf32>
    %39 = arith.negf %38 : vector<256x128xf32>
    %40 = math.exp %39 : vector<256x128xf32>
    %cst_16 = arith.constant 1.000000e+00 : f32
    %41 = vector.broadcast %cst_16 : f32 to vector<256x128xf32>
    %42 = arith.addf %41, %40 : vector<256x128xf32>
    %43 = arith.divf %41, %42 : vector<256x128xf32>
    %44 = arith.mulf %37, %43 : vector<256x128xf32>
    %cst_17 = arith.constant 0.000000e+00 : f32
    %45 = vector.broadcast %cst_17 : f32 to vector<256x128xf32>
    %46 = arith.cmpf oge, %44, %45 : vector<256x128xf32>
    %cst_18 = arith.constant 0.00999999977 : f32
    %47 = vector.broadcast %cst_18 : f32 to vector<256x128xf32>
    %48 = arith.mulf %47, %44 : vector<256x128xf32>
    %49 = arith.select %46, %44, %48 : vector<256x128xi1>, vector<256x128xf32>
    %c0_19 = arith.constant 0 : index
    %c0_20 = arith.constant 0 : index
    %50 = vector.load %arg6[%c0_19, %c0_20] : memref<256x128xf32, #tpu.memory_space<vmem>>, vector<256x128xf32>
    tpu.vector_store %arg6[%c0_19, %c0_20], %49 {strides = array<i32>} : memref<256x128xf32, #tpu.memory_space<vmem>>, vector<256x128xf32>,
    %cst_21 = arith.constant dense<0.000000e+00> : vector<128xf32>
    %51 = vector.multi_reduction <add>, %49, %cst_21 [0] : vector<256x128xf32> to vector<128xf32>
    %52 = vector.shape_cast %51 : vector<128xf32> to vector<1x128xf32>
    %53 = arith.mulf %49, %49 : vector<256x128xf32>
    %cst_22 = arith.constant dense<0.000000e+00> : vector<128xf32>
    %54 = vector.multi_reduction <add>, %53, %cst_22 [0] : vector<256x128xf32> to vector<128xf32>
    %55 = vector.shape_cast %54 : vector<128xf32> to vector<1x128xf32>
    %56 = tpu.concatenate %52, %55 in 0 : vector<1x128xf32>, vector<1x128xf32> -> vector<2x128xf32>
    %57 = vector.shape_cast %56 : vector<2x128xf32> to vector<1x2x128xf32>
    %c0_23 = arith.constant 0 : index
    %c0_24 = arith.constant 0 : index
    %c0_25 = arith.constant 0 : index
    %58 = vector.load %arg7[%c0_23, %c0_24, %c0_25] : memref<1x2x128xf32, #tpu.memory_space<vmem>>, vector<1x2x128xf32>
    tpu.vector_store %arg7[%c0_23, %c0_24, %c0_25], %57 {strides = array<i32>} : memref<1x2x128xf32, #tpu.memory_space<vmem>>, vector<1x2x128xf32>,
    return
  }
  func.func @transform_0(%arg0: i32) -> (i32, i32) {
    %c0_i32 = arith.constant 0 : i32
    %c0_i32_0 = arith.constant 0 : i32
    return %arg0, %c0_i32 : i32, i32
  }
  func.func @transform_1(%arg0: i32) -> (i32, i32) {
    %c0_i32 = arith.constant 0 : i32
    %c0_i32_0 = arith.constant 0 : i32
    %c0_i32_1 = arith.constant 0 : i32
    return %c0_i32, %c0_i32_0 : i32, i32
  }
  func.func @transform_2(%arg0: i32) -> (i32, i32) {
    %c0_i32 = arith.constant 0 : i32
    %c0_i32_0 = arith.constant 0 : i32
    %c0_i32_1 = arith.constant 0 : i32
    return %c0_i32, %c0_i32_0 : i32, i32
  }
  func.func @transform_3(%arg0: i32) -> (i32, i32) {
    %c0_i32 = arith.constant 0 : i32
    %c0_i32_0 = arith.constant 0 : i32
    %c0_i32_1 = arith.constant 0 : i32
    return %c0_i32, %c0_i32_0 : i32, i32
  }
  func.func @transform_4(%arg0: i32) -> (i32, i32) {
    %c0_i32 = arith.constant 0 : i32
    %c0_i32_0 = arith.constant 0 : i32
    %c0_i32_1 = arith.constant 0 : i32
    return %c0_i32, %c0_i32_0 : i32, i32
  }
  func.func @transform_5(%arg0: i32) -> (i32, i32) {
    %c0_i32 = arith.constant 0 : i32
    %c0_i32_0 = arith.constant 0 : i32
    return %arg0, %c0_i32 : i32, i32
  }
  func.func @transform_6(%arg0: i32) -> (i32, i32, i32) {
    %c0_i32 = arith.constant 0 : i32
    %c0_i32_0 = arith.constant 0 : i32
    %c0_i32_1 = arith.constant 0 : i32
    return %arg0, %c0_i32, %c0_i32_0 : i32, i32, i32
  }
}

</mosaic_0001>

<bundles_post_ra>
// kernel: tpu_custom_call.1
= control target key start
LH: loop header
LB: loop body
LE: loop exit
PB: predicated region body
PF: predicated region fallthrough
CT: control target
= control target key end

     0   :  { %12 = vsyncpa [#allocation3], 0  ;;  %s4564_s0 = inlined_call_operand.hbm [shape: f32[256,128], index: 0, kind: input, shape index: {}]   ;;  %s4565_s1 = inlined_call_operand.hbm [shape: f32[128,256], index: 1, kind: input, shape index: {}]   ;;  %s4566_s2 = inlined_call_operand.hbm [shape: f32[1,256], index: 2, kind: input, shape index: {}]   ;;  %s4567_s3 = inlined_call_operand.vmem [shape: f32[1,256], index: 3, kind: input, shape index: {}]   ;;  %s4568_s4 = inlined_call_operand.hbm [shape: f32[1,256], index: 4, kind: input, shape index: {}]   ;;  %s4569_s5 = inlined_call_operand.hbm [shape: f32[256,128], index: 5, kind: output, shape index: {0}]   ;;  %s4570_s6 = inlined_call_operand.hbm [shape: f32[1,2,128], index: 6, kind: output, shape index: {1}]  }
   0x1   :  { %13 = vsyncpa [#allocation6], 0 }
   0x2   :  { %14 = vsyncpa [#allocation9], 0 }
   0x3   :  { %15 = vsyncpa [#allocation4], 0  ;;  %s34_s23 = sshll.u32 %s4565_s1, 4  ;;  %s35_s23 = int_to_ptr.hbm [resolvable:$true] %s34_s23 }
   0x4   :  { %16 = vsyncpa [#allocation12], 0  ;;  %s2365_s24 = smov [#allocation5]   ;;  %s21_s28 = sshll.u32 %s4564_s0, 4  ;;  %s22_s28 = int_to_ptr.hbm [resolvable:$true] %s21_s28 }
   0x5   :  { %s36_s25 = sshll.u32 %s2365_s24, 4  ;;  %s2366_s29 = smov 256   ;;  %s37_s25 = int_to_ptr.vmem [resolvable:$true] %s36_s25 }
   0x6   :  { %s2367_s30 = smov 16   ;;  %s2368_s7 = smov [#allocation2]  }
   0x7   :  { %42 = dma.hbm_to_vmem [thread:$0]  %s35_s23, 4096, %s37_s25, [#allocation6], %s2366_s29, %s2366_s29, %s2367_s30  }
   0x8   :  { %s23_s8 = sshll.u32 %s2368_s7, 4  ;;  %s2369_s9 = smov 128   ;;  %s24_s8 = int_to_ptr.vmem [resolvable:$true] %s23_s8 }
   0x9   :  { %s2370_s10 = smov 8   ;;  %s48_s12 = sshll.u32 %s4566_s2, 4  ;;  %s49_s12 = int_to_ptr.hbm [resolvable:$true] %s48_s12 }
   0xa   :  { %29 = dma.hbm_to_vmem [thread:$0]  %s22_s28, 4096, %s24_s8, [#allocation3], %s2369_s9, %s2369_s9, %s2370_s10  }
   0xb   :  { %s2371_s13 = smov [#allocation7]   ;;  %s61_s16 = sshll.u32 %s4568_s4, 4  ;;  %s62_s16 = int_to_ptr.hbm [resolvable:$true] %s61_s16 }
   0xc   :  { %s50_s0 = sshll.u32 %s2371_s13, 4  ;;  %s2372_s17 = smov [#allocation8]   ;;  %s51_s0 = int_to_ptr.vmem [resolvable:$true] %s50_s0 }
   0xd   :  { %53 = dma.hbm_to_vmem [thread:$0]  %s49_s12, 32, %s51_s0, [#allocation6]  }
   0xe   :  { %s63_s18 = sshll.u32 %s2372_s17, 4  ;;  %s64_s18 = int_to_ptr.vmem [resolvable:$true] %s63_s18 }
   0xf   :  { %66 = dma.hbm_to_vmem [thread:$0]  %s62_s16, 32, %s64_s18, [#allocation9]  }
  0x10   :  { %2355 = dma.done.wait [#allocation3], 4096  }
  0x11   :  { %2356 = vsyncadd [#allocation3], 4294963200 }
  0x12   :  { %2357 = dma.done.wait [#allocation6], 4128  }
  0x13   :  { %2358 = vsyncadd [#allocation6], 4294963168 }
  0x14   :  { %2359 = dma.done.wait [#allocation9], 32  }
  0x15   :  { %2360 = vsyncadd [#allocation9], 4294967264  ;;  %v145_v0 = vld [vmem:[#allocation5 + $0xf0] sm:$0xff]  ;;  %v146_v1 = vld [vmem:[#allocation5 + $0xf8] sm:$0xff]  ;;  %s1966_s24 = sshll.u32 %s4569_s5, 4  ;;  %s2375_s5 = smov [#allocation11]   ;;  %s1967_s24 = int_to_ptr.hbm [resolvable:$true] %s1966_s24 }
  0x16   :  { %v143_v2 = vld [vmem:[#allocation5 + $0xe0] sm:$0xff]  ;;  %153 = vmatpush.msra.mxu0 %v145_v0  ;;  %2029 = vmatpush.msra.mxu2 %v145_v0  ;;  %v144_v3 = vld [vmem:[#allocation5 + $0xe8] sm:$0xff]  ;;  %v141_v4 = vld [vmem:[#allocation5 + $0xd0] sm:$0xff]  ;;  %s1978_s25 = sshll.u32 %s2375_s5, 4  ;;  %s1980_s28 = sshll.u32 %s4570_s6, 4  ;;  %s1979_s25 = int_to_ptr.vmem [resolvable:$true] %s1978_s25  ;;  %s1981_s28 = int_to_ptr.hbm [resolvable:$true] %s1980_s28 }
  0x17   :  { %266 = vmatpush.msra.mxu1 %v146_v1  ;;  %2045 = vmatpush.msra.mxu3 %v146_v1  ;;  %v142_v5 = vld [vmem:[#allocation5 + $0xd8] sm:$0xff]  ;;  %v139_v6 = vld [vmem:[#allocation5 + $0xc0] sm:$0xff]  ;;  %v140_v7 = vld [vmem:[#allocation5 + $0xc8] sm:$0xff] }
  0x18   :  { %154 = vmatpush.msra.mxu0 %v143_v2  ;;  %2030 = vmatpush.msra.mxu2 %v143_v2  ;;  %v137_v8 = vld [vmem:[#allocation5 + $0xb0] sm:$0xff]  ;;  %v138_v9 = vld [vmem:[#allocation5 + $0xb8] sm:$0xff]  ;;  %v135_v10 = vld [vmem:[#allocation5 + $0xa0] sm:$0xff] }
  0x19   :  { %267 = vmatpush.msra.mxu1 %v144_v3  ;;  %2046 = vmatpush.msra.mxu3 %v144_v3  ;;  %v136_v11 = vld [vmem:[#allocation5 + $0xa8] sm:$0xff]  ;;  %v133_v12 = vld [vmem:[#allocation5 + $0x90] sm:$0xff]  ;;  %v134_v13 = vld [vmem:[#allocation5 + $0x98] sm:$0xff] }
  0x1a   :  { %155 = vmatpush.msra.mxu0 %v141_v4  ;;  %2031 = vmatpush.msra.mxu2 %v141_v4  ;;  %v131_v14 = vld [vmem:[#allocation5 + $0x80] sm:$0xff]  ;;  %v132_v15 = vld [vmem:[#allocation5 + $0x88] sm:$0xff]  ;;  %v129_v16 = vld [vmem:[#allocation5 + $0x70] sm:$0xff] }
  0x1b   :  { %268 = vmatpush.msra.mxu1 %v142_v5  ;;  %2047 = vmatpush.msra.mxu3 %v142_v5  ;;  %v130_v17 = vld [vmem:[#allocation5 + $0x78] sm:$0xff]  ;;  %v127_v18 = vld [vmem:[#allocation5 + $0x60] sm:$0xff]  ;;  %v128_v19 = vld [vmem:[#allocation5 + $0x68] sm:$0xff] }
  0x1c   :  { %156 = vmatpush.msra.mxu0 %v139_v6  ;;  %2032 = vmatpush.msra.mxu2 %v139_v6  ;;  %v125_v20 = vld [vmem:[#allocation5 + $0x50] sm:$0xff]  ;;  %v126_v21 = vld [vmem:[#allocation5 + $0x58] sm:$0xff]  ;;  %v123_v22 = vld [vmem:[#allocation5 + $0x40] sm:$0xff] }
  0x1d   :  { %269 = vmatpush.msra.mxu1 %v140_v7  ;;  %2048 = vmatpush.msra.mxu3 %v140_v7  ;;  %v124_v23 = vld [vmem:[#allocation5 + $0x48] sm:$0xff]  ;;  %v121_v24 = vld [vmem:[#allocation5 + $0x30] sm:$0xff]  ;;  %v122_v25 = vld [vmem:[#allocation5 + $0x38] sm:$0xff] }
  0x1e   :  { %157 = vmatpush.msra.mxu0 %v137_v8  ;;  %2033 = vmatpush.msra.mxu2 %v137_v8  ;;  %v119_v26 = vld [vmem:[#allocation5 + $0x20] sm:$0xff]  ;;  %v120_v27 = vld [vmem:[#allocation5 + $0x28] sm:$0xff]  ;;  %v117_v28 = vld [vmem:[#allocation5 + $0x10] sm:$0xff] }
  0x1f   :  { %270 = vmatpush.msra.mxu1 %v138_v9  ;;  %2049 = vmatpush.msra.mxu3 %v138_v9  ;;  %v118_v29 = vld [vmem:[#allocation5 + $0x18] sm:$0xff]  ;;  %v115_v30 = vld [vmem:[#allocation5] sm:$0xff]  ;;  %v116_v31 = vld [vmem:[#allocation5 + $0x8] sm:$0xff] }
  0x20   :  { %158 = vmatpush.msra.mxu0 %v135_v10  ;;  %2034 = vmatpush.msra.mxu2 %v135_v10  ;;  %v83_v32 = vld [vmem:[#allocation2] sm:$0xff]  ;;  %v84_v34 = vld [vmem:[#allocation2 + $0x8] sm:$0xff]  ;;  %v85_v36 = vld [vmem:[#allocation2 + $0x10] sm:$0xff] }
  0x21   :  { %271 = vmatpush.msra.mxu1 %v136_v11  ;;  %2050 = vmatpush.msra.mxu3 %v136_v11  ;;  %v99_v33 = vld [vmem:[#allocation2 + $0x80] sm:$0xff]  ;;  %v100_v35 = vld [vmem:[#allocation2 + $0x88] sm:$0xff]  ;;  %v101_v37 = vld [vmem:[#allocation2 + $0x90] sm:$0xff] }
  0x22   :  { %159 = vmatpush.msra.mxu0 %v133_v12  ;;  %2035 = vmatpush.msra.mxu2 %v133_v12  ;;  %v86_v38 = vld [vmem:[#allocation2 + $0x18] sm:$0xff]  ;;  %v87_v40 = vld [vmem:[#allocation2 + $0x20] sm:$0xff]  ;;  %v88_v42 = vld [vmem:[#allocation2 + $0x28] sm:$0xff] }
  0x23   :  { %272 = vmatpush.msra.mxu1 %v134_v13  ;;  %2051 = vmatpush.msra.mxu3 %v134_v13  ;;  %v102_v39 = vld [vmem:[#allocation2 + $0x98] sm:$0xff]  ;;  %v103_v41 = vld [vmem:[#allocation2 + $0xa0] sm:$0xff]  ;;  %v104_v43 = vld [vmem:[#allocation2 + $0xa8] sm:$0xff] }
  0x24   :  { %160 = vmatpush.msra.mxu0 %v131_v14  ;;  %2036 = vmatpush.msra.mxu2 %v131_v14  ;;  %v89_v44 = vld [vmem:[#allocation2 + $0x30] sm:$0xff]  ;;  %v90_v46 = vld [vmem:[#allocation2 + $0x38] sm:$0xff]  ;;  %v91_v48 = vld [vmem:[#allocation2 + $0x40] sm:$0xff] }
  0x25   :  { %273 = vmatpush.msra.mxu1 %v132_v15  ;;  %2052 = vmatpush.msra.mxu3 %v132_v15  ;;  %v105_v45 = vld [vmem:[#allocation2 + $0xb0] sm:$0xff]  ;;  %v106_v47 = vld [vmem:[#allocation2 + $0xb8] sm:$0xff]  ;;  %v107_v49 = vld [vmem:[#allocation2 + $0xc0] sm:$0xff] }
  0x26   :  { %161 = vmatpush.msra.mxu0 %v129_v16  ;;  %2037 = vmatpush.msra.mxu2 %v129_v16  ;;  %v92_v50 = vld [vmem:[#allocation2 + $0x48] sm:$0xff]  ;;  %v93_v52 = vld [vmem:[#allocation2 + $0x50] sm:$0xff]  ;;  %v94_v54 = vld [vmem:[#allocation2 + $0x58] sm:$0xff] }
  0x27   :  { %274 = vmatpush.msra.mxu1 %v130_v17  ;;  %2053 = vmatpush.msra.mxu3 %v130_v17  ;;  %v108_v51 = vld [vmem:[#allocation2 + $0xc8] sm:$0xff]  ;;  %v109_v53 = vld [vmem:[#allocation2 + $0xd0] sm:$0xff]  ;;  %v110_v55 = vld [vmem:[#allocation2 + $0xd8] sm:$0xff] }
  0x28   :  { %162 = vmatpush.msra.mxu0 %v127_v18  ;;  %2038 = vmatpush.msra.mxu2 %v127_v18  ;;  %v95_v56 = vld [vmem:[#allocation2 + $0x60] sm:$0xff]  ;;  %v96_v58 = vld [vmem:[#allocation2 + $0x68] sm:$0xff]  ;;  %v97_v60 = vld [vmem:[#allocation2 + $0x70] sm:$0xff] }
  0x29   :  { %275 = vmatpush.msra.mxu1 %v128_v19  ;;  %2054 = vmatpush.msra.mxu3 %v128_v19  ;;  %v111_v57 = vld [vmem:[#allocation2 + $0xe0] sm:$0xff]  ;;  %v112_v59 = vld [vmem:[#allocation2 + $0xe8] sm:$0xff]  ;;  %v113_v61 = vld [vmem:[#allocation2 + $0xf0] sm:$0xff] }
  0x2a   :  { %163 = vmatpush.msra.mxu0 %v125_v20  ;;  %2039 = vmatpush.msra.mxu2 %v125_v20  ;;  %v98_v62 = vld [vmem:[#allocation2 + $0x78] sm:$0xff]  ;;  %v147_v0 = vld [vmem:[#allocation7] sm:$0x3] }
  0x2b   :  { %276 = vmatpush.msra.mxu1 %v126_v21  ;;  %2055 = vmatpush.msra.mxu3 %v126_v21  ;;  %v114_v63 = vld [vmem:[#allocation2 + $0xf8] sm:$0xff]  ;;  %v2426_v2 = vperm.slane %v147_v0, 0  ;;  %v2428_v3 = vperm.slane %v147_v0, 1 }
  0x2c   :  { %164 = vmatpush.msra.mxu0 %v123_v22  ;;  %2040 = vmatpush.msra.mxu2 %v123_v22 }
  0x2d   :  { %277 = vmatpush.msra.mxu1 %v124_v23  ;;  %2056 = vmatpush.msra.mxu3 %v124_v23  ;;  %4622 = vst [vmem:[#allocation18_spill] sm:$0xff] %v2428_v3 }
  0x2e   :  { %165 = vmatpush.msra.mxu0 %v121_v24  ;;  %2041 = vmatpush.msra.mxu2 %v121_v24 }
  0x2f   :  { %278 = vmatpush.msra.mxu1 %v122_v25  ;;  %2057 = vmatpush.msra.mxu3 %v122_v25 }
  0x30   :  { %166 = vmatpush.msra.mxu0 %v119_v26  ;;  %2042 = vmatpush.msra.mxu2 %v119_v26 }
  0x31   :  { %279 = vmatpush.msra.mxu1 %v120_v27  ;;  %2058 = vmatpush.msra.mxu3 %v120_v27 }
  0x32   :  { %167 = vmatpush.msra.mxu0 %v117_v28  ;;  %2043 = vmatpush.msra.mxu2 %v117_v28 }
  0x33   :  { %280 = vmatpush.msra.mxu1 %v118_v29  ;;  %2059 = vmatpush.msra.mxu3 %v118_v29 }
  0x34   :  { %168 = vmatpush.msra.mxu0 %v115_v30  ;;  %2044 = vmatpush.msra.mxu2 %v115_v30 }
  0x35   :  { %281 = vmatpush.msra.mxu1 %v116_v31  ;;  %2060 = vmatpush.msra.mxu3 %v116_v31 }
  0x36   :  { %169 = vmatmul.f32.vlgmr.msra.gmra.mxu0 %v83_v32  ;;  %217 = vmatmul.f32.vlgmr.msra.gmra.mxu2 %v99_v33 }
  0x37   :  { %282 = vmatmul.f32.vlgmr.msra.gmra.mxu1 %v83_v32  ;;  %330 = vmatmul.f32.vlgmr.msra.gmra.mxu3 %v99_v33 }
  0x3e   :  { %172 = vmatmul.f32.gmra.mxu0 %v84_v34  ;;  %220 = vmatmul.f32.gmra.mxu2 %v100_v35 }
  0x3f   :  { %285 = vmatmul.f32.gmra.mxu1 %v84_v34  ;;  %333 = vmatmul.f32.gmra.mxu3 %v100_v35 }
  0x46   :  { %175 = vmatmul.f32.gmra.mxu0 %v85_v36  ;;  %223 = vmatmul.f32.gmra.mxu2 %v101_v37 }
  0x47   :  { %288 = vmatmul.f32.gmra.mxu1 %v85_v36  ;;  %336 = vmatmul.f32.gmra.mxu3 %v101_v37 }
  0x4e   :  { %178 = vmatmul.f32.gmra.mxu0 %v86_v38  ;;  %226 = vmatmul.f32.gmra.mxu2 %v102_v39 }
  0x4f   :  { %291 = vmatmul.f32.gmra.mxu1 %v86_v38  ;;  %339 = vmatmul.f32.gmra.mxu3 %v102_v39 }
  0x56   :  { %181 = vmatmul.f32.gmra.mxu0 %v87_v40  ;;  %229 = vmatmul.f32.gmra.mxu2 %v103_v41 }
  0x57   :  { %294 = vmatmul.f32.gmra.mxu1 %v87_v40  ;;  %342 = vmatmul.f32.gmra.mxu3 %v103_v41 }
  0x5e   :  { %184 = vmatmul.f32.gmra.mxu0 %v88_v42  ;;  %232 = vmatmul.f32.gmra.mxu2 %v104_v43 }
  0x5f   :  { %297 = vmatmul.f32.gmra.mxu1 %v88_v42  ;;  %345 = vmatmul.f32.gmra.mxu3 %v104_v43 }
  0x66   :  { %187 = vmatmul.f32.gmra.mxu0 %v89_v44  ;;  %235 = vmatmul.f32.gmra.mxu2 %v105_v45 }
  0x67   :  { %300 = vmatmul.f32.gmra.mxu1 %v89_v44  ;;  %348 = vmatmul.f32.gmra.mxu3 %v105_v45 }
  0x6e   :  { %190 = vmatmul.f32.gmra.mxu0 %v90_v46  ;;  %238 = vmatmul.f32.gmra.mxu2 %v106_v47 }
  0x6f   :  { %303 = vmatmul.f32.gmra.mxu1 %v90_v46  ;;  %351 = vmatmul.f32.gmra.mxu3 %v106_v47 }
  0x76   :  { %193 = vmatmul.f32.gmra.mxu0 %v91_v48  ;;  %241 = vmatmul.f32.gmra.mxu2 %v107_v49 }
  0x77   :  { %306 = vmatmul.f32.gmra.mxu1 %v91_v48  ;;  %354 = vmatmul.f32.gmra.mxu3 %v107_v49 }
  0x7e   :  { %196 = vmatmul.f32.gmra.mxu0 %v92_v50  ;;  %244 = vmatmul.f32.gmra.mxu2 %v108_v51 }
  0x7f   :  { %309 = vmatmul.f32.gmra.mxu1 %v92_v50  ;;  %357 = vmatmul.f32.gmra.mxu3 %v108_v51 }
  0x86   :  { %199 = vmatmul.f32.gmra.mxu0 %v93_v52  ;;  %247 = vmatmul.f32.gmra.mxu2 %v109_v53 }
  0x87   :  { %312 = vmatmul.f32.gmra.mxu1 %v93_v52  ;;  %360 = vmatmul.f32.gmra.mxu3 %v109_v53 }
  0x8e   :  { %202 = vmatmul.f32.gmra.mxu0 %v94_v54  ;;  %250 = vmatmul.f32.gmra.mxu2 %v110_v55 }
  0x8f   :  { %315 = vmatmul.f32.gmra.mxu1 %v94_v54  ;;  %363 = vmatmul.f32.gmra.mxu3 %v110_v55 }
  0x96   :  { %205 = vmatmul.f32.gmra.mxu0 %v95_v56  ;;  %253 = vmatmul.f32.gmra.mxu2 %v111_v57 }
  0x97   :  { %318 = vmatmul.f32.gmra.mxu1 %v95_v56  ;;  %366 = vmatmul.f32.gmra.mxu3 %v111_v57 }
  0x9e   :  { %208 = vmatmul.f32.gmra.mxu0 %v96_v58  ;;  %256 = vmatmul.f32.gmra.mxu2 %v112_v59 }
  0x9f   :  { %321 = vmatmul.f32.gmra.mxu1 %v96_v58  ;;  %369 = vmatmul.f32.gmra.mxu3 %v112_v59 }
  0xa6   :  { %211 = vmatmul.f32.gmra.mxu0 %v97_v60  ;;  %259 = vmatmul.f32.gmra.mxu2 %v113_v61 }
  0xa7   :  { %324 = vmatmul.f32.gmra.mxu1 %v97_v60  ;;  %372 = vmatmul.f32.gmra.mxu3 %v113_v61 }
  0xae   :  { %214 = vmatmul.f32.gmra.mxu0 %v98_v62  ;;  %262 = vmatmul.f32.gmra.mxu2 %v114_v63 }
  0xaf   :  { %327 = vmatmul.f32.gmra.mxu1 %v98_v62  ;;  %375 = vmatmul.f32.gmra.mxu3 %v114_v63 }
  0xb3   :  { %v170_v1 = vpop.f32.mrf.mxu0 }
  0xb4   :  { %v283_v4 = vpop.f32.mrf.mxu1  ;;  %v171_v5 = vadd.f32 %v170_v1, %v2426_v2 }
  0xb5   :  { %v284_v6 = vadd.f32 %v283_v4, %v2428_v3 }
  0xb6   :  { %v443_v10 = vmul.f32 0.01, %v171_v5  ;;  %vm379_vm0 = vcmp.ge.f32.partialorder %v171_v5, 0.0 }
  0xb7   :  { %v444_v11 = vmul.f32 0.01, %v284_v6  ;;  %vm380_vm1 = vcmp.ge.f32.partialorder %v284_v6, 0.0 }
  0xb8   :  { %v2436_v19 = vsel %vm379_vm0, %v171_v5, %v443_v10 }
  0xb9   :  { %v218_v7 = vpop.f32.mrf.mxu2  ;;  %v2438_v20 = vsel %vm380_vm1, %v284_v6, %v444_v11 }
  0xba   :  { %v331_v8 = vpop.f32.mrf.mxu3  ;;  %v219_v12 = vadd.f32 %v218_v7, %v2426_v2 }
  0xbb   :  { %v173_v9 = vpop.f32.mrf.mxu0  ;;  %v332_v15 = vadd.f32 %v331_v8, %v2428_v3 }
  0xbc   :  { %v174_v13 = vadd.f32 %v173_v9, %v2426_v2  ;;  %v286_v14 = vpop.f32.mrf.mxu1  ;;  %v475_v21 = vmul.f32 0.01, %v219_v12  ;;  %vm411_vm4 = vcmp.ge.f32.partialorder %v219_v12, 0.0 }
  0xbd   :  { %v287_v16 = vadd.f32 %v286_v14, %v2428_v3  ;;  %v476_v23 = vmul.f32 0.01, %v332_v15  ;;  %vm412_vm5 = vcmp.ge.f32.partialorder %v332_v15, 0.0 }
  0xbe   :  { %vm381_vm2 = vcmp.ge.f32.partialorder %v174_v13, 0.0  ;;  %v445_v17 = vmul.f32 0.01, %v174_v13  ;;  %v2450_v32 = vsel %vm411_vm4, %v219_v12, %v475_v21 }
  0xbf   :  { %vm382_vm3 = vcmp.ge.f32.partialorder %v287_v16, 0.0  ;;  %v446_v18 = vmul.f32 0.01, %v287_v16  ;;  %v2453_v36 = vsel %vm412_vm5, %v332_v15, %v476_v23 }
  0xc0   :  { %v2440_v22 = vsel %vm381_vm2, %v174_v13, %v445_v17  ;;  %4623 = vst [vmem:[#allocation19_spill] sm:$0xff] %v2453_v36 }
  0xc1   :  { %v571_v24 = vadd.f32 %v2440_v22, %v2436_v19  ;;  %v2444_v25 = vsel %vm382_vm3, %v287_v16, %v446_v18  ;;  %v221_v26 = vpop.f32.mrf.mxu2 }
  0xc2   :  { %v592_v27 = vadd.f32 %v2444_v25, %v2438_v20  ;;  %v222_v28 = vadd.f32 %v221_v26, %v2426_v2  ;;  %v334_v29 = vpop.f32.mrf.mxu3 }
  0xc3   :  { %v335_v30 = vadd.f32 %v334_v29, %v2428_v3  ;;  %v176_v31 = vpop.f32.mrf.mxu0 }
  0xc4   :  { %vm413_vm6 = vcmp.ge.f32.partialorder %v222_v28, 0.0  ;;  %v477_v33 = vmul.f32 0.01, %v222_v28  ;;  %v177_v34 = vadd.f32 %v176_v31, %v2426_v2  ;;  %v289_v35 = vpop.f32.mrf.mxu1 }
  0xc5   :  { %vm414_vm7 = vcmp.ge.f32.partialorder %v335_v30, 0.0  ;;  %v478_v37 = vmul.f32 0.01, %v335_v30  ;;  %v290_v38 = vadd.f32 %v289_v35, %v2428_v3 }
  0xc6   :  { %v2456_v39 = vsel %vm413_vm6, %v222_v28, %v477_v33  ;;  %vm383_vm8 = vcmp.ge.f32.partialorder %v177_v34, 0.0  ;;  %v447_v40 = vmul.f32 0.01, %v177_v34 }
  0xc7   :  { %v613_v41 = vadd.f32 %v2456_v39, %v2450_v32  ;;  %v2460_v42 = vsel %vm414_vm7, %v335_v30, %v478_v37  ;;  %vm384_vm9 = vcmp.ge.f32.partialorder %v290_v38, 0.0  ;;  %v448_v43 = vmul.f32 0.01, %v290_v38 }
  0xc8   :  { %4624 = vst [vmem:[#allocation20_spill] sm:$0xff] %v2460_v42  ;;  %v634_v44 = vadd.f32 %v2460_v42, %v2453_v36  ;;  %v2464_v45 = vsel %vm383_vm8, %v177_v34, %v447_v40 }
  0xc9   :  { %v572_v46 = vadd.f32 %v571_v24, %v2464_v45  ;;  %v2467_v47 = vsel %vm384_vm9, %v290_v38, %v448_v43  ;;  %v224_v48 = vpop.f32.mrf.mxu2 }
  0xca   :  { %v593_v49 = vadd.f32 %v592_v27, %v2467_v47  ;;  %v225_v50 = vadd.f32 %v224_v48, %v2426_v2  ;;  %v337_v51 = vpop.f32.mrf.mxu3 }
  0xcb   :  { %v338_v52 = vadd.f32 %v337_v51, %v2428_v3  ;;  %v179_v53 = vpop.f32.mrf.mxu0 }
  0xcc   :  { %vm415_vm10 = vcmp.ge.f32.partialorder %v225_v50, 0.0  ;;  %v479_v54 = vmul.f32 0.01, %v225_v50  ;;  %v180_v55 = vadd.f32 %v179_v53, %v2426_v2  ;;  %v292_v56 = vpop.f32.mrf.mxu1 }
  0xcd   :  { %vm416_vm11 = vcmp.ge.f32.partialorder %v338_v52, 0.0  ;;  %v480_v57 = vmul.f32 0.01, %v338_v52  ;;  %v293_v58 = vadd.f32 %v292_v56, %v2428_v3 }
  0xce   :  { %v2474_v59 = vsel %vm415_vm10, %v225_v50, %v479_v54  ;;  %vm385_vm12 = vcmp.ge.f32.partialorder %v180_v55, 0.0  ;;  %v449_v60 = vmul.f32 0.01, %v180_v55 }
  0xcf   :  { %v614_v61 = vadd.f32 %v613_v41, %v2474_v59  ;;  %v2477_v62 = vsel %vm416_vm11, %v338_v52, %v480_v57  ;;  %vm386_vm13 = vcmp.ge.f32.partialorder %v293_v58, 0.0  ;;  %v450_v63 = vmul.f32 0.01, %v293_v58 }
  0xd0   :  { %4625 = vst [vmem:[#allocation21_spill] sm:$0xff] %v2477_v62  ;;  %v635_v0 = vadd.f32 %v634_v44, %v2477_v62  ;;  %v2480_v1 = vsel %vm385_vm12, %v180_v55, %v449_v60 }
  0xd1   :  { %v573_v4 = vadd.f32 %v572_v46, %v2480_v1  ;;  %v2483_v5 = vsel %vm386_vm13, %v293_v58, %v450_v63  ;;  %v227_v6 = vpop.f32.mrf.mxu2 }
  0xd2   :  { %v594_v7 = vadd.f32 %v593_v49, %v2483_v5  ;;  %v228_v8 = vadd.f32 %v227_v6, %v2426_v2  ;;  %v340_v9 = vpop.f32.mrf.mxu3 }
  0xd3   :  { %v341_v10 = vadd.f32 %v340_v9, %v2428_v3  ;;  %v182_v11 = vpop.f32.mrf.mxu0 }
  0xd4   :  { %vm417_vm14 = vcmp.ge.f32.partialorder %v228_v8, 0.0  ;;  %v481_v12 = vmul.f32 0.01, %v228_v8  ;;  %v183_v13 = vadd.f32 %v182_v11, %v2426_v2  ;;  %v295_v14 = vpop.f32.mrf.mxu1 }
  0xd5   :  { %vm418_vm15 = vcmp.ge.f32.partialorder %v341_v10, 0.0  ;;  %v482_v15 = vmul.f32 0.01, %v341_v10  ;;  %v296_v16 = vadd.f32 %v295_v14, %v2428_v3 }
  0xd6   :  { %v2490_v17 = vsel %vm417_vm14, %v228_v8, %v481_v12  ;;  %vm387_vm0 = vcmp.ge.f32.partialorder %v183_v13, 0.0  ;;  %v451_v18 = vmul.f32 0.01, %v183_v13 }
  0xd7   :  { %v615_v21 = vadd.f32 %v614_v61, %v2490_v17  ;;  %v2493_v23 = vsel %vm418_vm15, %v341_v10, %v482_v15  ;;  %vm388_vm1 = vcmp.ge.f32.partialorder %v296_v16, 0.0  ;;  %v452_v24 = vmul.f32 0.01, %v296_v16 }
  0xd8   :  { %4626 = vst [vmem:[#allocation22_spill] sm:$0xff] %v2493_v23  ;;  %v636_v26 = vadd.f32 %v635_v0, %v2493_v23  ;;  %v2496_v27 = vsel %vm387_vm0, %v183_v13, %v451_v18 }
  0xd9   :  { %v574_v28 = vadd.f32 %v573_v4, %v2496_v27  ;;  %v2499_v29 = vsel %vm388_vm1, %v296_v16, %v452_v24  ;;  %v230_v30 = vpop.f32.mrf.mxu2 }
  0xda   :  { %v595_v31 = vadd.f32 %v594_v7, %v2499_v29  ;;  %v231_v33 = vadd.f32 %v230_v30, %v2426_v2  ;;  %v343_v34 = vpop.f32.mrf.mxu3 }
  0xdb   :  { %v344_v35 = vadd.f32 %v343_v34, %v2428_v3  ;;  %v185_v37 = vpop.f32.mrf.mxu0 }
  0xdc   :  { %vm419_vm2 = vcmp.ge.f32.partialorder %v231_v33, 0.0  ;;  %v483_v38 = vmul.f32 0.01, %v231_v33  ;;  %v298_v40 = vpop.f32.mrf.mxu1  ;;  %v186_v0 = vadd.f32 %v185_v37, %v2426_v2 }
  0xdd   :  { %vm420_vm3 = vcmp.ge.f32.partialorder %v344_v35, 0.0  ;;  %v484_v41 = vmul.f32 0.01, %v344_v35  ;;  %v299_v4 = vadd.f32 %v298_v40, %v2428_v3 }
  0xde   :  { %v2504_v43 = vsel %vm419_vm2, %v231_v33, %v483_v38  ;;  %v453_v8 = vmul.f32 0.01, %v186_v0  ;;  %vm389_vm4 = vcmp.ge.f32.partialorder %v186_v0, 0.0 }
  0xdf   :  { %4627 = vst [vmem:[#allocation23_spill] sm:$0xff] %v2504_v43  ;;  %v2507_v44 = vadd.f32 %v615_v21, %v2504_v43  ;;  %v2509_v46 = vsel %vm420_vm3, %v344_v35, %v484_v41  ;;  %v454_v10 = vmul.f32 0.01, %v299_v4  ;;  %vm390_vm5 = vcmp.ge.f32.partialorder %v299_v4, 0.0 }
  0xe0   :  { %4628 = vst [vmem:[#allocation24_spill] sm:$0xff] %v2509_v46  ;;  %v2512_v48 = vadd.f32 %v636_v26, %v2509_v46  ;;  %v2525_v18 = vsel %vm389_vm4, %v186_v0, %v453_v8 }
  0xe1   :  { %v2514_v58 = vpop.f32.mrf.mxu2  ;;  %v2528_v26 = vsel %vm390_vm5, %v299_v4, %v454_v10  ;;  %v575_v35 = vadd.f32 %v574_v28, %v2525_v18 }
  0xe2   :  { %4629 = vst [vmem:[#allocation25_spill] sm:$0xff] %v2512_v48  ;;  %v596_v41 = vadd.f32 %v595_v31, %v2528_v26 }
  0xe3   :  { %v188_v49 = vpop.f32.mrf.mxu0 }
  0xe4   :  { %v301_v50 = vpop.f32.mrf.mxu1  ;;  %v189_v7 = vadd.f32 %v188_v49, %v2426_v2 }
  0xe5   :  { %v302_v9 = vadd.f32 %v301_v50, %v2428_v3 }
  0xe6   :  { %v455_v14 = vmul.f32 0.01, %v189_v7  ;;  %vm391_vm6 = vcmp.ge.f32.partialorder %v189_v7, 0.0 }
  0xe7   :  { %v456_v21 = vmul.f32 0.01, %v302_v9  ;;  %vm392_vm7 = vcmp.ge.f32.partialorder %v302_v9, 0.0 }
  0xe8   :  { %v2532_v37 = vsel %vm391_vm6, %v189_v7, %v455_v14 }
  0xe9   :  { %v2518_v6 = vpop.f32.mrf.mxu2  ;;  %v2537_v49 = vsel %vm392_vm7, %v302_v9, %v456_v21  ;;  %v576_v28 = vadd.f32 %v575_v35, %v2532_v37 }
  0xea   :  { %v597_v0 = vadd.f32 %v596_v41, %v2537_v49 }
  0xeb   :  { %v191_v51 = vpop.f32.mrf.mxu0 }
  0xec   :  { %v304_v52 = vpop.f32.mrf.mxu1  ;;  %v192_v11 = vadd.f32 %v191_v51, %v2426_v2 }
  0xed   :  { %v305_v12 = vadd.f32 %v304_v52, %v2428_v3 }
  0xee   :  { %v457_v30 = vmul.f32 0.01, %v192_v11  ;;  %vm393_vm8 = vcmp.ge.f32.partialorder %v192_v11, 0.0 }
  0xef   :  { %v458_v34 = vmul.f32 0.01, %v305_v12  ;;  %vm394_vm9 = vcmp.ge.f32.partialorder %v305_v12, 0.0 }
  0xf0   :  { %v2539_v51 = vsel %vm393_vm8, %v192_v11, %v457_v30 }
  0xf1   :  { %v2534_v38 = vpop.f32.mrf.mxu2  ;;  %v577_v8 = vadd.f32 %v576_v28, %v2539_v51 }
  0xf3   :  { %v194_v53 = vpop.f32.mrf.mxu0 }
  0xf4   :  { %v307_v54 = vpop.f32.mrf.mxu1  ;;  %v195_v15 = vadd.f32 %v194_v53, %v2426_v2 }
  0xf5   :  { %v308_v24 = vadd.f32 %v307_v54, %v2428_v3  ;;  %v2543_v54 = vsel %vm394_vm9, %v305_v12, %v458_v34 }
  0xf6   :  { %v459_v40 = vmul.f32 0.01, %v195_v15  ;;  %vm395_vm10 = vcmp.ge.f32.partialorder %v195_v15, 0.0 }
  0xf7   :  { %v460_v50 = vmul.f32 0.01, %v308_v24  ;;  %vm396_vm11 = vcmp.ge.f32.partialorder %v308_v24, 0.0 }
  0xf8   :  { %v2546_v4 = vsel %vm395_vm10, %v195_v15, %v459_v40 }
  0xf9   :  { %v2550_v9 = vsel %vm396_vm11, %v308_v24, %v460_v50  ;;  %v578_v21 = vadd.f32 %v577_v8, %v2546_v4  ;;  %v2563_v35 = vpop.f32.mrf.mxu2 }
  0xfb   :  { %v197_v55 = vpop.f32.mrf.mxu0 }
  0xfc   :  { %v310_v56 = vpop.f32.mrf.mxu1  ;;  %v198_v33 = vadd.f32 %v197_v55, %v2426_v2 }
  0xfd   :  { %v311_v53 = vadd.f32 %v310_v56, %v2428_v3  ;;  %v598_v56 = vadd.f32 %v597_v0, %v2543_v54 }
  0xfe   :  { %v461_v52 = vmul.f32 0.01, %v198_v33  ;;  %vm397_vm12 = vcmp.ge.f32.partialorder %v198_v33, 0.0 }
  0xff   :  { %v462_v12 = vmul.f32 0.01, %v311_v53  ;;  %vm398_vm13 = vcmp.ge.f32.partialorder %v311_v53, 0.0 }
 0x100   :  { %v2554_v11 = vsel %vm397_vm12, %v198_v33, %v461_v52 }
 0x101   :  { %v579_v34 = vadd.f32 %v578_v21, %v2554_v11  ;;  %v2565_v40 = vsel %vm398_vm13, %v311_v53, %v462_v12 }
 0x103   :  { %v200_v57 = vpop.f32.mrf.mxu0 }
 0x104   :  { %v313_v60 = vpop.f32.mrf.mxu1  ;;  %v201_v31 = vadd.f32 %v200_v57, %v2426_v2  ;;  %v599_v57 = vadd.f32 %v598_v56, %v2550_v9 }
 0x105   :  { %v314_v10 = vadd.f32 %v313_v60, %v2428_v3 }
 0x106   :  { %v463_v30 = vmul.f32 0.01, %v201_v31  ;;  %vm399_vm14 = vcmp.ge.f32.partialorder %v201_v31, 0.0  ;;  %v600_v12 = vadd.f32 %v599_v57, %v2565_v40 }
 0x107   :  { %v464_v60 = vmul.f32 0.01, %v314_v10  ;;  %vm400_vm15 = vcmp.ge.f32.partialorder %v314_v10, 0.0 }
 0x108   :  { %v2569_v28 = vsel %vm399_vm14, %v201_v31, %v463_v30 }
 0x109   :  { %v2572_v53 = vsel %vm400_vm15, %v314_v10, %v464_v60  ;;  %v580_v31 = vadd.f32 %v579_v34, %v2569_v28 }
 0x10a   :  { %v601_v10 = vadd.f32 %v600_v12, %v2572_v53 }
 0x10b   :  { %v203_v61 = vpop.f32.mrf.mxu0 }
 0x10c   :  { %v316_v63 = vpop.f32.mrf.mxu1  ;;  %v204_v14 = vadd.f32 %v203_v61, %v2426_v2 }
 0x10d   :  { %v317_v15 = vadd.f32 %v316_v63, %v2428_v3 }
 0x10e   :  { %v465_v61 = vmul.f32 0.01, %v204_v14  ;;  %vm401_vm0 = vcmp.ge.f32.partialorder %v204_v14, 0.0 }
 0x10f   :  { %v466_v63 = vmul.f32 0.01, %v317_v15  ;;  %vm402_vm1 = vcmp.ge.f32.partialorder %v317_v15, 0.0 }
 0x111   :  { %v2580_v30 = vsel %vm402_vm1, %v317_v15, %v466_v63 }
 0x113   :  { %v206_v13 = vpop.f32.mrf.mxu0 }
 0x114   :  { %v319_v16 = vpop.f32.mrf.mxu1  ;;  %v207_v24 = vadd.f32 %v206_v13, %v2426_v2  ;;  %v2373_v13 = vmov 128.0  }
 0x115   :  { %v320_v33 = vadd.f32 %v319_v16, %v2428_v3  ;;  %2072 = vrcp.f32 %v2373_v13 }
 0x116   :  { %v467_v0 = vmul.f32 0.01, %v207_v24  ;;  %vm403_vm2 = vcmp.ge.f32.partialorder %v207_v24, 0.0 }
 0x117   :  { %v468_v56 = vmul.f32 0.01, %v320_v33  ;;  %vm404_vm3 = vcmp.ge.f32.partialorder %v320_v33, 0.0 }
 0x118   :  { %v2583_v60 = vsel %vm403_vm2, %v207_v24, %v467_v0  ;;  %v2594_v0 = vpop.f32.mrf.mxu2 }
 0x119   :  { %v2586_v46 = vsel %vm404_vm3, %v320_v33, %v468_v56 }
 0x11b   :  { %v209_v55 = vpop.f32.mrf.mxu0 }
 0x11c   :  { %v322_v7 = vpop.f32.mrf.mxu1  ;;  %v210_v41 = vadd.f32 %v209_v55, %v2426_v2 }
 0x11d   :  { %v323_v50 = vadd.f32 %v322_v7, %v2428_v3  ;;  %v2577_v7 = vsel %vm401_vm0, %v204_v14, %v465_v61  ;;  %v602_v61 = vadd.f32 %v601_v10, %v2580_v30 }
 0x11e   :  { %v469_v21 = vmul.f32 0.01, %v210_v41  ;;  %vm405_vm4 = vcmp.ge.f32.partialorder %v210_v41, 0.0  ;;  %v581_v57 = vadd.f32 %v580_v31, %v2577_v7 }
 0x11f   :  { %vm406_vm5 = vcmp.ge.f32.partialorder %v323_v50, 0.0  ;;  %v603_v12 = vadd.f32 %v602_v61, %v2586_v46 }
 0x120   :  { %v2589_v34 = vsel %vm405_vm4, %v210_v41, %v469_v21  ;;  %v582_v15 = vadd.f32 %v581_v57, %v2583_v60  ;;  %v2613_v36 = vpop.f32.mrf.mxu2 }
 0x122   :  { %v583_v10 = vadd.f32 %v582_v15, %v2589_v34 }
 0x123   :  { %v212_v52 = vpop.f32.mrf.mxu0 }
 0x124   :  { %v213_v16 = vadd.f32 %v212_v52, %v2426_v2  ;;  %v325_v8 = vpop.f32.mrf.mxu1  ;;  %v470_v52 = vmul.f32 0.01, %v323_v50 }
 0x125   :  { %v326_v55 = vadd.f32 %v325_v8, %v2428_v3  ;;  %v2073_v8 = vpop.eup %2072 }
 0x126   :  { %v471_v13 = vmul.f32 0.01, %v213_v16  ;;  %vm407_vm6 = vcmp.ge.f32.partialorder %v213_v16, 0.0  ;;  %v2592_v63 = vsel %vm406_vm5, %v323_v50, %v470_v52  ;;  %v656_v56 = vmul.f32 128.0, %v2073_v8 }
 0x127   :  { %v472_v14 = vmul.f32 0.01, %v326_v55  ;;  %vm408_vm7 = vcmp.ge.f32.partialorder %v326_v55, 0.0  ;;  %v604_v50 = vadd.f32 %v603_v12, %v2592_v63  ;;  %vm660_vm10 = vweird.f32 %v2073_v8 }
 0x128   :  { %v2597_v23 = vsel %vm407_vm6, %v213_v16, %v471_v13 }
 0x129   :  { %v2601_v41 = vsel %vm408_vm7, %v326_v55, %v472_v14  ;;  %v584_v57 = vadd.f32 %v583_v10, %v2597_v23 }
 0x12a   :  { %v605_v16 = vadd.f32 %v604_v50, %v2601_v41 }
 0x12b   :  { %v215_v24 = vpop.f32.mrf.mxu0 }
 0x12c   :  { %v216_v33 = vadd.f32 %v215_v24, %v2426_v2  ;;  %v328_v31 = vpop.f32.mrf.mxu1  ;;  %v657_v24 = vsub.f32 1.0, %v656_v56 }
 0x12d   :  { %v329_v21 = vadd.f32 %v328_v31, %v2428_v3 }
 0x12e   :  { %vm409_vm8 = vcmp.ge.f32.partialorder %v216_v33, 0.0  ;;  %v473_v52 = vmul.f32 0.01, %v216_v33  ;;  %v658_v31 = vmul.f32 %v2073_v8, %v657_v24  ;;  %v2624_v24 = vpop.f32.mrf.mxu2 }
 0x12f   :  { %vm410_vm9 = vcmp.ge.f32.partialorder %v329_v21, 0.0  ;;  %v474_v61 = vmul.f32 0.01, %v329_v21 }
 0x130   :  { %v2607_v13 = vsel %vm409_vm8, %v216_v33, %v473_v52  ;;  %v659_v3 = vadd.f32 %v2073_v8, %v658_v31 }
 0x131   :  { %v585_v62 = vadd.f32 %v584_v57, %v2607_v13  ;;  %v2610_v15 = vsel %vm410_vm9, %v329_v21, %v474_v61  ;;  %v2617_v61 = vpop.f32.mrf.mxu3 }
 0x132   :  { %v606_v55 = vadd.f32 %v605_v16, %v2610_v15  ;;  %v2615_v52 = vsel %vm660_vm10, %v2073_v8, %v659_v3 }
 0x133   :  { %v586_v14 = vrot.slane %v585_v62, 4  ;;  %4630 = vst [vmem:[#allocation26_spill] sm:$0xff] %v2615_v52 }
 0x134   :  { %v607_v12 = vrot.slane %v606_v55, 4 }
 0x135   :  { %v587_v42 = vadd.f32 %v586_v14, %v585_v62  ;;  %v234_v62 = vadd.f32 %v2514_v58, %v2426_v2 }
 0x136   :  { %v608_v10 = vadd.f32 %v607_v12, %v606_v55 }
 0x137   :  { %v588_v48 = vrot.slane %v587_v42, 2  ;;  %v485_v8 = vmul.f32 0.01, %v234_v62  ;;  %vm421_vm11 = vcmp.ge.f32.partialorder %v234_v62, 0.0 }
 0x138   :  { %v609_v43 = vrot.slane %v608_v10, 2 }
 0x139   :  { %v589_v50 = vadd.f32 %v588_v48, %v587_v42  ;;  %v2657_v31 = vsel %vm421_vm11, %v234_v62, %v485_v8  ;;  %v2661_v12 = vpop.f32.mrf.mxu3  ;;  %v246_v8 = vadd.f32 %v2594_v0, %v2426_v2 }
 0x13a   :  { %v610_v33 = vadd.f32 %v609_v43, %v608_v10 }
 0x13b   :  { %v590_v56 = vrot.slane %v589_v50, 1  ;;  %vm429_vm15 = vcmp.ge.f32.partialorder %v246_v8, 0.0 }
 0x13c   :  { %v611_v21 = vrot.slane %v610_v33, 1 }
 0x13d   :  { %v591_v57 = vadd.f32 %v590_v56, %v589_v50 }
 0x13e   :  { %v612_v55 = vadd.f32 %v611_v21, %v610_v33  ;;  %v2675_v21 = vpop.f32.mrf.mxu2 }
 0x13f   :  { %v2620_v16 = vmul.f32 %v2615_v52, %v591_v57 }
 0x140   :  { %v2653_v14 = vmul.f32 %v2615_v52, %v612_v55 }
 0x141   :  { %v2628_v42 = vsub.f32 %v2436_v19, %v2620_v16  ;;  %v2632_v3 = vsub.f32 %v2440_v22, %v2620_v16  ;;  %v2636_v43 = vsub.f32 %v2464_v45, %v2620_v16  ;;  %v2640_v48 = vsub.f32 %v2480_v1, %v2620_v16 }
 0x142   :  { %v2644_v58 = vsub.f32 %v2496_v27, %v2620_v16  ;;  %v237_v19 = vadd.f32 %v2518_v6, %v2426_v2  ;;  %v240_v1 = vadd.f32 %v2534_v38, %v2426_v2  ;;  %v2665_v50 = vsub.f32 %v2438_v20, %v2653_v14 }
 0x143   :  { %4631 = vst [vmem:[#allocation27_spill] sm:$0xff] %v2640_v48  ;;  %v730_v22 = vmul.f32 %v2628_v42, %v2628_v42  ;;  %v732_v45 = vmul.f32 %v2632_v3, %v2632_v3  ;;  %v734_v6 = vmul.f32 %v2636_v43, %v2636_v43  ;;  %v2669_v33 = vsub.f32 %v2444_v25, %v2653_v14 }
 0x144   :  { %4632 = vst [vmem:[#allocation28_spill] sm:$0xff] %v2644_v58  ;;  %vm423_vm12 = vcmp.ge.f32.partialorder %v237_v19, 0.0  ;;  %v487_v27 = vmul.f32 0.01, %v237_v19  ;;  %v2673_v38 = vsub.f32 %v2467_v47, %v2653_v14  ;;  %vm425_vm13 = vcmp.ge.f32.partialorder %v240_v1, 0.0 }
 0x145   :  { %v794_v10 = vadd.f32 %v732_v45, %v730_v22  ;;  %v489_v56 = vmul.f32 0.01, %v240_v1  ;;  %v2679_v57 = vsub.f32 %v2483_v5, %v2653_v14  ;;  %v2683_v20 = vsub.f32 %v2499_v29, %v2653_v14 }
 0x146   :  { %v243_v25 = vadd.f32 %v2563_v35, %v2426_v2  ;;  %v2689_v62 = vsub.f32 %v2525_v18, %v2620_v16  ;;  %v736_v47 = vmul.f32 %v2640_v48, %v2640_v48  ;;  %v2696_v5 = vsel %vm423_vm12, %v237_v19, %v487_v27 }
 0x147   :  { %v795_v55 = vadd.f32 %v794_v10, %v734_v6  ;;  %v2700_v29 = vsub.f32 %v2532_v37, %v2620_v16  ;;  %v738_v35 = vmul.f32 %v2644_v58, %v2644_v58  ;;  %v617_v18 = vadd.f32 %v2507_v44, %v2657_v31 }
 0x148   :  { %4633 = vst [vmem:[#allocation29_spill] sm:$0xff] %v2689_v62  ;;  %v2706_v45 = vsel %vm425_vm13, %v240_v1, %v489_v56  ;;  %v731_v6 = vmul.f32 %v2665_v50, %v2665_v50  ;;  %v733_v0 = vmul.f32 %v2669_v33, %v2669_v33  ;;  %v491_v19 = vmul.f32 0.01, %v243_v25 }
 0x149   :  { %4634 = vst [vmem:[#allocation30_spill] sm:$0xff] %v2700_v29  ;;  %v796_v22 = vadd.f32 %v795_v55, %v736_v47  ;;  %v2714_v37 = vsub.f32 %v2539_v51, %v2620_v16  ;;  %v740_v27 = vmul.f32 %v2689_v62, %v2689_v62  ;;  %v618_v47 = vadd.f32 %v617_v18, %v2696_v5 }
 0x14a   :  { %vm427_vm14 = vcmp.ge.f32.partialorder %v243_v25, 0.0  ;;  %v493_v44 = vmul.f32 0.01, %v246_v8  ;;  %v2721_v1 = vsub.f32 %v2546_v4, %v2620_v16  ;;  %v742_v56 = vmul.f32 %v2700_v29, %v2700_v29 }
 0x14b   :  { %v797_v10 = vadd.f32 %v796_v22, %v738_v35  ;;  %v619_v51 = vadd.f32 %v618_v47, %v2706_v45  ;;  %v735_v58 = vmul.f32 %v2673_v38, %v2673_v38  ;;  %v815_v62 = vadd.f32 %v733_v0, %v731_v6  ;;  %v2728_v35 = vpop.f32.mrf.mxu3 }
 0x14c   :  { %v2730_v22 = vsel %vm427_vm14, %v243_v25, %v491_v19  ;;  %v2734_v18 = vsub.f32 %v2554_v11, %v2620_v16  ;;  %v744_v4 = vmul.f32 %v2714_v37, %v2714_v37  ;;  %v2738_v29 = vsel %vm429_vm15, %v246_v8, %v493_v44 }
 0x14d   :  { %v798_v55 = vadd.f32 %v797_v10, %v740_v27  ;;  %v257_v27 = vpop.f32.mrf.mxu2  ;;  %v2742_v10 = vsub.f32 %v2528_v26, %v2653_v14  ;;  %v737_v6 = vmul.f32 %v2679_v57, %v2679_v57  ;;  %v816_v25 = vadd.f32 %v815_v62, %v735_v58 }
 0x14e   :  { %v249_v0 = vadd.f32 %v2613_v36, %v2426_v2  ;;  %v2750_v11 = vsub.f32 %v2569_v28, %v2620_v16  ;;  %v746_v8 = vmul.f32 %v2721_v1, %v2721_v1  ;;  %v620_v47 = vadd.f32 %v619_v51, %v2730_v22 }
 0x14f   :  { %v799_v48 = vadd.f32 %v798_v55, %v742_v56  ;;  %v2757_v26 = vsub.f32 %v2537_v49, %v2653_v14  ;;  %v739_v58 = vmul.f32 %v2683_v20, %v2683_v20  ;;  %v817_v62 = vadd.f32 %v816_v25, %v737_v6 }
 0x150   :  { %v252_v36 = vadd.f32 %v2624_v24, %v2426_v2  ;;  %v2765_v28 = vsub.f32 %v2577_v7, %v2620_v16  ;;  %v621_v56 = vadd.f32 %v620_v47, %v2738_v29  ;;  %v2772_v49 = vsub.f32 %v2543_v54, %v2653_v14 }
 0x151   :  { %v800_v19 = vadd.f32 %v799_v48, %v744_v4  ;;  %v748_v48 = vmul.f32 %v2734_v18, %v2734_v18  ;;  %v741_v55 = vmul.f32 %v2742_v10, %v2742_v10  ;;  %v818_v51 = vadd.f32 %v817_v62, %v739_v58 }
 0x152   :  { %4635 = vst [vmem:[#allocation31_spill] sm:$0xff] %v2765_v28  ;;  %vm431_vm0 = vcmp.ge.f32.partialorder %v249_v0, 0.0  ;;  %v2778_v24 = vsub.f32 %v2583_v60, %v2620_v16  ;;  %v750_v7 = vmul.f32 %v2750_v11, %v2750_v11  ;;  %v495_v6 = vmul.f32 0.01, %v249_v0 }
 0x153   :  { %v801_v44 = vadd.f32 %v800_v19, %v746_v8  ;;  %v2784_v25 = vsub.f32 %v2550_v9, %v2653_v14  ;;  %v743_v54 = vmul.f32 %v2757_v26, %v2757_v26  ;;  %v819_v8 = vadd.f32 %v818_v51, %v741_v55 }
 0x154   :  { %vm433_vm1 = vcmp.ge.f32.partialorder %v252_v36, 0.0  ;;  %v2790_v19 = vsub.f32 %v2589_v34, %v2620_v16  ;;  %v752_v60 = vmul.f32 %v2765_v28, %v2765_v28  ;;  %v497_v58 = vmul.f32 0.01, %v252_v36 }
 0x155   :  { %v802_v4 = vadd.f32 %v801_v44, %v748_v48  ;;  %v2796_v62 = vsub.f32 %v2565_v40, %v2653_v14  ;;  %v745_v9 = vmul.f32 %v2772_v49, %v2772_v49  ;;  %v820_v48 = vadd.f32 %v819_v8, %v743_v54  ;;  %v2800_v44 = vpop.f32.mrf.mxu3 }
 0x156   :  { %v255_v55 = vadd.f32 %v2675_v21, %v2426_v2  ;;  %v2806_v34 = vsub.f32 %v2597_v23, %v2620_v16  ;;  %v754_v51 = vmul.f32 %v2778_v24, %v2778_v24  ;;  %v2811_v40 = vsel %vm431_vm0, %v249_v0, %v495_v6 }
 0x157   :  { %v803_v47 = vadd.f32 %v802_v4, %v750_v7  ;;  %4637 = vst [vmem:[#allocation33_spill] sm:$0xff] %v2811_v40  ;;  %v260_v4 = vpop.f32.mrf.mxu2  ;;  %v2815_v54 = vsub.f32 %v2572_v53, %v2653_v14  ;;  %v747_v8 = vmul.f32 %v2784_v25, %v2784_v25  ;;  %v821_v21 = vadd.f32 %v820_v48, %v745_v9 }
 0x158   :  { %4636 = vst [vmem:[#allocation32_spill] sm:$0xff] %v2806_v34  ;;  %v258_v28 = vadd.f32 %v257_v27, %v2426_v2  ;;  %v2822_v23 = vsub.f32 %v2607_v13, %v2620_v16  ;;  %v2827_v6 = vsel %vm433_vm1, %v252_v36, %v497_v58  ;;  %v2831_v53 = vsub.f32 %v2580_v30, %v2653_v14 }
 0x159   :  { %v804_v7 = vadd.f32 %v803_v47, %v752_v60  ;;  %v756_v60 = vmul.f32 %v2790_v19, %v2790_v19  ;;  %4639 = vst [vmem:[#allocation35_spill] sm:$0xff] %v2827_v6  ;;  %v749_v47 = vmul.f32 %v2796_v62, %v2796_v62  ;;  %v822_v9 = vadd.f32 %v821_v21, %v747_v8 }
 0x15a   :  { %4638 = vst [vmem:[#allocation34_spill] sm:$0xff] %v2822_v23  ;;  %v499_v27 = vmul.f32 0.01, %v255_v55  ;;  %v261_v48 = vadd.f32 %v260_v4, %v2426_v2  ;;  %v758_v13 = vmul.f32 %v2806_v34, %v2806_v34  ;;  %vm435_vm2 = vcmp.ge.f32.partialorder %v255_v55, 0.0 }
 0x15b   :  { %v805_v0 = vadd.f32 %v804_v7, %v754_v51  ;;  %v2840_v36 = vsub.f32 %v2586_v46, %v2653_v14  ;;  %v751_v30 = vmul.f32 %v2815_v54, %v2815_v54  ;;  %v823_v58 = vadd.f32 %v822_v9, %v749_v47 }
 0x15c   :  { %v622_v51 = vadd.f32 %v621_v56, %v2811_v40  ;;  %v501_v7 = vmul.f32 0.01, %v258_v28  ;;  %v760_v8 = vmul.f32 %v2822_v23, %v2822_v23  ;;  %vm437_vm3 = vcmp.ge.f32.partialorder %v258_v28, 0.0 }
 0x15d   :  { %v806_v16 = vadd.f32 %v805_v0, %v756_v60  ;;  %v2849_v21 = vsub.f32 %v2592_v63, %v2653_v14  ;;  %v753_v46 = vmul.f32 %v2831_v53, %v2831_v53  ;;  %v824_v60 = vadd.f32 %v823_v58, %v751_v30 }
 0x15e   :  { %v623_v0 = vadd.f32 %v622_v51, %v2827_v6  ;;  %v2854_v34 = vsel %vm435_vm2, %v255_v55, %v499_v27  ;;  %v503_v47 = vmul.f32 0.01, %v261_v48  ;;  %vm439_vm4 = vcmp.ge.f32.partialorder %v261_v48, 0.0 }
 0x15f   :  { %v807_v4 = vadd.f32 %v806_v16, %v758_v13  ;;  %4640 = vst [vmem:[#allocation36_spill] sm:$0xff] %v2854_v34  ;;  %v2858_v9 = vsub.f32 %v2601_v41, %v2653_v14  ;;  %v755_v13 = vmul.f32 %v2840_v36, %v2840_v36  ;;  %v825_v63 = vadd.f32 %v824_v60, %v753_v46  ;;  %v2862_v16 = vpop.f32.mrf.mxu3  ;;  %v263_v51 = vpop.f32.mrf.mxu2 }
 0x160   :  { %v2864_v40 = vsel %vm437_vm3, %v258_v28, %v501_v7  ;;  %v624_v58 = vadd.f32 %v623_v0, %v2854_v34  ;;  %v2869_v55 = vsub.f32 %v2610_v15, %v2653_v14  ;;  %v757_v27 = vmul.f32 %v2849_v21, %v2849_v21 }
 0x161   :  { %v808_v56 = vadd.f32 %v807_v4, %v760_v8  ;;  %4641 = vst [vmem:[#allocation37_spill] sm:$0xff] %v2864_v40  ;;  %v826_v41 = vadd.f32 %v825_v63, %v755_v13  ;;  %v2873_v8 = vsel %vm439_vm4, %v261_v48, %v503_v47  ;;  %v264_v46 = vadd.f32 %v263_v51, %v2426_v2 }
 0x162   :  { %4642 = vst [vmem:[#allocation38_spill] sm:$0xff] %v2873_v8  ;;  %v625_v28 = vadd.f32 %v624_v58, %v2864_v40  ;;  %v759_v7 = vmul.f32 %v2858_v9, %v2858_v9  ;;  %v761_v14 = vmul.f32 %v2869_v55, %v2869_v55  ;;  %vm4621_vm14 = vcmask 1040384  }
 0x163   :  { %v809_v30 = vrot.slane %v808_v56, 4  ;;  %v827_v60 = vadd.f32 %v826_v41, %v757_v27  ;;  %v505_v34 = vmul.f32 0.01, %v264_v46  ;;  %vm441_vm5 = vcmp.ge.f32.partialorder %v264_v46, 0.0 }
 0x164   :  { %v626_v15 = vadd.f32 %v625_v28, %v2873_v8 }
 0x165   :  { %v810_v4 = vadd.f32 %v809_v30, %v808_v56  ;;  %v828_v13 = vadd.f32 %v827_v60, %v759_v7  ;;  %v2882_v47 = vsel %vm441_vm5, %v264_v46, %v505_v34 }
 0x166   :  { %4643 = vst [vmem:[#allocation39_spill] sm:$0xff] %v2882_v47  ;;  %v627_v2 = vadd.f32 %v626_v15, %v2882_v47 }
 0x167   :  { %v811_v0 = vrot.slane %v810_v4, 2  ;;  %v829_v56 = vadd.f32 %v828_v13, %v761_v14  ;;  %v2885_v51 = vpop.f32.mrf.mxu3 }
 0x168   :  { %v628_v58 = vrot.slane %v627_v2, 4 }
 0x169   :  { %v812_v48 = vadd.f32 %v811_v0, %v810_v4  ;;  %v830_v30 = vrot.slane %v829_v56, 4 }
 0x16a   :  { %v629_v40 = vadd.f32 %v628_v58, %v627_v2  ;;  %v4649_v58 = vld [vmem:[#allocation23_spill] sm:$0xff] }
 0x16b   :  { %v813_v63 = vrot.slane %v812_v48, 1  ;;  %v831_v41 = vadd.f32 %v830_v30, %v829_v56 }
 0x16c   :  { %v630_v6 = vrot.slane %v629_v40, 2 }
 0x16d   :  { %v814_v27 = vadd.f32 %v813_v63, %v812_v48  ;;  %v832_v8 = vrot.slane %v831_v41, 2 }
 0x16e   :  { %v631_v4 = vadd.f32 %v630_v6, %v629_v40 }
 0x16f   :  { %v878_v28 = vmul.f32 %v814_v27, %v2615_v52  ;;  %v833_v60 = vadd.f32 %v832_v8, %v831_v41  ;;  %v2888_v14 = vpop.f32.mrf.mxu3  ;;  %v4651_v41 = vld [vmem:[#allocation18_spill] sm:$0xff] }
 0x170   :  { %v632_v46 = vrot.slane %v631_v4, 1 }
 0x171   :  { %v883_v7 = vadd.f32 1e-05, %v878_v28  ;;  %v834_v34 = vrot.slane %v833_v60, 1 }
 0x172   :  { %v633_v15 = vadd.f32 %v632_v46, %v631_v4  ;;  %v350_v4 = vadd.f32 %v2661_v12, %v4651_v41 }
 0x173   :  { %2074 = vrsqrt.f32 %v883_v7  ;;  %v835_v0 = vadd.f32 %v834_v34, %v833_v60  ;;  %vm893_vm13 = vweird.f32 %v883_v7 }
 0x174   :  { %v2892_v48 = vmul.f32 %v2615_v52, %v633_v15  ;;  %vm424_vm7 = vcmp.ge.f32.partialorder %v350_v4, 0.0 }
 0x175   :  { %v879_v13 = vmul.f32 %v835_v0, %v2615_v52 }
 0x176   :  { %4644 = vst [vmem:[#allocation40_spill] sm:$0xff] %v2892_v48  ;;  %v2896_v30 = vsub.f32 %v2450_v32, %v2892_v48  ;;  %v2900_v40 = vsub.f32 %v2456_v39, %v2892_v48  ;;  %v2904_v6 = vsub.f32 %v2474_v59, %v2892_v48  ;;  %v2908_v8 = vsub.f32 %v2490_v17, %v2892_v48 }
 0x177   :  { %v884_v63 = vadd.f32 1e-05, %v879_v13  ;;  %v2912_v27 = vsub.f32 %v4649_v58, %v2892_v48  ;;  %v347_v32 = vadd.f32 %v2617_v61, %v4651_v41  ;;  %v367_v60 = vpop.f32.mrf.mxu3  ;;  %v488_v13 = vmul.f32 0.01, %v350_v4 }
 0x178   :  { %4645 = vst [vmem:[#allocation41_spill] sm:$0xff] %v2896_v30  ;;  %v762_v17 = vmul.f32 %v2896_v30, %v2896_v30  ;;  %v764_v0 = vmul.f32 %v2900_v40, %v2900_v40  ;;  %v353_v61 = vadd.f32 %v2728_v35, %v4651_v41  ;;  %v4653_v30 = vld [vmem:[#allocation25_spill] sm:$0xff]  ;;  %v766_v35 = vmul.f32 %v2904_v6, %v2904_v6 }
 0x179   :  { %v2075_v56 = vpop.eup %2074  ;;  %4646 = vst [vmem:[#allocation42_spill] sm:$0xff] %v2900_v40  ;;  %2076 = vrsqrt.f32 %v884_v63  ;;  %v486_v59 = vmul.f32 0.01, %v347_v32  ;;  %vm422_vm6 = vcmp.ge.f32.partialorder %v347_v32, 0.0  ;;  %v2930_v40 = vsel %vm424_vm7, %v350_v4, %v488_v13 }
 0x17a   :  { %v888_v2 = vmul.f32 %v2075_v56, %v883_v7  ;;  %4647 = vst [vmem:[#allocation43_spill] sm:$0xff] %v2904_v6  ;;  %v836_v47 = vadd.f32 %v764_v0, %v762_v17  ;;  %vm426_vm9 = vcmp.ge.f32.partialorder %v353_v61, 0.0  ;;  %vm894_vm10 = vweird.f32 %v2075_v56 }
 0x17b   :  { %4648 = vst [vmem:[#allocation44_spill] sm:$0xff] %v2908_v8  ;;  %vm903_vm11 = vweird.f32 %v884_v63  ;;  %vm895_vm0 = vmor %vm893_vm13, %vm894_vm10 }
 0x17c   :  { %4650 = vst [vmem:[#allocation23_spill] sm:$0xff] %v2912_v27  ;;  %v889_v28 = vmul.f32 %v2075_v56, %v888_v2  ;;  %v2924_v2 = vsel %vm422_vm6, %v347_v32, %v486_v59  ;;  %v837_v17 = vadd.f32 %v836_v47, %v766_v35  ;;  %v365_v35 = vadd.f32 %v2888_v14, %v4651_v41 }
 0x17d   :  { %4652 = vst [vmem:[#allocation18_spill] sm:$0xff] %v2924_v2  ;;  %v638_v23 = vadd.f32 %v4653_v30, %v2924_v2  ;;  %v362_v30 = vadd.f32 %v2885_v51, %v4651_v41 }
 0x17e   :  { %v890_v34 = vmul.f32 0.5, %v889_v28  ;;  %v356_v28 = vadd.f32 %v2800_v44, %v4651_v41  ;;  %4654 = vst [vmem:[#allocation25_spill] sm:$0xff] %v2930_v40  ;;  %v359_v44 = vadd.f32 %v2862_v16, %v4651_v41  ;;  %v882_v16 = vld [vmem:[%s4567_s3] sm:$0x3]  ;;  %vm434_vm3 = vcmp.ge.f32.partialorder %v365_v35, 0.0 }
 0x17f   :  { %v2077_v39 = vpop.eup %2076  ;;  %v370_v32 = vpop.f32.mrf.mxu3  ;;  %vm432_vm2 = vcmp.ge.f32.partialorder %v362_v30, 0.0  ;;  %v498_v14 = vmul.f32 0.01, %v365_v35 }
 0x180   :  { %v898_v46 = vmul.f32 %v2077_v39, %v884_v63  ;;  %v891_v58 = vsub.f32 1.5, %v890_v34  ;;  %vm904_vm8 = vweird.f32 %v2077_v39  ;;  %vm428_vm15 = vcmp.ge.f32.partialorder %v356_v28, 0.0 }
 0x181   :  { %vm905_vm12 = vmor %vm903_vm11, %vm904_vm8  ;;  %v639_v63 = vadd.f32 %v638_v23, %v2930_v40  ;;  %v494_v51 = vmul.f32 0.01, %v359_v44  ;;  %vm430_vm1 = vcmp.ge.f32.partialorder %v359_v44, 0.0 }
 0x182   :  { %v899_v15 = vmul.f32 %v2077_v39, %v898_v46  ;;  %v892_v59 = vmul.f32 %v2075_v56, %v891_v58  ;;  %v490_v46 = vmul.f32 0.01, %v353_v61 }
 0x184   :  { %v900_v12 = vmul.f32 0.5, %v899_v15  ;;  %v492_v15 = vmul.f32 0.01, %v356_v28  ;;  %v896_v13 = vsel %vm895_vm0, %v2075_v56, %v892_v59  ;;  %v2945_v47 = vsel %vm426_vm9, %v353_v61, %v490_v46 }
 0x185   :  { %4655 = vst [vmem:[#allocation45_spill] sm:$0xff] %v2945_v47  ;;  %v2954_v56 = vsub.f32 %v2657_v31, %v2892_v48  ;;  %v770_v61 = vmul.f32 %v2912_v27, %v2912_v27  ;;  %v640_v59 = vadd.f32 %v639_v63, %v2945_v47  ;;  %v371_v31 = vadd.f32 %v370_v32, %v4651_v41 }
 0x186   :  { %v901_v52 = vsub.f32 1.5, %v900_v12  ;;  %v2948_v58 = vsel %vm428_vm15, %v356_v28, %v492_v15  ;;  %v496_v12 = vmul.f32 0.01, %v362_v30  ;;  %v368_v28 = vadd.f32 %v367_v60, %v4651_v41 }
 0x187   :  { %4656 = vst [vmem:[#allocation46_spill] sm:$0xff] %v2948_v58  ;;  %v641_v15 = vadd.f32 %v640_v59, %v2948_v58  ;;  %v502_v32 = vmul.f32 0.01, %v371_v31  ;;  %vm438_vm5 = vcmp.ge.f32.partialorder %v371_v31, 0.0 }
 0x188   :  { %v902_v34 = vmul.f32 %v2077_v39, %v901_v52  ;;  %v768_v52 = vmul.f32 %v2908_v8, %v2908_v8  ;;  %4657 = vst [vmem:[#allocation47_spill] sm:$0xff] %v2954_v56  ;;  %v500_v63 = vmul.f32 0.01, %v368_v28  ;;  %vm436_vm4 = vcmp.ge.f32.partialorder %v368_v28, 0.0 }
 0x18a   :  { %v906_v4 = vsel %vm905_vm12, %v2077_v39, %v902_v34  ;;  %v838_v39 = vadd.f32 %v837_v17, %v768_v52  ;;  %v2959_v34 = vsel %vm430_vm1, %v359_v44, %v494_v51  ;;  %v2963_v17 = vsel %vm432_vm2, %v362_v30, %v496_v12 }
 0x18b   :  { %v931_v0 = vrot.slane %v906_v4, 7  ;;  %4658 = vst [vmem:[#allocation48_spill] sm:$0xff] %v2959_v34  ;;  %v373_v4 = vpop.f32.mrf.mxu3  ;;  %v2970_v52 = vsub.f32 %v2696_v5, %v2892_v48  ;;  %v772_v44 = vmul.f32 %v2954_v56, %v2954_v56  ;;  %v642_v60 = vadd.f32 %v641_v15, %v2959_v34  ;;  %v1014_v5 = vld [vmem:[#allocation8] sm:$0x3] }
 0x18c   :  { %v839_v46 = vadd.f32 %v838_v39, %v770_v61  ;;  %4659 = vst [vmem:[#allocation49_spill] sm:$0xff] %v2963_v17  ;;  %v374_v30 = vadd.f32 %v373_v4, %v4651_v41  ;;  %v2977_v51 = vsel %vm434_vm3, %v365_v35, %v498_v14  ;;  %v2985_v39 = vsub.f32 %v2706_v45, %v2892_v48 }
 0x18d   :  { %v934_v7 = vsel %vm4621_vm14, %v896_v13, %v931_v0  ;;  %4660 = vst [vmem:[#allocation50_spill] sm:$0xff] %v2970_v52  ;;  %v774_v12 = vmul.f32 %v2970_v52, %v2970_v52  ;;  %v2994_v59 = vsel %vm436_vm4, %v368_v28, %v500_v63  ;;  %v3000_v14 = vperm.slane %v1014_v5, 1 }
 0x18e   :  { %v938_v23 = vmul.f32 %v934_v7, %v882_v16  ;;  %v840_v13 = vadd.f32 %v839_v46, %v772_v44  ;;  %v643_v16 = vadd.f32 %v642_v60, %v2963_v17  ;;  %4661 = vst [vmem:[#allocation51_spill] sm:$0xff] %v2977_v51  ;;  %v504_v46 = vmul.f32 0.01, %v374_v30 }
 0x18f   :  { %4662 = vst [vmem:[#allocation52_spill] sm:$0xff] %v2985_v39  ;;  %vm440_vm6 = vcmp.ge.f32.partialorder %v374_v30, 0.0  ;;  %v3002_v4 = vsel %vm438_vm5, %v371_v31, %v502_v32  ;;  %v3008_v28 = vsub.f32 %v2730_v22, %v2892_v48  ;;  %v776_v44 = vmul.f32 %v2985_v39, %v2985_v39 }
 0x190   :  { %v2966_v0 = vperm.slane %v938_v23, 1  ;;  %v644_v35 = vadd.f32 %v643_v16, %v2977_v51  ;;  %4663 = vst [vmem:[#allocation53_spill] sm:$0xff] %v2994_v59  ;;  %v3024_v32 = vperm.slane %v938_v23, 0 }
 0x191   :  { %4664 = vst [vmem:[#allocation54_spill] sm:$0xff] %v3000_v14 }
 0x192   :  { %v2981_v7 = vmul.f32 %v2966_v0, %v2831_v53  ;;  %v2991_v61 = vmul.f32 %v2966_v0, %v2840_v36  ;;  %v841_v53 = vadd.f32 %v840_v13, %v774_v12  ;;  %v951_v15 = vmul.f32 %v2966_v0, %v2665_v50  ;;  %4665 = vst [vmem:[#allocation55_spill] sm:$0xff] %v3002_v4 }
 0x193   :  { %v953_v45 = vmul.f32 %v2966_v0, %v2669_v33  ;;  %v955_v36 = vmul.f32 %v2966_v0, %v2673_v38  ;;  %4666 = vst [vmem:[#allocation56_spill] sm:$0xff] %v3008_v28  ;;  %v645_v60 = vadd.f32 %v644_v35, %v2994_v59  ;;  %v957_v50 = vmul.f32 %v2966_v0, %v2679_v57 }
 0x194   :  { %v3015_v33 = vsel %vm440_vm6, %v374_v30, %v504_v46  ;;  %v959_v31 = vmul.f32 %v2966_v0, %v2683_v20  ;;  %v842_v63 = vadd.f32 %v841_v53, %v776_v44  ;;  %v961_v22 = vmul.f32 %v2966_v0, %v2742_v10 }
 0x195   :  { %4667 = vst [vmem:[#allocation57_spill] sm:$0xff] %v3015_v33  ;;  %v646_v38 = vadd.f32 %v645_v60, %v3002_v4  ;;  %v1021_v13 = vadd.f32 %v3000_v14, %v951_v15  ;;  %v1023_v16 = vadd.f32 %v3000_v14, %v953_v45  ;;  %v963_v57 = vmul.f32 %v2966_v0, %v2757_v26 }
 0x196   :  { %v1025_v30 = vadd.f32 %v3000_v14, %v955_v36  ;;  %v778_v20 = vmul.f32 %v3008_v28, %v3008_v28  ;;  %v965_v10 = vmul.f32 %v2966_v0, %v2772_v49  ;;  %v3036_v35 = vperm.slane %v1014_v5, 0 }
 0x197   :  { %v3032_v12 = vadd.f32 %v646_v38, %v3015_v33  ;;  %v1027_v46 = vadd.f32 %v3000_v14, %v957_v50  ;;  %v967_v23 = vmul.f32 %v2966_v0, %v2784_v25  ;;  %v1029_v26 = vadd.f32 %v3000_v14, %v959_v31  ;;  %v4672_v38 = vld [vmem:[#allocation27_spill] sm:$0xff] }
 0x198   :  { %4669 = vst [vmem:[#allocation59_spill] sm:$0xff] %v3036_v35  ;;  %v3044_v53 = vsub.f32 %v2738_v29, %v2892_v48  ;;  %v3046_v15 = vadd.f32 %v842_v63, %v778_v20  ;;  %v969_v45 = vmul.f32 %v2966_v0, %v2796_v62  ;;  %v1031_v49 = vadd.f32 %v3000_v14, %v961_v22  ;;  %v4673_v20 = vld [vmem:[#allocation28_spill] sm:$0xff] }
 0x199   :  { %4668 = vst [vmem:[#allocation58_spill] sm:$0xff] %v3032_v12  ;;  %v1997_v5 = vmul.f32 -1.442695, %v1021_v13  ;;  %v1998_v36 = vmul.f32 -1.442695, %v1023_v16  ;;  %v950_v44 = vmul.f32 %v3024_v32, %v2628_v42  ;;  %v971_v25 = vmul.f32 %v2966_v0, %v2815_v54 }
 0x19a   :  { %4670 = vst [vmem:[#allocation60_spill] sm:$0xff] %v3044_v53  ;;  %v1033_v60 = vadd.f32 %v3000_v14, %v963_v57  ;;  %v1999_v50 = vmul.f32 -1.442695, %v1025_v30  ;;  %v952_v29 = vmul.f32 %v3024_v32, %v2632_v3  ;;  %v954_v31 = vmul.f32 %v3024_v32, %v2636_v43 }
 0x19b   :  { %4671 = vst [vmem:[#allocation61_spill] sm:$0xff] %v3046_v15  ;;  %v1035_v62 = vadd.f32 %v3000_v14, %v965_v10  ;;  %v2000_v63 = vmul.f32 -1.442695, %v1027_v46  ;;  %v956_v22 = vmul.f32 %v3024_v32, %v4672_v38  ;;  %v1037_v42 = vadd.f32 %v3000_v14, %v967_v23 }
 0x19c   :  { %2078 = vpow2.f32 %v1997_v5  ;;  %v2001_v13 = vmul.f32 -1.442695, %v1029_v26  ;;  %v977_v54 = vmul.f32 %v2966_v0, %v2849_v21  ;;  %v1039_v16 = vadd.f32 %v3000_v14, %v969_v45  ;;  %v4674_v21 = vld [vmem:[#allocation29_spill] sm:$0xff] }
 0x19d   :  { %2080 = vpow2.f32 %v1998_v36  ;;  %v2002_v3 = vmul.f32 -1.442695, %v1031_v49  ;;  %v979_v43 = vmul.f32 %v2966_v0, %v2858_v9  ;;  %v1041_v57 = vadd.f32 %v3000_v14, %v971_v25  ;;  %v4675_v49 = vld [vmem:[#allocation30_spill] sm:$0xff] }
 0x19e   :  { %2082 = vpow2.f32 %v1999_v50  ;;  %v2003_v30 = vmul.f32 -1.442695, %v1033_v60  ;;  %v958_v10 = vmul.f32 %v3024_v32, %v4673_v20  ;;  %v1043_v46 = vadd.f32 %v3000_v14, %v2981_v7  ;;  %v4677_v20 = vld [vmem:[#allocation32_spill] sm:$0xff] }
 0x19f   :  { %2084 = vpow2.f32 %v2000_v63  ;;  %v2004_v23 = vmul.f32 -1.442695, %v1035_v62  ;;  %v960_v26 = vmul.f32 %v3024_v32, %v4674_v21  ;;  %v1045_v45 = vadd.f32 %v3000_v14, %v2991_v61  ;;  %v376_v21 = vpop.f32.mrf.mxu3 }
 0x1a0   :  { %2086 = vpow2.f32 %v2001_v13  ;;  %v2005_v9 = vmul.f32 -1.442695, %v1037_v42  ;;  %v962_v5 = vmul.f32 %v3024_v32, %v4675_v49  ;;  %v1047_v36 = vadd.f32 %v3000_v14, %v977_v54 }
 0x1a1   :  { %2088 = vpow2.f32 %v2002_v3  ;;  %v2006_v25 = vmul.f32 -1.442695, %v1039_v16  ;;  %v964_v7 = vmul.f32 %v3024_v32, %v2714_v37  ;;  %v1049_v50 = vadd.f32 %v3000_v14, %v979_v43  ;;  %v4676_v16 = vld [vmem:[#allocation31_spill] sm:$0xff] }
 0x1a2   :  { %v2079_v60 = vpop.eup %2078  ;;  %2090 = vpow2.f32 %v2003_v30  ;;  %v2007_v62 = vmul.f32 -1.442695, %v1041_v57  ;;  %v966_v61 = vmul.f32 %v3024_v32, %v2721_v1  ;;  %v968_v38 = vmul.f32 %v3024_v32, %v2734_v18 }
 0x1a3   :  { %v2081_v63 = vpop.eup %2080  ;;  %2092 = vpow2.f32 %v2004_v23  ;;  %v2008_v42 = vmul.f32 -1.442695, %v1043_v46  ;;  %v970_v54 = vmul.f32 %v3024_v32, %v2750_v11  ;;  %v972_v37 = vmul.f32 %v3024_v32, %v4676_v16 }
 0x1a4   :  { %v2083_v13 = vpop.eup %2082  ;;  %2094 = vpow2.f32 %v2005_v9  ;;  %v2009_v3 = vmul.f32 -1.442695, %v1045_v45  ;;  %v974_v57 = vmul.f32 %v3024_v32, %v2778_v24  ;;  %v976_v1 = vmul.f32 %v3024_v32, %v2790_v19  ;;  %v4678_v9 = vld [vmem:[#allocation34_spill] sm:$0xff] }
 0x1a5   :  { %v2085_v43 = vpop.eup %2084  ;;  %2096 = vpow2.f32 %v2006_v25  ;;  %v2010_v18 = vmul.f32 -1.442695, %v1047_v36  ;;  %v978_v46 = vmul.f32 %v3024_v32, %v4677_v20  ;;  %v981_v11 = vmul.f32 %v2966_v0, %v2869_v55 }
 0x1a6   :  { %v2087_v30 = vpop.eup %2086  ;;  %2098 = vpow2.f32 %v2007_v62  ;;  %v2011_v23 = vmul.f32 -1.442695, %v1049_v50  ;;  %v980_v49 = vmul.f32 %v3024_v32, %v4678_v9  ;;  %v3103_v24 = vadd.f32 %v3036_v35, %v950_v44 }
 0x1a7   :  { %v2089_v45 = vpop.eup %2088  ;;  %2100 = vpow2.f32 %v2008_v42  ;;  %v3105_v19 = vadd.f32 1.0, %v2079_v60  ;;  %v3108_v25 = vadd.f32 %v3036_v35, %v952_v29  ;;  %v3111_v16 = vadd.f32 %v3036_v35, %v954_v31 }
 0x1a8   :  { %v2091_v36 = vpop.eup %2090  ;;  %2102 = vpow2.f32 %v2009_v3  ;;  %v3113_v55 = vadd.f32 1.0, %v2081_v63  ;;  %v3116_v50 = vadd.f32 %v3036_v35, %v956_v22  ;;  %v3118_v32 = vadd.f32 1.0, %v2083_v13 }
 0x1a9   :  { %v2093_v0 = vpop.eup %2092  ;;  %2104 = vpow2.f32 %v2010_v18  ;;  %v377_v44 = vadd.f32 %v376_v21, %v4651_v41  ;;  %v3122_v62 = vadd.f32 %v3036_v35, %v958_v10  ;;  %v1051_v29 = vadd.f32 %v3000_v14, %v981_v11 }
 0x1aa   :  { %v2095_v60 = vpop.eup %2094  ;;  %2106 = vpow2.f32 %v2011_v23  ;;  %v3125_v31 = vadd.f32 1.0, %v2085_v43  ;;  %v3128_v42 = vadd.f32 %v3036_v35, %v960_v26  ;;  %v3131_v22 = vadd.f32 %v3036_v35, %v962_v5 }
 0x1ab   :  { %v2097_v63 = vpop.eup %2096  ;;  %v3133_v13 = vadd.f32 1.0, %v2087_v30  ;;  %2108 = vrcp.f32 %v3105_v19  ;;  %v3137_v10 = vadd.f32 %v3036_v35, %v964_v7  ;;  %v3140_v3 = vadd.f32 %v3036_v35, %v966_v61 }
 0x1ac   :  { %v2099_v41 = vpop.eup %2098  ;;  %v3142_v43 = vadd.f32 1.0, %v2089_v45  ;;  %2110 = vrcp.f32 %v3113_v55  ;;  %v3146_v18 = vadd.f32 %v3036_v35, %v968_v38  ;;  %v3148_v5 = vadd.f32 1.0, %v2091_v36 }
 0x1ad   :  { %v2101_v26 = vpop.eup %2100  ;;  %2112 = vrcp.f32 %v3118_v32  ;;  %v506_v30 = vmul.f32 0.01, %v377_v44  ;;  %v2012_v11 = vmul.f32 -1.442695, %v1051_v29  ;;  %v1223_v7 = vand.u32 2147483648, %v3105_v19 }
 0x1ae   :  { %v2103_v20 = vpop.eup %2102  ;;  %2114 = vrcp.f32 %v3125_v31  ;;  %vm442_vm7 = vcmp.ge.f32.partialorder %v377_v44, 0.0  ;;  %v3154_v23 = vadd.f32 %v3036_v35, %v970_v54  ;;  %v3157_v21 = vadd.f32 %v3036_v35, %v972_v37 }
 0x1af   :  { %v2105_v61 = vpop.eup %2104  ;;  %v1238_v38 = vand.u32 2147483648, %v3113_v55  ;;  %2116 = vrcp.f32 %v3133_v13  ;;  %v3162_v9 = vadd.f32 %v3036_v35, %v974_v57  ;;  %v3165_v36 = vadd.f32 %v3036_v35, %v976_v1 }
 0x1b0   :  { %v2107_v45 = vpop.eup %2106  ;;  %v3168_v29 = vadd.f32 %v3036_v35, %v978_v46  ;;  %2118 = vrcp.f32 %v3142_v43  ;;  %v3174_v37 = vadd.f32 %v3036_v35, %v980_v49  ;;  %v1221_v28 = vand.u32 2147483647, %v3105_v19 }
 0x1b1   :  { %v3171_v54 = vpop.eup %2108  ;;  %2120 = vrcp.f32 %v3148_v5  ;;  %v3178_v39 = vsel %vm442_vm7, %v377_v44, %v506_v30  ;;  %v3184_v46 = vor.u32 1.1754944e-38, %v1223_v7  ;;  %v1236_v52 = vand.u32 2147483647, %v3113_v55 }
 0x1b2   :  { %4679 = vst [vmem:[#allocation27_spill] sm:$0xff] %v3174_v37  ;;  %v3180_v57 = vpop.eup %2110  ;;  %2122 = vpow2.f32 %v2012_v11  ;;  %v1213_v1 = vmul.f32 %v3171_v54, %v3105_v19  ;;  %v3189_v49 = vadd.f32 1.0, %v2093_v0  ;;  %v3193_v27 = vor.u32 1.1754944e-38, %v1238_v38 }
 0x1b3   :  { %4680 = vst [vmem:[#allocation28_spill] sm:$0xff] %v3178_v39  ;;  %v3187_v56 = vpop.eup %2112  ;;  %v1228_v35 = vmul.f32 %v3180_v57, %v3113_v55  ;;  %v1253_v44 = vand.u32 2147483648, %v3118_v32  ;;  %v3198_v11 = vadd.f32 1.0, %v2095_v60  ;;  %v3200_v8 = vadd.f32 1.0, %v2097_v63 }
 0x1b4   :  { %v3196_v30 = vpop.eup %2114  ;;  %v1243_v7 = vmul.f32 %v3187_v56, %v3118_v32  ;;  %v1251_v6 = vand.u32 2147483647, %v3118_v32  ;;  %v1214_v14 = vsub.f32 1.0, %v1213_v1  ;;  %v1266_v33 = vand.u32 2147483647, %v3125_v31 }
 0x1b5   :  { %v3205_v0 = vpop.eup %2116  ;;  %v1258_v38 = vmul.f32 %v3196_v30, %v3125_v31  ;;  %v1268_v4 = vand.u32 2147483648, %v3125_v31  ;;  %v3213_v60 = vadd.f32 1.0, %v2099_v41  ;;  %vm1217_vm8 = vweird.f32 %v3105_v19 }
 0x1b6   :  { %v3211_v59 = vpop.eup %2118  ;;  %v1229_v63 = vsub.f32 1.0, %v1228_v35  ;;  %v1244_v51 = vsub.f32 1.0, %v1243_v7  ;;  %v1273_v17 = vmul.f32 %v3205_v0, %v3133_v13  ;;  %v3220_v1 = vadd.f32 1.0, %v2101_v26 }
 0x1b7   :  { %v3218_v34 = vpop.eup %2120  ;;  %v3222_v58 = vadd.f32 1.0, %v2103_v20  ;;  %vm1232_vm9 = vweird.f32 %v3113_v55  ;;  %v3225_v47 = vor.u32 1.1754944e-38, %v1253_v44  ;;  %v1288_v41 = vmul.f32 %v3211_v59, %v3142_v43 }
 0x1b8   :  { %v2123_v40 = vpop.eup %2122  ;;  %vm1247_vm10 = vweird.f32 %v3118_v32  ;;  %v1259_v35 = vsub.f32 1.0, %v1258_v38  ;;  %v1274_v7 = vsub.f32 1.0, %v1273_v17  ;;  %v1283_v2 = vand.u32 2147483648, %v3133_v13 }
 0x1b9   :  { %v1303_v26 = vmul.f32 %v3218_v34, %v3148_v5  ;;  %v1215_v20 = vmul.f32 %v3171_v54, %v1214_v14  ;;  %vm1262_vm11 = vweird.f32 %v3125_v31  ;;  %v3235_v15 = vor.u32 1.1754944e-38, %v1268_v4 }
 0x1ba   :  { %v1281_v44 = vand.u32 2147483647, %v3133_v13  ;;  %v1289_v53 = vsub.f32 1.0, %v1288_v41  ;;  %v3238_v48 = vadd.f32 1.0, %v2105_v61  ;;  %v1230_v12 = vmul.f32 %v3180_v57, %v1229_v63 }
 0x1bb   :  { %v1245_v17 = vmul.f32 %v3187_v56, %v1244_v51  ;;  %vm1277_vm12 = vweird.f32 %v3133_v13  ;;  %v1304_v38 = vsub.f32 1.0, %v1303_v26  ;;  %v3243_v39 = vadd.f32 1.0, %v2107_v45 }
 0x1bc   :  { %v3245_v37 = vadd.f32 1.0, %v2123_v40  ;;  %vm3247_vm13 = vcmp.eq.f32.partialorder %v1221_v28, 8.507059e+37  ;;  %v1296_v4 = vand.u32 2147483647, %v3142_v43  ;;  %vm1218_vm0 = vweird.f32 %v3171_v54 }
 0x1bd   :  { %vm3254_vm1 = vcmp.eq.f32.partialorder %v1236_v52, 8.507059e+37  ;;  %vm3258_vm2 = vcmp.eq.f32.partialorder %v1251_v6, 8.507059e+37  ;;  %v1260_v40 = vmul.f32 %v3196_v30, %v1259_v35  ;;  %v1275_v28 = vmul.f32 %v3205_v0, %v1274_v7  ;;  %vm3284_vm7 = vmor %vm1217_vm8, %vm1218_vm0 }
 0x1be   :  { %v1284_v45 = vor.u32 1.1754944e-38, %v1283_v2  ;;  %v1216_v63 = vadd.f32 %v3171_v54, %v1215_v20  ;;  %vm1233_vm3 = vweird.f32 %v3180_v57  ;;  %vm1248_vm4 = vweird.f32 %v3187_v56 }
 0x1bf   :  { %v1290_v52 = vmul.f32 %v3211_v59, %v1289_v53  ;;  %v1231_v41 = vadd.f32 %v3180_v57, %v1230_v12  ;;  %v1246_v6 = vadd.f32 %v3187_v56, %v1245_v17  ;;  %vm3270_vm5 = vcmp.eq.f32.partialorder %v1266_v33, 8.507059e+37  ;;  %vm3294_vm15 = vmor %vm1232_vm9, %vm1233_vm3 }
 0x1c0   :  { %vm3274_vm6 = vcmp.eq.f32.partialorder %v1281_v44, 8.507059e+37  ;;  %v1305_v2 = vmul.f32 %v3218_v34, %v1304_v38  ;;  %2124 = vrcp.f32 %v3189_v49  ;;  %vm1263_vm14 = vweird.f32 %v3196_v30  ;;  %vm3309_vm9 = vmor %vm1247_vm10, %vm1248_vm4 }
 0x1c1   :  { %v1298_v33 = vand.u32 2147483648, %v3142_v43  ;;  %v1311_v53 = vand.u32 2147483647, %v3148_v5  ;;  %v1313_v7 = vand.u32 2147483648, %v3148_v5  ;;  %v1261_v19 = vadd.f32 %v3196_v30, %v1260_v40  ;;  %vm3326_vm10 = vmor %vm1262_vm11, %vm1263_vm14 }
 0x1c2   :  { %v1276_v44 = vadd.f32 %v3205_v0, %v1275_v28  ;;  %vm1278_vm8 = vweird.f32 %v3205_v0  ;;  %2126 = vrcp.f32 %v3198_v11  ;;  %v1220_v17 = vsel %vm3284_vm7, %v3171_v54, %v1216_v63 }
 0x1c3   :  { %v1291_v38 = vadd.f32 %v3211_v59, %v1290_v52  ;;  %vm1293_vm0 = vweird.f32 %v3211_v59  ;;  %vm1308_vm3 = vweird.f32 %v3218_v34  ;;  %v1235_v40 = vsel %vm3294_vm15, %v3180_v57, %v1231_v41  ;;  %vm3334_vm4 = vmor %vm1277_vm12, %vm1278_vm8 }
 0x1c4   :  { %v1250_v54 = vsel %vm3309_vm9, %v3187_v56, %v1246_v6  ;;  %v1306_v28 = vadd.f32 %v3218_v34, %v1305_v2  ;;  %2128 = vrcp.f32 %v3200_v8  ;;  %vm3338_vm15 = vcmp.eq.f32.partialorder %v1296_v4, 8.507059e+37 }
 0x1c5   :  { %v1299_v63 = vor.u32 1.1754944e-38, %v1298_v33  ;;  %vm1307_vm14 = vweird.f32 %v3148_v5  ;;  %2130 = vrcp.f32 %v3213_v60  ;;  %v3349_v52 = vsel %vm3247_vm13, %v3184_v46, %v1220_v17 }
 0x1c6   :  { %v3344_v31 = vpop.eup %2124  ;;  %v1265_v13 = vsel %vm3326_vm10, %v3196_v30, %v1261_v19  ;;  %v1280_v4 = vsel %vm3334_vm4, %v3205_v0, %v1276_v44  ;;  %vm4703_vm11 = vweird.f32 %v3142_v43  ;;  %vm3365_vm7 = vcmp.eq.f32.partialorder %v1311_v53, 8.507059e+37  ;;  %vm3384_vm13 = vmor %vm1307_vm14, %vm1308_vm3 }
 0x1c7   :  { %vm3361_vm12 = vmor %vm4703_vm11, %vm1293_vm0  ;;  %v3372_v46 = vsel %vm3254_vm1, %v3193_v27, %v1235_v40  ;;  %v3377_v30 = vsel %vm3258_vm2, %v3225_v47, %v1250_v54  ;;  %v1318_v61 = vmul.f32 %v3344_v31, %v3189_v49  ;;  %v1310_v47 = vsel %vm3384_vm13, %v3218_v34, %v1306_v28 }
 0x1c8   :  { %v1295_v43 = vsel %vm3361_vm12, %v3211_v59, %v1291_v38  ;;  %v3390_v27 = vpop.eup %2126  ;;  %v1314_v51 = vor.u32 1.1754944e-38, %v1313_v7  ;;  %v1328_v41 = vand.u32 2147483648, %v3189_v49  ;;  %2132 = vrcp.f32 %v3220_v1 }
 0x1c9   :  { %v3400_v59 = vsel %vm3270_vm5, %v3235_v15, %v1265_v13  ;;  %v3404_v6 = vsel %vm3274_vm6, %v1284_v45, %v1280_v4  ;;  %v1333_v2 = vmul.f32 %v3390_v27, %v3198_v11  ;;  %v1343_v12 = vand.u32 2147483648, %v3198_v11 }
 0x1ca   :  { %v3409_v34 = vpop.eup %2128  ;;  %v3413_v33 = vsel %vm3338_vm15, %v1299_v63, %v1295_v43  ;;  %v1319_v53 = vsub.f32 1.0, %v1318_v61  ;;  %v1326_v26 = vand.u32 2147483647, %v3189_v49  ;;  %2134 = vrcp.f32 %v3222_v58 }
 0x1cb   :  { %v3417_v15 = vpop.eup %2130  ;;  %v3421_v45 = vsel %vm3365_vm7, %v1314_v51, %v1310_v47  ;;  %vm1322_vm1 = vweird.f32 %v3189_v49  ;;  %v1341_v35 = vand.u32 2147483647, %v3198_v11  ;;  %v1348_v7 = vmul.f32 %v3409_v34, %v3200_v8 }
 0x1cc   :  { %v1358_v20 = vand.u32 2147483648, %v3200_v8  ;;  %v3428_v19 = vor.u32 1.1754944e-38, %v1328_v41  ;;  %v1334_v44 = vsub.f32 1.0, %v1333_v2  ;;  %vm1337_vm2 = vweird.f32 %v3198_v11 }
 0x1cd   :  { %v1363_v17 = vmul.f32 %v3417_v15, %v3213_v60  ;;  %v1373_v55 = vand.u32 2147483648, %v3213_v60  ;;  %v3434_v38 = vor.u32 1.1754944e-38, %v1343_v12  ;;  %v1349_v40 = vsub.f32 1.0, %v1348_v7 }
 0x1ce   :  { %vm1352_vm5 = vweird.f32 %v3200_v8  ;;  %v1356_v54 = vand.u32 2147483647, %v3200_v8  ;;  %v3438_v32 = vpop.eup %2132  ;;  %v1320_v28 = vmul.f32 %v3344_v31, %v1319_v53  ;;  %vm1367_vm6 = vweird.f32 %v3213_v60 }
 0x1cf   :  { %v1364_v57 = vsub.f32 1.0, %v1363_v17  ;;  %2136 = vrcp.f32 %v3238_v48  ;;  %vm1323_vm8 = vweird.f32 %v3344_v31  ;;  %v1359_v56 = vor.u32 1.1754944e-38, %v1358_v20 }
 0x1d0   :  { %v1371_v63 = vand.u32 2147483647, %v3213_v60  ;;  %v1378_v13 = vmul.f32 %v3438_v32, %v3220_v1  ;;  %v3447_v4 = vpop.eup %2134  ;;  %vm3449_vm9 = vcmp.eq.f32.partialorder %v1326_v26, 8.507059e+37  ;;  %v1335_v14 = vmul.f32 %v3390_v27, %v1334_v44  ;;  %vm3481_vm11 = vmor %vm1322_vm1, %vm1323_vm8 }
 0x1d1   :  { %v1350_v43 = vmul.f32 %v3409_v34, %v1349_v40  ;;  %v1374_v0 = vor.u32 1.1754944e-38, %v1373_v55  ;;  %vm1382_vm0 = vweird.f32 %v3220_v1  ;;  %vm1338_vm3 = vweird.f32 %v3390_v27 }
 0x1d2   :  { %v1379_v61 = vsub.f32 1.0, %v1378_v13  ;;  %v1386_v47 = vand.u32 2147483647, %v3220_v1  ;;  %v1393_v51 = vmul.f32 %v3447_v4, %v3222_v58  ;;  %v1321_v41 = vadd.f32 %v3344_v31, %v1320_v28  ;;  %vm3497_vm13 = vmor %vm1337_vm2, %vm1338_vm3 }
 0x1d3   :  { %vm3461_vm10 = vcmp.eq.f32.partialorder %v1341_v35, 8.507059e+37  ;;  %vm3465_vm4 = vcmp.eq.f32.partialorder %v1356_v54, 8.507059e+37  ;;  %v1365_v53 = vmul.f32 %v3417_v15, %v1364_v57  ;;  %v1388_v26 = vand.u32 2147483648, %v3220_v1 }
 0x1d4   :  { %vm1353_vm14 = vweird.f32 %v3409_v34  ;;  %v1380_v7 = vmul.f32 %v3438_v32, %v1379_v61  ;;  %v1394_v20 = vsub.f32 1.0, %v1393_v51  ;;  %v1401_v35 = vand.u32 2147483647, %v3222_v58 }
 0x1d5   :  { %v3475_v44 = vpop.eup %2136  ;;  %v1336_v55 = vadd.f32 %v3390_v27, %v1335_v14  ;;  %v1351_v40 = vadd.f32 %v3409_v34, %v1350_v43  ;;  %vm1368_vm12 = vweird.f32 %v3417_v15  ;;  %vm3488_vm7 = vcmp.eq.f32.partialorder %v1371_v63, 8.507059e+37  ;;  %vm3516_vm2 = vmor %vm1352_vm5, %vm1353_vm14 }
 0x1d6   :  { %2138 = vrcp.f32 %v3243_v39  ;;  %vm1383_vm1 = vweird.f32 %v3438_v32  ;;  %vm3502_vm8 = vcmp.eq.f32.partialorder %v1386_v47, 8.507059e+37  ;;  %v1395_v57 = vmul.f32 %v3447_v4, %v1394_v20  ;;  %vm3525_vm15 = vmor %vm1367_vm6, %vm1368_vm12 }
 0x1d7   :  { %v1408_v63 = vmul.f32 %v3475_v44, %v3238_v48  ;;  %v1325_v13 = vsel %vm3481_vm11, %v3344_v31, %v1321_v41  ;;  %v1366_v14 = vadd.f32 %v3417_v15, %v1365_v53  ;;  %v1381_v43 = vadd.f32 %v3438_v32, %v1380_v7  ;;  %vm3541_vm5 = vmor %vm1382_vm0, %vm1383_vm1 }
 0x1d8   :  { %vm1398_vm3 = vweird.f32 %v3447_v4  ;;  %v1389_v31 = vor.u32 1.1754944e-38, %v1388_v26  ;;  %v1396_v47 = vadd.f32 %v3447_v4, %v1395_v57  ;;  %v1403_v8 = vand.u32 2147483648, %v3222_v58 }
 0x1d9   :  { %v1409_v51 = vsub.f32 1.0, %v1408_v63  ;;  %v1340_v41 = vsel %vm3497_vm13, %v3390_v27, %v1336_v55  ;;  %v1355_v53 = vsel %vm3516_vm2, %v3409_v34, %v1351_v40  ;;  %v1416_v26 = vand.u32 2147483647, %v3238_v48 }
 0x1da   :  { %2140 = vrcp.f32 %v3245_v37  ;;  %v1330_v27 = vsel %vm3449_vm9, %v3428_v19, %v1325_v13  ;;  %vm4730_vm6 = vweird.f32 %v3222_v58  ;;  %vm3556_vm11 = vcmp.eq.f32.partialorder %v1401_v35, 8.507059e+37 }
 0x1db   :  { %vm3552_vm14 = vmor %vm4730_vm6, %vm1398_vm3  ;;  %v1410_v7 = vmul.f32 %v3475_v44, %v1409_v51  ;;  %vm1412_vm0 = vweird.f32 %v3238_v48  ;;  %v1370_v19 = vsel %vm3525_vm15, %v3417_v15, %v1366_v14  ;;  %v1385_v58 = vsel %vm3541_vm5, %v3438_v32, %v1381_v43  ;;  %v4747_v32 = vld [vmem:[#allocation27_spill] sm:$0xff] }
 0x1dc   :  { %v3562_v20 = vpop.eup %2138  ;;  %v1400_v5 = vsel %vm3552_vm14, %v3447_v4, %v1396_v47  ;;  %v1418_v35 = vand.u32 2147483648, %v3238_v48  ;;  %v1345_v17 = vsel %vm3461_vm10, %v3434_v38, %v1340_v41  ;;  %v1360_v55 = vsel %vm3465_vm4, %v1359_v56, %v1355_v53  ;;  %v4748_v41 = vld [vmem:[#allocation28_spill] sm:$0xff] }
 0x1dd   :  { %v1404_v40 = vor.u32 1.1754944e-38, %v1403_v8  ;;  %v1423_v15 = vmul.f32 %v3562_v20, %v3243_v39  ;;  %v1411_v49 = vadd.f32 %v3475_v44, %v1410_v7  ;;  %vm1413_vm9 = vweird.f32 %v3475_v44 }
 0x1de   :  { %vm3583_vm15 = vcmp.eq.f32.partialorder %v1416_v26, 8.507059e+37  ;;  %v1433_v4 = vand.u32 2147483648, %v3243_v39  ;;  %v1375_v38 = vsel %vm3488_vm7, %v1374_v0, %v1370_v19  ;;  %v1390_v56 = vsel %vm3502_vm8, %v1389_v31, %v1385_v58  ;;  %vm3599_vm10 = vmor %vm1412_vm0, %vm1413_vm9 }
 0x1df   :  { %v1405_v2 = vsel %vm3556_vm11, %v1404_v40, %v1400_v5  ;;  %v1424_v12 = vsub.f32 1.0, %v1423_v15  ;;  %v1419_v63 = vor.u32 1.1754944e-38, %v1418_v35  ;;  %v1431_v13 = vand.u32 2147483647, %v3243_v39 }
 0x1e0   :  { %v2141_v57 = vpop.eup %2140  ;;  %v1446_v11 = vand.u32 2147483647, %v3245_v37  ;;  %v1448_v14 = vand.u32 2147483648, %v3245_v37  ;;  %vm1427_vm4 = vweird.f32 %v3243_v39  ;;  %vm1442_vm12 = vweird.f32 %v3245_v37 }
 0x1e1   :  { %v1425_v0 = vmul.f32 %v3562_v20, %v1424_v12  ;;  %v1438_v28 = vmul.f32 %v2141_v57, %v3245_v37  ;;  %v1415_v43 = vsel %vm3599_vm10, %v3475_v44, %v1411_v49  ;;  %v1434_v61 = vor.u32 1.1754944e-38, %v1433_v4  ;;  %v4749_v44 = vld [vmem:[#allocation58_spill] sm:$0xff] }
 0x1e2   :  { %v3611_v31 = vmul.f32 %v1390_v56, %v3157_v21  ;;  %v3614_v48 = vmul.f32 %v1405_v2, %v3162_v9  ;;  %vm1428_vm7 = vweird.f32 %v3562_v20  ;;  %v1692_v8 = vmul.f32 %v3349_v52, %v3103_v24 }
 0x1e3   :  { %v1439_v47 = vsub.f32 1.0, %v1438_v28  ;;  %v1693_v51 = vmul.f32 %v3372_v46, %v3108_v25  ;;  %vm3621_vm13 = vcmp.eq.f32.partialorder %v1431_v13, 8.507059e+37  ;;  %vm3625_vm1 = vcmp.eq.f32.partialorder %v1446_v11, 8.507059e+37  ;;  %vm3650_vm2 = vmor %vm1427_vm4, %vm1428_vm7 }
 0x1e4   :  { %v1449_v21 = vor.u32 1.1754944e-38, %v1448_v14  ;;  %v1694_v9 = vmul.f32 %v3377_v30, %v3111_v16  ;;  %v1695_v53 = vmul.f32 %v3400_v59, %v3116_v50  ;;  %v1420_v24 = vsel %vm3583_vm15, %v1419_v63, %v1415_v43 }
 0x1e5   :  { %v1426_v25 = vadd.f32 %v3562_v20, %v1425_v0  ;;  %v1440_v52 = vmul.f32 %v2141_v57, %v1439_v47  ;;  %v1696_v46 = vmul.f32 %v3404_v6, %v3122_v62  ;;  %vm1443_vm8 = vweird.f32 %v2141_v57 }
 0x1e6   :  { %v1697_v60 = vmul.f32 %v3413_v33, %v3128_v42  ;;  %v1698_v26 = vmul.f32 %v3421_v45, %v3131_v22  ;;  %v1699_v16 = vmul.f32 %v1330_v27, %v3137_v10  ;;  %v1700_v50 = vmul.f32 %v1345_v17, %v3140_v3  ;;  %vm3662_vm6 = vmor %vm1442_vm12, %vm1443_vm8  ;;  %v4754_v3 = vld [vmem:[#allocation35_spill] sm:$0xff] }
 0x1e7   :  { %v1441_v30 = vadd.f32 %v2141_v57, %v1440_v52  ;;  %v1701_v59 = vmul.f32 %v1360_v55, %v3146_v18  ;;  %v1702_v34 = vmul.f32 %v1375_v38, %v3154_v23  ;;  %v3655_v42 = vmul.f32 %v1420_v24, %v3165_v36  ;;  %v4750_v24 = vld [vmem:[#allocation40_spill] sm:$0xff] }
 0x1e8   :  { %vm1724_vm3 = vcmp.ge.f32.partialorder %v1692_v8, 0.0  ;;  %vm1725_vm5 = vcmp.ge.f32.partialorder %v1693_v51, 0.0  ;;  %v1756_v22 = vmul.f32 0.01, %v1692_v8  ;;  %v1430_v10 = vsel %vm3650_vm2, %v3562_v20, %v1426_v25  ;;  %v4752_v52 = vld [vmem:[#allocation60_spill] sm:$0xff] }
 0x1e9   :  { %vm1726_vm14 = vcmp.ge.f32.partialorder %v1694_v9, 0.0  ;;  %vm1727_vm11 = vcmp.ge.f32.partialorder %v1695_v53, 0.0  ;;  %v1757_v39 = vmul.f32 0.01, %v1693_v51  ;;  %v1445_v18 = vsel %vm3662_vm6, %v2141_v57, %v1441_v30 }
 0x1ea   :  { %v1758_v23 = vmul.f32 0.01, %v1694_v9  ;;  %v1759_v36 = vmul.f32 0.01, %v1695_v53  ;;  %v1760_v6 = vmul.f32 0.01, %v1696_v46  ;;  %v1788_v45 = vsel %vm1724_vm3, %v1692_v8, %v1756_v22 }
 0x1eb   :  { %vm1728_vm0 = vcmp.ge.f32.partialorder %v1696_v46, 0.0  ;;  %vm1729_vm9 = vcmp.ge.f32.partialorder %v1697_v60, 0.0  ;;  %vm1730_vm15 = vcmp.ge.f32.partialorder %v1698_v26, 0.0  ;;  %v1761_v33 = vmul.f32 0.01, %v1697_v60  ;;  %1820 = vst [vmem:[#allocation10] sm:$0xff] %v1788_v45 }
 0x1ec   :  { %vm1731_vm10 = vcmp.ge.f32.partialorder %v1699_v16, 0.0  ;;  %vm1732_vm4 = vcmp.ge.f32.partialorder %v1700_v50, 0.0  ;;  %v1762_v37 = vmul.f32 0.01, %v1698_v26  ;;  %v1435_v27 = vsel %vm3621_vm13, %v1434_v61, %v1430_v10 }
 0x1ed   :  { %v1450_v1 = vsel %vm3625_vm1, %v1449_v21, %v1445_v18  ;;  %v1763_v7 = vmul.f32 0.01, %v1699_v16  ;;  %v1789_v20 = vsel %vm1725_vm5, %v1693_v51, %v1757_v39  ;;  %v1764_v19 = vmul.f32 0.01, %v1700_v50 }
 0x1ee   :  { %v1790_v58 = vsel %vm1726_vm14, %v1694_v9, %v1758_v23  ;;  %v1791_v5 = vsel %vm1727_vm11, %v1695_v53, %v1759_v36  ;;  %v1792_v35 = vsel %vm1728_vm0, %v1696_v46, %v1760_v6  ;;  %1821 = vst [vmem:[#allocation10 + $0x8] sm:$0xff] %v1789_v20  ;;  %vm1733_vm12 = vcmp.ge.f32.partialorder %v1701_v59, 0.0 }
 0x1ef   :  { %vm1734_vm7 = vcmp.ge.f32.partialorder %v1702_v34, 0.0  ;;  %v1765_v17 = vmul.f32 0.01, %v1701_v59  ;;  %v1793_v55 = vsel %vm1729_vm9, %v1697_v60, %v1761_v33  ;;  %1822 = vst [vmem:[#allocation10 + $0x10] sm:$0xff] %v1790_v58  ;;  %v1706_v40 = vmul.f32 %v1435_v27, %v3168_v29 }
 0x1f0   :  { %vm1735_vm13 = vcmp.ge.f32.partialorder %v3611_v31, 0.0  ;;  %v1766_v15 = vmul.f32 0.01, %v1702_v34  ;;  %v1794_v49 = vsel %vm1730_vm15, %v1698_v26, %v1762_v37  ;;  %1823 = vst [vmem:[#allocation10 + $0x18] sm:$0xff] %v1791_v5  ;;  %v1707_v4 = vmul.f32 %v1450_v1, %v4747_v32 }
 0x1f1   :  { %v1767_v38 = vmul.f32 0.01, %v3611_v31  ;;  %v1795_v56 = vsel %vm1731_vm10, %v1699_v16, %v1763_v7  ;;  %1824 = vst [vmem:[#allocation10 + $0x20] sm:$0xff] %v1792_v35  ;;  %v1852_v2 = vadd.f32 %v1789_v20, %v1788_v45  ;;  %v1768_v12 = vmul.f32 0.01, %v3614_v48 }
 0x1f2   :  { %v3686_v57 = vsel %vm1732_vm4, %v1700_v50, %v1764_v19  ;;  %1825 = vst [vmem:[#allocation10 + $0x28] sm:$0xff] %v1793_v55  ;;  %v1889_v29 = vmul.f32 %v1788_v45, %v1788_v45  ;;  %v1890_v63 = vmul.f32 %v1789_v20, %v1789_v20  ;;  %vm1736_vm1 = vcmp.ge.f32.partialorder %v3614_v48, 0.0  ;;  %v4755_v20 = vld [vmem:[#allocation36_spill] sm:$0xff] }
 0x1f3   :  { %v1769_v13 = vmul.f32 0.01, %v3655_v42  ;;  %v1797_v11 = vsel %vm1733_vm12, %v1701_v59, %v1765_v17  ;;  %1826 = vst [vmem:[#allocation10 + $0x30] sm:$0xff] %v1794_v49  ;;  %v1853_v14 = vadd.f32 %v1852_v2, %v1790_v58  ;;  %vm1737_vm8 = vcmp.ge.f32.partialorder %v3655_v42, 0.0  ;;  %v4753_v59 = vld [vmem:[#allocation61_spill] sm:$0xff] }
 0x1f4   :  { %vm1738_vm2 = vcmp.ge.f32.partialorder %v1706_v40, 0.0  ;;  %v1770_v54 = vmul.f32 0.01, %v1706_v40  ;;  %v1798_v0 = vsel %vm1734_vm7, %v1702_v34, %v1766_v15  ;;  %1827 = vst [vmem:[#allocation10 + $0x38] sm:$0xff] %v1795_v56  ;;  %vm1739_vm3 = vcmp.ge.f32.partialorder %v1707_v4, 0.0 }
 0x1f5   :  { %v1771_v28 = vmul.f32 0.01, %v1707_v4  ;;  %v3696_v43 = vsel %vm1735_vm13, %v3611_v31, %v1767_v38  ;;  %1828 = vst [vmem:[#allocation10 + $0x40] sm:$0xff] %v3686_v57  ;;  %v1854_v61 = vadd.f32 %v1853_v14, %v1791_v5  ;;  %v3700_v47 = vsel %vm1736_vm1, %v3614_v48, %v1768_v12  ;;  %v4751_v31 = vld [vmem:[#allocation33_spill] sm:$0xff] }
 0x1f6   :  { %1829 = vst [vmem:[#allocation10 + $0x48] sm:$0xff] %v1797_v11  ;;  %v1891_v8 = vmul.f32 %v1790_v58, %v1790_v58  ;;  %v1921_v51 = vadd.f32 %v1890_v63, %v1889_v29  ;;  %v648_v21 = vadd.f32 %v4749_v44, %v4748_v41  ;;  %v3705_v9 = vsel %vm1737_vm8, %v3655_v42, %v1769_v13  ;;  %v4756_v29 = vld [vmem:[#allocation37_spill] sm:$0xff] }
 0x1f7   :  { %1830 = vst [vmem:[#allocation10 + $0x50] sm:$0xff] %v1798_v0  ;;  %v1855_v53 = vadd.f32 %v1854_v61, %v1792_v35  ;;  %v3709_v25 = vsub.f32 %v4751_v31, %v4750_v24  ;;  %v780_v46 = vmul.f32 %v4752_v52, %v4752_v52  ;;  %v3714_v48 = vsel %vm1738_vm2, %v1706_v40, %v1770_v54  ;;  %v4758_v61 = vld [vmem:[#allocation19_spill] sm:$0xff]  ;;  %v4761_v31 = vld [vmem:[#allocation22_spill] sm:$0xff] }
 0x1f8   :  { %1831 = vst [vmem:[#allocation10 + $0x58] sm:$0xff] %v3696_v43  ;;  %v1892_v60 = vmul.f32 %v1791_v5, %v1791_v5  ;;  %v1922_v26 = vadd.f32 %v1921_v51, %v1891_v8  ;;  %v649_v16 = vrot.slane %v648_v21, 4  ;;  %v3718_v30 = vsel %vm1739_vm3, %v1707_v4, %v1771_v28  ;;  %v4759_v51 = vld [vmem:[#allocation20_spill] sm:$0xff] }
 0x1f9   :  { %1832 = vst [vmem:[#allocation10 + $0x60] sm:$0xff] %v3700_v47  ;;  %v1856_v50 = vadd.f32 %v1855_v53, %v1793_v55  ;;  %v844_v34 = vadd.f32 %v4753_v59, %v780_v46  ;;  %v1893_v62 = vmul.f32 %v1792_v35, %v1792_v35  ;;  %v3726_v39 = vsub.f32 %v4754_v3, %v4750_v24 }
 0x1fa   :  { %1833 = vst [vmem:[#allocation10 + $0x68] sm:$0xff] %v3705_v9  ;;  %v1923_v42 = vadd.f32 %v1922_v26, %v1892_v60  ;;  %v650_v22 = vadd.f32 %v649_v16, %v648_v21  ;;  %v782_v18 = vmul.f32 %v3709_v25, %v3709_v25  ;;  %v1894_v23 = vmul.f32 %v1793_v55, %v1793_v55  ;;  %v4760_v21 = vld [vmem:[#allocation21_spill] sm:$0xff] }
 0x1fb   :  { %1834 = vst [vmem:[#allocation10 + $0x70] sm:$0xff] %v3714_v48  ;;  %v1857_v10 = vadd.f32 %v1856_v50, %v1794_v49  ;;  %v1895_v45 = vmul.f32 %v1794_v49, %v1794_v49  ;;  %v3734_v19 = vsub.f32 %v4755_v20, %v4750_v24  ;;  %v784_v58 = vmul.f32 %v3726_v39, %v3726_v39  ;;  %v4763_v50 = vld [vmem:[#allocation38_spill] sm:$0xff] }
 0x1fc   :  { %1835 = vst [vmem:[#allocation10 + $0x78] sm:$0xff] %v3718_v30  ;;  %v1924_v36 = vadd.f32 %v1923_v42, %v1893_v62  ;;  %v651_v6 = vrot.slane %v650_v22, 2  ;;  %v845_v37 = vadd.f32 %v844_v34, %v782_v18  ;;  %v1896_v5 = vmul.f32 %v1795_v56, %v1795_v56 }
 0x1fd   :  { %v1858_v33 = vadd.f32 %v1857_v10, %v1795_v56  ;;  %v1897_v15 = vmul.f32 %v3686_v57, %v3686_v57  ;;  %v786_v38 = vmul.f32 %v3734_v19, %v3734_v19  ;;  %v1898_v2 = vmul.f32 %v1797_v11, %v1797_v11  ;;  %v4757_v56 = vld [vmem:[#allocation26_spill] sm:$0xff] }
 0x1fe   :  { %v1925_v27 = vadd.f32 %v1924_v36, %v1894_v23  ;;  %v652_v1 = vadd.f32 %v651_v6, %v650_v22  ;;  %v846_v40 = vadd.f32 %v845_v37, %v784_v58  ;;  %v3744_v63 = vsub.f32 %v4756_v29, %v4750_v24  ;;  %v4764_v23 = vld [vmem:[#allocation39_spill] sm:$0xff] }
 0x1ff   :  { %v1859_v7 = vadd.f32 %v1858_v33, %v3686_v57  ;;  %v1899_v28 = vmul.f32 %v1798_v0, %v1798_v0  ;;  %v1900_v26 = vmul.f32 %v3696_v43, %v3696_v43  ;;  %v3775_v59 = vsub.f32 %v4763_v50, %v4750_v24 }
 0x200   :  { %v1926_v35 = vadd.f32 %v1925_v27, %v1895_v45  ;;  %v653_v17 = vrot.slane %v652_v1, 1  ;;  %v847_v54 = vadd.f32 %v846_v40, %v786_v38  ;;  %v788_v34 = vmul.f32 %v3744_v63, %v3744_v63  ;;  %v4769_v38 = vld [vmem:[#allocation45_spill] sm:$0xff] }
 0x201   :  { %v1860_v55 = vadd.f32 %v1859_v7, %v1797_v11  ;;  %v1901_v42 = vmul.f32 %v3700_v47, %v3700_v47  ;;  %v3787_v36 = vsub.f32 %v4764_v23, %v4750_v24  ;;  %v790_v6 = vmul.f32 %v3775_v59, %v3775_v59 }
 0x202   :  { %v1927_v49 = vadd.f32 %v1926_v35, %v1896_v5  ;;  %v654_v32 = vadd.f32 %v653_v17, %v652_v1  ;;  %v848_v10 = vadd.f32 %v847_v54, %v788_v34  ;;  %v1904_v24 = vmul.f32 %v3718_v30, %v3718_v30  ;;  %v4767_v35 = vld [vmem:[#allocation18_spill] sm:$0xff] }
 0x203   :  { %v1861_v4 = vadd.f32 %v1860_v55, %v1798_v0  ;;  %v4762_v0 = vld [vmem:[#allocation24_spill] sm:$0xff]  ;;  %v792_v7 = vmul.f32 %v3787_v36, %v3787_v36  ;;  %v4770_v54 = vld [vmem:[#allocation46_spill] sm:$0xff]  ;;  %vm4777_vm15 = vcmask 1040384  }
 0x204   :  { %v1928_v12 = vadd.f32 %v1927_v49, %v1897_v15  ;;  %v3747_v13 = vmul.f32 %v4757_v56, %v654_v32  ;;  %v849_v45 = vadd.f32 %v848_v10, %v790_v6  ;;  %v4768_v15 = vld [vmem:[#allocation25_spill] sm:$0xff] }
 0x205   :  { %v1862_v14 = vadd.f32 %v1861_v4, %v3696_v43  ;;  %v1902_v43 = vmul.f32 %v3705_v9, %v3705_v9 }
 0x206   :  { %v1929_v57 = vadd.f32 %v1928_v12, %v1898_v2  ;;  %v3752_v8 = vsub.f32 %v4758_v61, %v3747_v13  ;;  %v3756_v11 = vsub.f32 %v4759_v51, %v3747_v13  ;;  %v3761_v53 = vsub.f32 %v4760_v21, %v3747_v13  ;;  %v4771_v51 = vld [vmem:[#allocation48_spill] sm:$0xff] }
 0x207   :  { %v1863_v44 = vadd.f32 %v1862_v14, %v3700_v47  ;;  %v3765_v46 = vsub.f32 %v4761_v31, %v3747_v13  ;;  %v3769_v60 = vsub.f32 %v4762_v0, %v3747_v13  ;;  %v1903_v47 = vmul.f32 %v3714_v48, %v3714_v48 }
 0x208   :  { %v1930_v16 = vadd.f32 %v1929_v57, %v1899_v28  ;;  %v763_v27 = vmul.f32 %v3752_v8, %v3752_v8  ;;  %v850_v58 = vadd.f32 %v849_v45, %v792_v7  ;;  %v3810_v17 = vsub.f32 %v4767_v35, %v3747_v13 }
 0x209   :  { %v1864_v62 = vadd.f32 %v1863_v44, %v3705_v9  ;;  %v765_v9 = vmul.f32 %v3756_v11, %v3756_v11  ;;  %v769_v55 = vmul.f32 %v3765_v46, %v3765_v46  ;;  %v3816_v49 = vsub.f32 %v4768_v15, %v3747_v13 }
 0x20a   :  { %v1931_v22 = vadd.f32 %v1930_v16, %v1900_v26  ;;  %v771_v32 = vmul.f32 %v3769_v60, %v3769_v60  ;;  %v3822_v2 = vsub.f32 %v4769_v38, %v3747_v13  ;;  %v773_v12 = vmul.f32 %v3810_v17, %v3810_v17  ;;  %v4772_v26 = vld [vmem:[#allocation49_spill] sm:$0xff] }
 0x20b   :  { %v1865_v3 = vadd.f32 %v1864_v62, %v3714_v48  ;;  %v767_v48 = vmul.f32 %v3761_v53, %v3761_v53  ;;  %v857_v5 = vadd.f32 %v765_v9, %v763_v27  ;;  %v3828_v28 = vsub.f32 %v4770_v54, %v3747_v13  ;;  %v4773_v62 = vld [vmem:[#allocation51_spill] sm:$0xff] }
 0x20c   :  { %v1932_v18 = vadd.f32 %v1931_v22, %v1901_v42  ;;  %v775_v57 = vmul.f32 %v3816_v49, %v3816_v49  ;;  %v3834_v44 = vsub.f32 %v4771_v51, %v3747_v13  ;;  %v777_v21 = vmul.f32 %v3822_v2, %v3822_v2 }
 0x20d   :  { %v3792_v33 = vadd.f32 %v1865_v3, %v3718_v30  ;;  %v858_v40 = vadd.f32 %v857_v5, %v767_v48  ;;  %v851_v30 = vrot.slane %v850_v58, 4  ;;  %v3840_v16 = vsub.f32 %v4772_v26, %v3747_v13 }
 0x20e   :  { %v1933_v37 = vadd.f32 %v1932_v18, %v1902_v43  ;;  %v779_v50 = vmul.f32 %v3828_v28, %v3828_v28  ;;  %v721_v42 = vsub.f32 %v4773_v62, %v3747_v13  ;;  %v781_v22 = vmul.f32 %v3834_v44, %v3834_v44  ;;  %v4774_v43 = vld [vmem:[#allocation53_spill] sm:$0xff] }
 0x20f   :  { %4765 = vst [vmem:[#allocation29_spill] sm:$0xff] %v3792_v33  ;;  %v859_v4 = vadd.f32 %v858_v40, %v769_v55  ;;  %v852_v14 = vadd.f32 %v851_v30, %v850_v58  ;;  %v723_v18 = vsub.f32 %v4774_v43, %v3747_v13  ;;  %v783_v23 = vmul.f32 %v3840_v16, %v3840_v16 }
 0x210   :  { %v1934_v1 = vadd.f32 %v1933_v37, %v1903_v47  ;;  %v4775_v47 = vld [vmem:[#allocation55_spill] sm:$0xff]  ;;  %v785_v45 = vmul.f32 %v721_v42, %v721_v42  ;;  %v3862_v48 = vsub.f32 %v4748_v41, %v3747_v13 }
 0x211   :  { %v860_v29 = vadd.f32 %v859_v4, %v771_v32  ;;  %v853_v0 = vrot.slane %v852_v14, 2  ;;  %v3854_v37 = vsub.f32 %v4775_v47, %v3747_v13  ;;  %v787_v7 = vmul.f32 %v723_v18, %v723_v18 }
 0x212   :  { %v3804_v20 = vadd.f32 %v1934_v1, %v1904_v24  ;;  %v4776_v24 = vld [vmem:[#allocation57_spill] sm:$0xff]  ;;  %v793_v15 = vmul.f32 %v3862_v48, %v3862_v48 }
 0x213   :  { %v861_v61 = vadd.f32 %v860_v29, %v773_v12  ;;  %v854_v3 = vadd.f32 %v853_v0, %v852_v14  ;;  %v3858_v1 = vsub.f32 %v4776_v24, %v3747_v13  ;;  %v789_v5 = vmul.f32 %v3854_v37, %v3854_v37 }
 0x214   :  { %4766 = vst [vmem:[#allocation30_spill] sm:$0xff] %v3804_v20 }
 0x215   :  { %v862_v31 = vadd.f32 %v861_v61, %v775_v57  ;;  %v855_v9 = vrot.slane %v854_v3, 1  ;;  %v791_v40 = vmul.f32 %v3858_v1, %v3858_v1 }
 0x217   :  { %v863_v34 = vadd.f32 %v862_v31, %v777_v21  ;;  %v856_v55 = vadd.f32 %v855_v9, %v854_v3 }
 0x219   :  { %v864_v10 = vadd.f32 %v863_v34, %v779_v50  ;;  %v880_v4 = vmul.f32 %v856_v55, %v4757_v56 }
 0x21b   :  { %v865_v6 = vadd.f32 %v864_v10, %v781_v22  ;;  %v885_v29 = vadd.f32 1e-05, %v880_v4 }
 0x21d   :  { %v866_v27 = vadd.f32 %v865_v6, %v783_v23  ;;  %2142 = vrsqrt.f32 %v885_v29  ;;  %vm913_vm0 = vweird.f32 %v885_v29 }
 0x21f   :  { %v867_v58 = vadd.f32 %v866_v27, %v785_v45  ;;  %v2210_v27 = vld [vmem:[%s4567_s3] sm:$0x3]  ;;  %s2374_s3 = smov [#allocation10]  }
 0x220   :  { %s1964_s21 = sshll.u32 %s2374_s3, 4  ;;  %s1965_s21 = int_to_ptr.vmem [resolvable:$true] %s1964_s21 }
 0x221   :  { %v868_v35 = vadd.f32 %v867_v58, %v787_v7 }
 0x223   :  { %v869_v30 = vadd.f32 %v868_v35, %v789_v5  ;;  %v2143_v61 = vpop.eup %2142 }
 0x224   :  { %v908_v31 = vmul.f32 %v2143_v61, %v885_v29  ;;  %vm914_vm6 = vweird.f32 %v2143_v61 }
 0x225   :  { %v870_v32 = vadd.f32 %v869_v30, %v791_v40  ;;  %vm915_vm9 = vmor %vm913_vm0, %vm914_vm6 }
 0x226   :  { %v909_v0 = vmul.f32 %v2143_v61, %v908_v31 }
 0x227   :  { %v871_v38 = vadd.f32 %v870_v32, %v793_v15  ;;  %v4778_v15 = vld [vmem:[#allocation54_spill] sm:$0xff] }
 0x228   :  { %v910_v50 = vmul.f32 0.5, %v909_v0 }
 0x229   :  { %v872_v12 = vrot.slane %v871_v38, 4 }
 0x22a   :  { %v911_v22 = vsub.f32 1.5, %v910_v50 }
 0x22b   :  { %v873_v41 = vadd.f32 %v872_v12, %v871_v38 }
 0x22c   :  { %v912_v43 = vmul.f32 %v2143_v61, %v911_v22  ;;  %v4782_v22 = vld [vmem:[#allocation44_spill] sm:$0xff] }
 0x22d   :  { %v874_v13 = vrot.slane %v873_v41, 2 }
 0x22e   :  { %v916_v47 = vsel %vm915_vm9, %v2143_v61, %v912_v43  ;;  %v4780_v61 = vld [vmem:[#allocation42_spill] sm:$0xff] }
 0x22f   :  { %v875_v14 = vadd.f32 %v874_v13, %v873_v41 }
 0x231   :  { %v876_v54 = vrot.slane %v875_v14, 1 }
 0x233   :  { %v877_v57 = vadd.f32 %v876_v54, %v875_v14  ;;  %v4779_v14 = vld [vmem:[#allocation41_spill] sm:$0xff] }
 0x235   :  { %v881_v51 = vmul.f32 %v877_v57, %v4757_v56 }
 0x237   :  { %v886_v21 = vadd.f32 1e-05, %v881_v51 }
 0x239   :  { %2144 = vrsqrt.f32 %v886_v21  ;;  %vm923_vm14 = vweird.f32 %v886_v21 }
 0x23f   :  { %v2145_v26 = vpop.eup %2144 }
 0x240   :  { %v918_v34 = vmul.f32 %v2145_v26, %v886_v21  ;;  %vm924_vm5 = vweird.f32 %v2145_v26 }
 0x241   :  { %vm925_vm11 = vmor %vm923_vm14, %vm924_vm5 }
 0x242   :  { %v919_v62 = vmul.f32 %v2145_v26, %v918_v34 }
 0x244   :  { %v920_v10 = vmul.f32 0.5, %v919_v62 }
 0x246   :  { %v921_v3 = vsub.f32 1.5, %v920_v10 }
 0x248   :  { %v922_v23 = vmul.f32 %v2145_v26, %v921_v3 }
 0x24a   :  { %v926_v6 = vsel %vm925_vm11, %v2145_v26, %v922_v23  ;;  %v4781_v26 = vld [vmem:[#allocation43_spill] sm:$0xff] }
 0x24b   :  { %v932_v56 = vrot.slane %v926_v6, 7  ;;  %v4783_v23 = vld [vmem:[#allocation23_spill] sm:$0xff] }
 0x24d   :  { %v935_v45 = vsel %vm4777_vm15, %v916_v47, %v932_v56  ;;  %v4784_v47 = vld [vmem:[#allocation47_spill] sm:$0xff] }
 0x24e   :  { %v939_v9 = vmul.f32 %v2210_v27, %v935_v45 }
 0x250   :  { %v3876_v24 = vperm.slane %v939_v9, 1  ;;  %v3897_v4 = vperm.slane %v939_v9, 0 }
 0x252   :  { %v1005_v7 = vmul.f32 %v3876_v24, %v721_v42  ;;  %v1007_v58 = vmul.f32 %v3876_v24, %v723_v18  ;;  %v983_v5 = vmul.f32 %v3876_v24, %v3752_v8  ;;  %v985_v35 = vmul.f32 %v3876_v24, %v3756_v11 }
 0x253   :  { %v987_v55 = vmul.f32 %v3876_v24, %v3761_v53  ;;  %v989_v40 = vmul.f32 %v3876_v24, %v3765_v46  ;;  %v991_v30 = vmul.f32 %v3876_v24, %v3769_v60  ;;  %v993_v42 = vmul.f32 %v3876_v24, %v3810_v17 }
 0x254   :  { %v1053_v32 = vadd.f32 %v4778_v15, %v983_v5  ;;  %v1055_v18 = vadd.f32 %v4778_v15, %v985_v35  ;;  %v995_v8 = vmul.f32 %v3876_v24, %v3816_v49  ;;  %v997_v53 = vmul.f32 %v3876_v24, %v3822_v2  ;;  %v4785_v35 = vld [vmem:[#allocation50_spill] sm:$0xff] }
 0x255   :  { %v1057_v11 = vadd.f32 %v4778_v15, %v987_v55  ;;  %v1059_v46 = vadd.f32 %v4778_v15, %v989_v40  ;;  %v999_v60 = vmul.f32 %v3876_v24, %v3828_v28  ;;  %v1061_v38 = vadd.f32 %v4778_v15, %v991_v30  ;;  %v4786_v55 = vld [vmem:[#allocation52_spill] sm:$0xff] }
 0x256   :  { %v2013_v17 = vmul.f32 -1.442695, %v1053_v32  ;;  %v1001_v12 = vmul.f32 %v3876_v24, %v3834_v44  ;;  %v1063_v49 = vadd.f32 %v4778_v15, %v993_v42  ;;  %v2014_v29 = vmul.f32 -1.442695, %v1055_v18 }
 0x257   :  { %v1003_v41 = vmul.f32 %v3876_v24, %v3840_v16  ;;  %v1065_v13 = vadd.f32 %v4778_v15, %v995_v8  ;;  %v2015_v2 = vmul.f32 -1.442695, %v1057_v11  ;;  %v982_v54 = vmul.f32 %v3897_v4, %v4779_v14  ;;  %v4788_v14 = vld [vmem:[#allocation59_spill] sm:$0xff] }
 0x258   :  { %v1067_v28 = vadd.f32 %v4778_v15, %v997_v53  ;;  %v2016_v57 = vmul.f32 -1.442695, %v1059_v46  ;;  %v984_v51 = vmul.f32 %v3897_v4, %v4780_v61  ;;  %v1069_v44 = vadd.f32 %v4778_v15, %v999_v60 }
 0x259   :  { %2146 = vpow2.f32 %v2013_v17  ;;  %v2017_v21 = vmul.f32 -1.442695, %v1061_v38  ;;  %v1009_v31 = vmul.f32 %v3876_v24, %v3854_v37  ;;  %v1071_v16 = vadd.f32 %v4778_v15, %v1001_v12 }
 0x25a   :  { %2148 = vpow2.f32 %v2014_v29  ;;  %v2018_v0 = vmul.f32 -1.442695, %v1063_v49  ;;  %v986_v50 = vmul.f32 %v3897_v4, %v4781_v26  ;;  %v1073_v34 = vadd.f32 %v4778_v15, %v1003_v41 }
 0x25b   :  { %2150 = vpow2.f32 %v2015_v2  ;;  %v2019_v62 = vmul.f32 -1.442695, %v1065_v13  ;;  %v988_v10 = vmul.f32 %v3897_v4, %v4782_v22  ;;  %v1075_v3 = vadd.f32 %v4778_v15, %v1005_v7 }
 0x25c   :  { %2152 = vpow2.f32 %v2016_v57  ;;  %v2020_v43 = vmul.f32 -1.442695, %v1067_v28  ;;  %v990_v37 = vmul.f32 %v3897_v4, %v4783_v23  ;;  %v1077_v6 = vadd.f32 %v4778_v15, %v1007_v58  ;;  %v4787_v58 = vld [vmem:[#allocation56_spill] sm:$0xff] }
 0x25d   :  { %2154 = vpow2.f32 %v2017_v21  ;;  %v2021_v56 = vmul.f32 -1.442695, %v1069_v44  ;;  %v992_v45 = vmul.f32 %v3897_v4, %v4784_v47  ;;  %v1079_v27 = vadd.f32 %v4778_v15, %v1009_v31 }
 0x25e   :  { %2156 = vpow2.f32 %v2018_v0  ;;  %v2022_v9 = vmul.f32 -1.442695, %v1071_v16  ;;  %v994_v7 = vmul.f32 %v3897_v4, %v4785_v35  ;;  %v996_v40 = vmul.f32 %v3897_v4, %v4786_v55 }
 0x25f   :  { %v2147_v5 = vpop.eup %2146  ;;  %2158 = vpow2.f32 %v2019_v62  ;;  %v2023_v30 = vmul.f32 -1.442695, %v1073_v34  ;;  %v998_v42 = vmul.f32 %v3897_v4, %v4787_v58  ;;  %v1000_v18 = vmul.f32 %v3897_v4, %v4752_v52 }
 0x260   :  { %v2149_v32 = vpop.eup %2148  ;;  %2160 = vpow2.f32 %v2020_v43  ;;  %v2024_v8 = vmul.f32 -1.442695, %v1075_v3  ;;  %v1002_v53 = vmul.f32 %v3897_v4, %v3709_v25  ;;  %v1004_v46 = vmul.f32 %v3897_v4, %v3726_v39 }
 0x261   :  { %v2151_v11 = vpop.eup %2150  ;;  %2162 = vpow2.f32 %v2021_v56  ;;  %v2025_v60 = vmul.f32 -1.442695, %v1077_v6  ;;  %v1006_v17 = vmul.f32 %v3897_v4, %v3734_v19  ;;  %v1011_v12 = vmul.f32 %v3876_v24, %v3858_v1 }
 0x262   :  { %v2153_v38 = vpop.eup %2152  ;;  %2164 = vpow2.f32 %v2022_v9  ;;  %v2026_v52 = vmul.f32 -1.442695, %v1079_v27  ;;  %v1008_v29 = vmul.f32 %v3897_v4, %v3744_v63  ;;  %v1013_v25 = vmul.f32 %v3876_v24, %v3862_v48 }
 0x263   :  { %v2155_v49 = vpop.eup %2154  ;;  %2166 = vpow2.f32 %v2023_v30  ;;  %v3952_v39 = vadd.f32 1.0, %v2147_v5  ;;  %v1010_v13 = vmul.f32 %v3897_v4, %v3775_v59  ;;  %v1012_v19 = vmul.f32 %v3897_v4, %v3787_v36 }
 0x264   :  { %v2157_v41 = vpop.eup %2156  ;;  %2168 = vpow2.f32 %v2024_v8  ;;  %v3958_v1 = vadd.f32 1.0, %v2149_v32  ;;  %v3961_v28 = vadd.f32 %v4788_v14, %v982_v54  ;;  %v3964_v63 = vadd.f32 %v4788_v14, %v984_v51 }
 0x265   :  { %v2159_v2 = vpop.eup %2158  ;;  %2170 = vpow2.f32 %v2025_v60  ;;  %v3966_v48 = vadd.f32 1.0, %v2151_v11  ;;  %v3969_v57 = vadd.f32 %v4788_v14, %v986_v50  ;;  %v1081_v59 = vadd.f32 %v4778_v15, %v1011_v12 }
 0x266   :  { %v2161_v24 = vpop.eup %2160  ;;  %2172 = vpow2.f32 %v2026_v52  ;;  %v3972_v36 = vadd.f32 1.0, %v2153_v38  ;;  %v3975_v61 = vadd.f32 %v4788_v14, %v988_v10  ;;  %v1083_v54 = vadd.f32 %v4778_v15, %v1013_v25 }
 0x267   :  { %v2163_v4 = vpop.eup %2162  ;;  %v3978_v51 = vadd.f32 1.0, %v2155_v49  ;;  %2174 = vrcp.f32 %v3952_v39  ;;  %v3982_v21 = vadd.f32 %v4788_v14, %v990_v37  ;;  %v3985_v31 = vadd.f32 %v4788_v14, %v992_v45 }
 0x268   :  { %v2165_v44 = vpop.eup %2164  ;;  %v3987_v16 = vadd.f32 1.0, %v2157_v41  ;;  %2176 = vrcp.f32 %v3958_v1  ;;  %v3991_v26 = vadd.f32 %v4788_v14, %v994_v7  ;;  %v3994_v15 = vadd.f32 %v4788_v14, %v996_v40 }
 0x269   :  { %v2167_v0 = vpop.eup %2166  ;;  %v3996_v50 = vadd.f32 1.0, %v2159_v2  ;;  %2178 = vrcp.f32 %v3966_v48  ;;  %v4000_v62 = vadd.f32 %v4788_v14, %v998_v42  ;;  %v4003_v22 = vadd.f32 %v4788_v14, %v1000_v18 }
 0x26a   :  { %v2169_v34 = vpop.eup %2168  ;;  %v2027_v10 = vmul.f32 -1.442695, %v1081_v59  ;;  %2180 = vrcp.f32 %v3972_v36  ;;  %v4007_v43 = vadd.f32 %v4788_v14, %v1002_v53  ;;  %v2028_v23 = vmul.f32 -1.442695, %v1083_v54 }
 0x26b   :  { %v2171_v3 = vpop.eup %2170  ;;  %v1463_v37 = vand.u32 2147483648, %v3952_v39  ;;  %2182 = vrcp.f32 %v3978_v51  ;;  %v4012_v56 = vadd.f32 %v4788_v14, %v1004_v46  ;;  %v4015_v47 = vadd.f32 %v4788_v14, %v1006_v17 }
 0x26c   :  { %v2173_v6 = vpop.eup %2172  ;;  %v1478_v45 = vand.u32 2147483648, %v3958_v1  ;;  %2184 = vrcp.f32 %v3987_v16  ;;  %v4022_v9 = vadd.f32 %v4788_v14, %v1008_v29  ;;  %v4025_v5 = vadd.f32 %v4788_v14, %v1010_v13 }
 0x26d   :  { %v4019_v27 = vpop.eup %2174  ;;  %v4028_v35 = vadd.f32 %v4788_v14, %v1012_v19  ;;  %2186 = vrcp.f32 %v3996_v50  ;;  %v1461_v40 = vand.u32 2147483647, %v3952_v39  ;;  %v1476_v30 = vand.u32 2147483647, %v3958_v1 }
 0x26e   :  { %v4031_v7 = vpop.eup %2176  ;;  %2188 = vpow2.f32 %v2027_v10  ;;  %v1453_v55 = vmul.f32 %v4019_v27, %v3952_v39  ;;  %v4039_v58 = vor.u32 1.1754944e-38, %v1463_v37  ;;  %v1493_v18 = vand.u32 2147483648, %v3966_v48 }
 0x26f   :  { %v4037_v32 = vpop.eup %2178  ;;  %2190 = vpow2.f32 %v2028_v23  ;;  %v1468_v42 = vmul.f32 %v4031_v7, %v3958_v1  ;;  %v4046_v11 = vadd.f32 1.0, %v2161_v24  ;;  %v4048_v53 = vor.u32 1.1754944e-38, %v1478_v45 }
 0x270   :  { %v4044_v8 = vpop.eup %2180  ;;  %v1483_v46 = vmul.f32 %v4037_v32, %v3966_v48  ;;  %v1491_v60 = vand.u32 2147483647, %v3966_v48  ;;  %v4055_v17 = vadd.f32 1.0, %v2163_v4  ;;  %v1454_v12 = vsub.f32 1.0, %v1453_v55 }
 0x271   :  { %v4053_v38 = vpop.eup %2182  ;;  %v1498_v52 = vmul.f32 %v4044_v8, %v3972_v36  ;;  %v1508_v49 = vand.u32 2147483648, %v3972_v36  ;;  %v4062_v25 = vadd.f32 1.0, %v2165_v44  ;;  %vm1457_vm10 = vweird.f32 %v3952_v39 }
 0x272   :  { %v4060_v29 = vpop.eup %2184  ;;  %v1469_v41 = vsub.f32 1.0, %v1468_v42  ;;  %v1506_v13 = vand.u32 2147483647, %v3972_v36  ;;  %v1513_v19 = vmul.f32 %v4053_v38, %v3978_v51  ;;  %v4070_v14 = vadd.f32 1.0, %v2167_v0 }
 0x273   :  { %v4068_v2 = vpop.eup %2186  ;;  %vm1472_vm4 = vweird.f32 %v3958_v1  ;;  %v1484_v24 = vsub.f32 1.0, %v1483_v46  ;;  %v4073_v59 = vor.u32 1.1754944e-38, %v1493_v18  ;;  %v1528_v4 = vmul.f32 %v4060_v29, %v3987_v16 }
 0x274   :  { %v2189_v54 = vpop.eup %2188  ;;  %v4077_v44 = vadd.f32 1.0, %v2169_v34  ;;  %v4079_v10 = vadd.f32 1.0, %v2171_v3  ;;  %vm1487_vm12 = vweird.f32 %v3966_v48  ;;  %v1499_v23 = vsub.f32 1.0, %v1498_v52 }
 0x275   :  { %v1543_v0 = vmul.f32 %v4068_v2, %v3996_v50  ;;  %v2191_v37 = vpop.eup %2190  ;;  %v1455_v45 = vmul.f32 %v4019_v27, %v1454_v12  ;;  %vm1502_vm7 = vweird.f32 %v3972_v36  ;;  %v4086_v55 = vor.u32 1.1754944e-38, %v1508_v49 }
 0x276   :  { %v1514_v42 = vsub.f32 1.0, %v1513_v19  ;;  %v1521_v18 = vand.u32 2147483647, %v3978_v51  ;;  %v4089_v34 = vadd.f32 1.0, %v2173_v6  ;;  %v1470_v3 = vmul.f32 %v4031_v7, %v1469_v41 }
 0x277   :  { %vm1517_vm13 = vweird.f32 %v3978_v51  ;;  %v1529_v46 = vsub.f32 1.0, %v1528_v4  ;;  %v1544_v52 = vsub.f32 1.0, %v1543_v0  ;;  %v4093_v20 = vadd.f32 1.0, %v2189_v54 }
 0x278   :  { %v1485_v33 = vmul.f32 %v4037_v32, %v1484_v24  ;;  %v1523_v12 = vand.u32 2147483648, %v3978_v51  ;;  %v4098_v49 = vadd.f32 1.0, %v2191_v37  ;;  %vm1458_vm8 = vweird.f32 %v4019_v27 }
 0x279   :  { %vm4101_vm2 = vcmp.eq.f32.partialorder %v1461_v40, 8.507059e+37  ;;  %vm4105_vm3 = vcmp.eq.f32.partialorder %v1476_v30, 8.507059e+37  ;;  %v1500_v19 = vmul.f32 %v4044_v8, %v1499_v23  ;;  %v1536_v24 = vand.u32 2147483647, %v3987_v16  ;;  %vm4131_vm0 = vmor %vm1457_vm10, %vm1458_vm8 }
 0x27a   :  { %v1456_v4 = vadd.f32 %v4019_v27, %v1455_v45  ;;  %vm1473_vm5 = vweird.f32 %v4031_v7  ;;  %vm1488_vm6 = vweird.f32 %v4037_v32  ;;  %vm4114_vm14 = vcmp.eq.f32.partialorder %v1491_v60, 8.507059e+37 }
 0x27b   :  { %v1515_v40 = vmul.f32 %v4053_v38, %v1514_v42  ;;  %v1471_v30 = vadd.f32 %v4031_v7, %v1470_v3  ;;  %vm4120_vm11 = vcmp.eq.f32.partialorder %v1506_v13, 8.507059e+37  ;;  %v1530_v23 = vmul.f32 %v4060_v29, %v1529_v46  ;;  %vm4146_vm1 = vmor %vm1472_vm4, %vm1473_vm5 }
 0x27c   :  { %v1545_v37 = vmul.f32 %v4068_v2, %v1544_v52  ;;  %2192 = vrcp.f32 %v4046_v11  ;;  %v1486_v45 = vadd.f32 %v4037_v32, %v1485_v33  ;;  %vm1503_vm9 = vweird.f32 %v4044_v8  ;;  %vm4161_vm4 = vmor %vm1487_vm12, %vm1488_vm6 }
 0x27d   :  { %vm4137_vm15 = vcmp.eq.f32.partialorder %v1521_v18, 8.507059e+37  ;;  %v1524_v42 = vor.u32 1.1754944e-38, %v1523_v12  ;;  %v1538_v3 = vand.u32 2147483648, %v3987_v16  ;;  %v1501_v46 = vadd.f32 %v4044_v8, %v1500_v19 }
 0x27e   :  { %vm1518_vm10 = vweird.f32 %v4053_v38  ;;  %v1551_v33 = vand.u32 2147483647, %v3996_v50  ;;  %2194 = vrcp.f32 %v4055_v17  ;;  %v1460_v18 = vsel %vm4131_vm0, %v4019_v27, %v1456_v4  ;;  %vm4175_vm0 = vmor %vm1502_vm7, %vm1503_vm9 }
 0x27f   :  { %v1516_v52 = vadd.f32 %v4053_v38, %v1515_v40  ;;  %vm1533_vm8 = vweird.f32 %v4060_v29  ;;  %vm1548_vm5 = vweird.f32 %v4068_v2  ;;  %v1475_v12 = vsel %vm4146_vm1, %v4031_v7, %v1471_v30  ;;  %vm4187_vm12 = vmor %vm1517_vm13, %vm1518_vm10 }
 0x280   :  { %v1531_v27 = vadd.f32 %v4060_v29, %v1530_v23  ;;  %v1546_v19 = vadd.f32 %v4068_v2, %v1545_v37  ;;  %2196 = vrcp.f32 %v4062_v25  ;;  %v1490_v4 = vsel %vm4161_vm4, %v4037_v32, %v1486_v45 }
 0x281   :  { %vm4191_vm7 = vcmp.eq.f32.partialorder %v1536_v24, 8.507059e+37  ;;  %v1553_v40 = vand.u32 2147483648, %v3996_v50  ;;  %2198 = vrcp.f32 %v4070_v14  ;;  %v1505_v32 = vsel %vm4175_vm0, %v4044_v8, %v1501_v46 }
 0x282   :  { %v4197_v30 = vpop.eup %2192  ;;  %vm4811_vm1 = vweird.f32 %v3987_v16  ;;  %v1539_v24 = vor.u32 1.1754944e-38, %v1538_v3  ;;  %vm1547_vm6 = vweird.f32 %v3996_v50  ;;  %vm4209_vm9 = vcmp.eq.f32.partialorder %v1551_v33, 8.507059e+37 }
 0x283   :  { %vm4204_vm13 = vmor %vm4811_vm1, %vm1533_vm8  ;;  %v4216_v37 = vsel %vm4101_vm2, %v4039_v58, %v1460_v18  ;;  %v4221_v16 = vsel %vm4105_vm3, %v4048_v53, %v1475_v12  ;;  %v1520_v8 = vsel %vm4187_vm12, %v4053_v38, %v1516_v52  ;;  %v1558_v6 = vmul.f32 %v4197_v30, %v4046_v11 }
 0x284   :  { %vm4228_vm10 = vmor %vm1547_vm6, %vm1548_vm5  ;;  %v4234_v58 = vpop.eup %2194  ;;  %v4239_v53 = vsel %vm4114_vm14, %v4073_v59, %v1490_v4  ;;  %v1535_v38 = vsel %vm4204_vm13, %v4060_v29, %v1531_v27  ;;  %2200 = vrcp.f32 %v4077_v44  ;;  %v4251_v60 = vsel %vm4120_vm11, %v4086_v55, %v1505_v32 }
 0x285   :  { %v1550_v41 = vsel %vm4228_vm10, %v4068_v2, %v1546_v19  ;;  %v1554_v45 = vor.u32 1.1754944e-38, %v1553_v40  ;;  %v1568_v54 = vand.u32 2147483648, %v4046_v11  ;;  %v1573_v59 = vmul.f32 %v4234_v58, %v4055_v17 }
 0x286   :  { %v4256_v3 = vpop.eup %2196  ;;  %v4260_v29 = vsel %vm4137_vm15, %v1524_v42, %v1520_v8  ;;  %v1566_v2 = vand.u32 2147483647, %v4046_v11  ;;  %v1583_v39 = vand.u32 2147483648, %v4055_v17  ;;  %2202 = vrcp.f32 %v4079_v10 }
 0x287   :  { %v4265_v55 = vpop.eup %2198  ;;  %v4269_v0 = vsel %vm4191_vm7, %v1539_v24, %v1535_v38  ;;  %v4273_v46 = vsel %vm4209_vm9, %v1554_v45, %v1550_v41  ;;  %v1559_v33 = vsub.f32 1.0, %v1558_v6  ;;  %v1588_v13 = vmul.f32 %v4256_v3, %v4062_v25 }
 0x288   :  { %vm1562_vm2 = vweird.f32 %v4046_v11  ;;  %v1574_v42 = vsub.f32 1.0, %v1573_v59  ;;  %v1598_v18 = vand.u32 2147483648, %v4062_v25  ;;  %v1603_v1 = vmul.f32 %v4265_v55, %v4070_v14 }
 0x289   :  { %v1613_v52 = vand.u32 2147483648, %v4070_v14  ;;  %v4282_v12 = vor.u32 1.1754944e-38, %v1568_v54  ;;  %vm1577_vm3 = vweird.f32 %v4055_v17  ;;  %v1581_v48 = vand.u32 2147483647, %v4055_v17 }
 0x28a   :  { %v1589_v27 = vsub.f32 1.0, %v1588_v13  ;;  %v4286_v19 = vpop.eup %2200  ;;  %v4288_v4 = vor.u32 1.1754944e-38, %v1583_v39  ;;  %vm1592_vm14 = vweird.f32 %v4062_v25  ;;  %v1596_v7 = vand.u32 2147483647, %v4062_v25 }
 0x28b   :  { %v1611_v36 = vand.u32 2147483647, %v4070_v14  ;;  %2204 = vrcp.f32 %v4089_v34  ;;  %v1560_v40 = vmul.f32 %v4197_v30, %v1559_v33  ;;  %vm1563_vm11 = vweird.f32 %v4197_v30 }
 0x28c   :  { %v1604_v32 = vsub.f32 1.0, %v1603_v1  ;;  %v1618_v51 = vmul.f32 %v4286_v19, %v4077_v44  ;;  %v4298_v24 = vpop.eup %2202  ;;  %v1575_v23 = vmul.f32 %v4234_v58, %v1574_v42  ;;  %v1599_v8 = vor.u32 1.1754944e-38, %v1598_v18  ;;  %vm4338_vm6 = vmor %vm1562_vm2, %vm1563_vm11 }
 0x28d   :  { %v4301_v50 = vor.u32 1.1754944e-38, %v1613_v52  ;;  %vm1622_vm15 = vweird.f32 %v4077_v44  ;;  %vm4304_vm4 = vcmp.eq.f32.partialorder %v1566_v2, 8.507059e+37  ;;  %vm1578_vm8 = vweird.f32 %v4234_v58 }
 0x28e   :  { %v1590_v38 = vmul.f32 %v4256_v3, %v1589_v27  ;;  %v1619_v41 = vsub.f32 1.0, %v1618_v51  ;;  %v1633_v45 = vmul.f32 %v4298_v24, %v4079_v10  ;;  %vm4313_vm0 = vcmp.eq.f32.partialorder %v1581_v48, 8.507059e+37  ;;  %vm4355_vm2 = vmor %vm1577_vm3, %vm1578_vm8 }
 0x28f   :  { %v1626_v59 = vand.u32 2147483647, %v4077_v44  ;;  %v1628_v2 = vand.u32 2147483648, %v4077_v44  ;;  %vm1637_vm12 = vweird.f32 %v4079_v10  ;;  %v1641_v39 = vand.u32 2147483647, %v4079_v10 }
 0x290   :  { %v1561_v33 = vadd.f32 %v4197_v30, %v1560_v40  ;;  %vm4322_vm7 = vcmp.eq.f32.partialorder %v1596_v7, 8.507059e+37  ;;  %v1605_v42 = vmul.f32 %v4265_v55, %v1604_v32  ;;  %v1620_v18 = vmul.f32 %v4286_v19, %v1619_v41 }
 0x291   :  { %v1634_v1 = vsub.f32 1.0, %v1633_v45  ;;  %v4328_v52 = vpop.eup %2204  ;;  %v1576_v48 = vadd.f32 %v4234_v58, %v1575_v23  ;;  %vm1593_vm1 = vweird.f32 %v4256_v3  ;;  %vm1608_vm13 = vweird.f32 %v4265_v55 }
 0x292   :  { %2206 = vrcp.f32 %v4093_v20  ;;  %v1591_v7 = vadd.f32 %v4256_v3, %v1590_v38  ;;  %vm4343_vm9 = vcmp.eq.f32.partialorder %v1611_v36, 8.507059e+37  ;;  %vm1623_vm10 = vweird.f32 %v4286_v19  ;;  %vm4373_vm3 = vmor %vm1592_vm14, %vm1593_vm1 }
 0x293   :  { %v1635_v32 = vmul.f32 %v4298_v24, %v1634_v1  ;;  %v1648_v51 = vmul.f32 %v4328_v52, %v4089_v34  ;;  %v1621_v36 = vadd.f32 %v4286_v19, %v1620_v18  ;;  %vm4360_vm11 = vcmp.eq.f32.partialorder %v1626_v59, 8.507059e+37  ;;  %vm4384_vm8 = vmor %vm1622_vm15, %vm1623_vm10 }
 0x294   :  { %vm1638_vm5 = vweird.f32 %v4298_v24  ;;  %v1643_v38 = vand.u32 2147483648, %v4079_v10  ;;  %v1565_v41 = vsel %vm4338_vm6, %v4197_v30, %v1561_v33  ;;  %v1606_v45 = vadd.f32 %v4265_v55, %v1605_v42 }
 0x295   :  { %v1636_v59 = vadd.f32 %v4298_v24, %v1635_v32  ;;  %v1649_v18 = vsub.f32 1.0, %v1648_v51  ;;  %v1580_v1 = vsel %vm4355_vm2, %v4234_v58, %v1576_v48  ;;  %v1629_v25 = vor.u32 1.1754944e-38, %v1628_v2  ;;  %vm4395_vm14 = vmor %vm1637_vm12, %vm1638_vm5 }
 0x296   :  { %v1656_v33 = vand.u32 2147483647, %v4089_v34  ;;  %2208 = vrcp.f32 %v4098_v49  ;;  %v1595_v42 = vsel %vm4373_vm3, %v4256_v3, %v1591_v7  ;;  %vm4399_vm1 = vcmp.eq.f32.partialorder %v1641_v39, 8.507059e+37 }
 0x297   :  { %v1650_v58 = vmul.f32 %v4328_v52, %v1649_v18  ;;  %vm1652_vm15 = vweird.f32 %v4089_v34  ;;  %v1570_v3 = vsel %vm4304_vm4, %v4282_v12, %v1565_v41  ;;  %vm4840_vm5 = vweird.f32 %v4070_v14 }
 0x298   :  { %v4405_v2 = vpop.eup %2206  ;;  %vm4414_vm12 = vmor %vm4840_vm5, %vm1608_vm13  ;;  %v1625_v39 = vsel %vm4384_vm8, %v4286_v19, %v1621_v36  ;;  %v1640_v48 = vsel %vm4395_vm14, %v4298_v24, %v1636_v59  ;;  %v1644_v7 = vor.u32 1.1754944e-38, %v1643_v38  ;;  %v1585_v12 = vsel %vm4313_vm0, %v4288_v4, %v1580_v1 }
 0x299   :  { %v1610_v14 = vsel %vm4414_vm12, %v4265_v55, %v1606_v45  ;;  %v1658_v6 = vand.u32 2147483648, %v4089_v34  ;;  %v1663_v32 = vmul.f32 %v4405_v2, %v4093_v20  ;;  %v1600_v19 = vsel %vm4322_vm7, %v1599_v8, %v1595_v42 }
 0x29a   :  { %v1651_v51 = vadd.f32 %v4328_v52, %v1650_v58  ;;  %vm1653_vm4 = vweird.f32 %v4328_v52  ;;  %vm4437_vm13 = vcmp.eq.f32.partialorder %v1656_v33, 8.507059e+37  ;;  %v1630_v4 = vsel %vm4360_vm11, %v1629_v25, %v1625_v39 }
 0x29b   :  { %v1645_v55 = vsel %vm4399_vm1, %v1644_v7, %v1640_v48  ;;  %v1664_v54 = vsub.f32 1.0, %v1663_v32  ;;  %v1673_v11 = vand.u32 2147483648, %v4093_v20  ;;  %v1615_v8 = vsel %vm4343_vm9, %v4301_v50, %v1610_v14  ;;  %vm4454_vm0 = vmor %vm1652_vm15, %vm1653_vm4 }
 0x29c   :  { %v2209_v36 = vpop.eup %2208  ;;  %v1671_v13 = vand.u32 2147483647, %v4093_v20  ;;  %v1686_v38 = vand.u32 2147483647, %v4098_v49  ;;  %v1688_v41 = vand.u32 2147483648, %v4098_v49  ;;  %v1659_v17 = vor.u32 1.1754944e-38, %v1658_v6 }
 0x29d   :  { %v1665_v45 = vmul.f32 %v4405_v2, %v1664_v54  ;;  %vm1667_vm7 = vweird.f32 %v4093_v20  ;;  %v1678_v40 = vmul.f32 %v2209_v36, %v4098_v49  ;;  %v1655_v50 = vsel %vm4454_vm0, %v4328_v52, %v1651_v51 }
 0x29e   :  { %vm1682_vm6 = vweird.f32 %v4098_v49  ;;  %v4466_v59 = vmul.f32 %v1630_v4, %v4012_v56  ;;  %v4469_v34 = vmul.f32 %v1645_v55, %v4015_v47  ;;  %v1674_v18 = vor.u32 1.1754944e-38, %v1673_v11  ;;  %v4855_v11 = vld [vmem:[#allocation29_spill] sm:$0xff] }
 0x29f   :  { %v1679_v1 = vsub.f32 1.0, %v1678_v40  ;;  %v1708_v30 = vmul.f32 %v4216_v37, %v3961_v28  ;;  %v1709_v25 = vmul.f32 %v4221_v16, %v3964_v63  ;;  %vm1668_vm9 = vweird.f32 %v4405_v2 }
 0x2a0   :  { %vm4476_vm10 = vcmp.eq.f32.partialorder %v1671_v13, 8.507059e+37  ;;  %vm4480_vm2 = vcmp.eq.f32.partialorder %v1686_v38, 8.507059e+37  ;;  %v1689_v47 = vor.u32 1.1754944e-38, %v1688_v41  ;;  %v1710_v33 = vmul.f32 %v4239_v53, %v3969_v57  ;;  %vm4504_vm3 = vmor %vm1667_vm7, %vm1668_vm9 }
 0x2a1   :  { %v1660_v28 = vsel %vm4437_vm13, %v1659_v17, %v1655_v50  ;;  %v1666_v37 = vadd.f32 %v4405_v2, %v1665_v45  ;;  %v1680_v63 = vmul.f32 %v2209_v36, %v1679_v1  ;;  %v1711_v16 = vmul.f32 %v4251_v60, %v3975_v61 }
 0x2a2   :  { %vm1683_vm11 = vweird.f32 %v2209_v36  ;;  %v1712_v42 = vmul.f32 %v4260_v29, %v3982_v21  ;;  %v1713_v27 = vmul.f32 %v4269_v0, %v3985_v31  ;;  %v1714_v44 = vmul.f32 %v4273_v46, %v3991_v26 }
 0x2a3   :  { %v1681_v57 = vadd.f32 %v2209_v36, %v1680_v63  ;;  %v1715_v53 = vmul.f32 %v1570_v3, %v3994_v15  ;;  %v1716_v58 = vmul.f32 %v1585_v12, %v4000_v62  ;;  %v1717_v10 = vmul.f32 %v1600_v19, %v4003_v22  ;;  %vm4517_vm14 = vmor %vm1682_vm6, %vm1683_vm11 }
 0x2a4   :  { %v1718_v21 = vmul.f32 %v1615_v8, %v4007_v43  ;;  %v4510_v31 = vmul.f32 %v1660_v28, %v4022_v9  ;;  %vm1740_vm8 = vcmp.ge.f32.partialorder %v1708_v30, 0.0  ;;  %v1772_v26 = vmul.f32 0.01, %v1708_v30 }
 0x2a5   :  { %v1670_v15 = vsel %vm4504_vm3, %v4405_v2, %v1666_v37  ;;  %vm1741_vm1 = vcmp.ge.f32.partialorder %v1709_v25, 0.0  ;;  %vm1742_vm15 = vcmp.ge.f32.partialorder %v1710_v33, 0.0  ;;  %v1773_v20 = vmul.f32 0.01, %v1709_v25 }
 0x2a6   :  { %v1685_v22 = vsel %vm4517_vm14, %v2209_v36, %v1681_v57  ;;  %v1774_v43 = vmul.f32 0.01, %v1710_v33  ;;  %v1775_v9 = vmul.f32 0.01, %v1711_v16  ;;  %v1776_v60 = vmul.f32 0.01, %v1712_v42 }
 0x2a7   :  { %vm1743_vm5 = vcmp.ge.f32.partialorder %v1711_v16, 0.0  ;;  %vm1744_vm12 = vcmp.ge.f32.partialorder %v1712_v42, 0.0  ;;  %vm1745_vm4 = vcmp.ge.f32.partialorder %v1713_v27, 0.0  ;;  %v1777_v29 = vmul.f32 0.01, %v1713_v27 }
 0x2a8   :  { %vm1746_vm13 = vcmp.ge.f32.partialorder %v1714_v44, 0.0  ;;  %vm1747_vm0 = vcmp.ge.f32.partialorder %v1715_v53, 0.0  ;;  %v1778_v49 = vmul.f32 0.01, %v1714_v44  ;;  %v1804_v0 = vsel %vm1740_vm8, %v1708_v30, %v1772_v26  ;;  %v4856_v30 = vld [vmem:[#allocation30_spill] sm:$0xff] }
 0x2a9   :  { %v1675_v46 = vsel %vm4476_vm10, %v1674_v18, %v1670_v15  ;;  %v1690_v2 = vsel %vm4480_vm2, %v1689_v47, %v1685_v22  ;;  %v1779_v3 = vmul.f32 0.01, %v1715_v53  ;;  %v1805_v39 = vsel %vm1741_vm1, %v1709_v25, %v1773_v20  ;;  %1836 = vst [vmem:[#allocation10 + $0x80] sm:$0xff] %v1804_v0 }
 0x2aa   :  { %v1780_v48 = vmul.f32 0.01, %v1716_v58  ;;  %v1806_v7 = vsel %vm1742_vm15, %v1710_v33, %v1774_v43  ;;  %v1807_v12 = vsel %vm1743_vm5, %v1711_v16, %v1775_v9  ;;  %v1808_v14 = vsel %vm1744_vm12, %v1712_v42, %v1776_v60  ;;  %1837 = vst [vmem:[#allocation10 + $0x88] sm:$0xff] %v1805_v39 }
 0x2ab   :  { %vm1748_vm7 = vcmp.ge.f32.partialorder %v1716_v58, 0.0  ;;  %vm1749_vm6 = vcmp.ge.f32.partialorder %v1717_v10, 0.0  ;;  %v1781_v6 = vmul.f32 0.01, %v1717_v10  ;;  %v1809_v32 = vsel %vm1745_vm4, %v1713_v27, %v1777_v29  ;;  %1838 = vst [vmem:[#allocation10 + $0x90] sm:$0xff] %v1806_v7 }
 0x2ac   :  { %v1722_v19 = vmul.f32 %v1675_v46, %v4025_v5  ;;  %vm1750_vm9 = vcmp.ge.f32.partialorder %v1718_v21, 0.0  ;;  %v1782_v51 = vmul.f32 0.01, %v1718_v21  ;;  %v1810_v24 = vsel %vm1746_vm13, %v1714_v44, %v1778_v49  ;;  %1839 = vst [vmem:[#allocation10 + $0x98] sm:$0xff] %v1807_v12 }
 0x2ad   :  { %v1723_v4 = vmul.f32 %v1690_v2, %v4028_v35  ;;  %v1783_v55 = vmul.f32 0.01, %v4466_v59  ;;  %v1811_v54 = vsel %vm1747_vm0, %v1715_v53, %v1779_v3  ;;  %1840 = vst [vmem:[#allocation10 + $0xa0] sm:$0xff] %v1808_v14  ;;  %v1867_v36 = vadd.f32 %v4855_v11, %v1804_v0 }
 0x2ae   :  { %vm1751_vm10 = vcmp.ge.f32.partialorder %v4466_v59, 0.0  ;;  %v1784_v8 = vmul.f32 0.01, %v4469_v34  ;;  %v1812_v5 = vsel %vm1748_vm7, %v1716_v58, %v1780_v48  ;;  %1841 = vst [vmem:[#allocation10 + $0xa8] sm:$0xff] %v1809_v32  ;;  %vm1752_vm2 = vcmp.ge.f32.partialorder %v4469_v34, 0.0 }
 0x2af   :  { %v1785_v13 = vmul.f32 0.01, %v4510_v31  ;;  %v1813_v35 = vsel %vm1749_vm6, %v1717_v10, %v1781_v6  ;;  %1842 = vst [vmem:[#allocation10 + $0xb0] sm:$0xff] %v1810_v24  ;;  %v1868_v38 = vadd.f32 %v1867_v36, %v1805_v39  ;;  %vm1753_vm11 = vcmp.ge.f32.partialorder %v4510_v31, 0.0 }
 0x2b0   :  { %v1786_v41 = vmul.f32 0.01, %v1722_v19  ;;  %v1814_v23 = vsel %vm1750_vm9, %v1718_v21, %v1782_v51  ;;  %1843 = vst [vmem:[#allocation10 + $0xb8] sm:$0xff] %v1811_v54  ;;  %v1905_v17 = vmul.f32 %v1804_v0, %v1804_v0  ;;  %vm1754_vm3 = vcmp.ge.f32.partialorder %v1722_v19, 0.0 }
 0x2b1   :  { %v1787_v45 = vmul.f32 0.01, %v1723_v4  ;;  %v1815_v40 = vsel %vm1751_vm10, %v4466_v59, %v1783_v55  ;;  %1844 = vst [vmem:[#allocation10 + $0xc0] sm:$0xff] %v1812_v5  ;;  %v1869_v50 = vadd.f32 %v1868_v38, %v1806_v7  ;;  %vm1755_vm8 = vcmp.ge.f32.partialorder %v1723_v4, 0.0 }
 0x2b2   :  { %v1816_v18 = vsel %vm1752_vm2, %v4469_v34, %v1784_v8  ;;  %1845 = vst [vmem:[#allocation10 + $0xc8] sm:$0xff] %v1813_v35  ;;  %v1906_v1 = vmul.f32 %v1805_v39, %v1805_v39  ;;  %v1936_v25 = vadd.f32 %v4856_v30, %v1905_v17  ;;  %v1817_v52 = vsel %vm1753_vm11, %v4510_v31, %v1785_v13 }
 0x2b3   :  { %1846 = vst [vmem:[#allocation10 + $0xd0] sm:$0xff] %v1814_v23  ;;  %v1870_v59 = vadd.f32 %v1869_v50, %v1807_v12  ;;  %v1818_v56 = vsel %vm1754_vm3, %v1722_v19, %v1786_v41  ;;  %v1907_v47 = vmul.f32 %v1806_v7, %v1806_v7  ;;  %v1819_v34 = vsel %vm1755_vm8, %v1723_v4, %v1787_v45 }
 0x2b4   :  { %1847 = vst [vmem:[#allocation10 + $0xd8] sm:$0xff] %v1815_v40  ;;  %v1937_v33 = vadd.f32 %v1936_v25, %v1906_v1  ;;  %v1908_v37 = vmul.f32 %v1807_v12, %v1807_v12  ;;  %v1909_v42 = vmul.f32 %v1808_v14, %v1808_v14  ;;  %v1910_v57 = vmul.f32 %v1809_v32, %v1809_v32 }
 0x2b5   :  { %1848 = vst [vmem:[#allocation10 + $0xe0] sm:$0xff] %v1816_v18  ;;  %v1871_v28 = vadd.f32 %v1870_v59, %v1808_v14  ;;  %v1911_v10 = vmul.f32 %v1810_v24, %v1810_v24  ;;  %v1912_v31 = vmul.f32 %v1811_v54, %v1811_v54  ;;  %v1913_v62 = vmul.f32 %v1812_v5, %v1812_v5 }
 0x2b6   :  { %1849 = vst [vmem:[#allocation10 + $0xe8] sm:$0xff] %v1817_v52  ;;  %v1938_v63 = vadd.f32 %v1937_v33, %v1907_v47  ;;  %v1914_v43 = vmul.f32 %v1813_v35, %v1813_v35  ;;  %v1915_v29 = vmul.f32 %v1814_v23, %v1814_v23  ;;  %v1916_v46 = vmul.f32 %v1815_v40, %v1815_v40 }
 0x2b7   :  { %1850 = vst [vmem:[#allocation10 + $0xf0] sm:$0xff] %v1818_v56  ;;  %v1872_v16 = vadd.f32 %v1871_v28, %v1809_v32  ;;  %v1917_v39 = vmul.f32 %v1816_v18, %v1816_v18  ;;  %v1918_v12 = vmul.f32 %v1817_v52, %v1817_v52  ;;  %v1919_v32 = vmul.f32 %v1818_v56, %v1818_v56 }
 0x2b8   :  { %1851 = vst [vmem:[#allocation10 + $0xf8] sm:$0xff] %v1819_v34  ;;  %v1939_v27 = vadd.f32 %v1938_v63, %v1908_v37  ;;  %vm4857_vm14 = vcmask 1040384  }
 0x2b9   :  { %1972 = dma.vmem_to_hbm [thread:$0]  %s1965_s21, 4096, %s1967_s24, [#allocation4], %s2369_s9, %s2369_s9, %s2370_s10   ;;  %v1873_v44 = vadd.f32 %v1872_v16, %v1810_v24  ;;  %v1920_v24 = vmul.f32 %v1819_v34, %v1819_v34 }
 0x2ba   :  { %v1940_v53 = vadd.f32 %v1939_v27, %v1909_v42 }
 0x2bb   :  { %v1874_v58 = vadd.f32 %v1873_v44, %v1811_v54 }
 0x2bc   :  { %v1941_v61 = vadd.f32 %v1940_v53, %v1910_v57 }
 0x2bd   :  { %v1875_v21 = vadd.f32 %v1874_v58, %v1812_v5 }
 0x2be   :  { %v1942_v26 = vadd.f32 %v1941_v61, %v1911_v10 }
 0x2bf   :  { %v1876_v15 = vadd.f32 %v1875_v21, %v1813_v35 }
 0x2c0   :  { %v1943_v20 = vadd.f32 %v1942_v26, %v1912_v31 }
 0x2c1   :  { %v1877_v22 = vadd.f32 %v1876_v15, %v1814_v23 }
 0x2c2   :  { %v1944_v9 = vadd.f32 %v1943_v20, %v1913_v62 }
 0x2c3   :  { %v1878_v60 = vadd.f32 %v1877_v22, %v1815_v40 }
 0x2c4   :  { %v1945_v49 = vadd.f32 %v1944_v9, %v1914_v43 }
 0x2c5   :  { %v1879_v0 = vadd.f32 %v1878_v60, %v1816_v18 }
 0x2c6   :  { %v1946_v2 = vadd.f32 %v1945_v49, %v1915_v29 }
 0x2c7   :  { %v1880_v3 = vadd.f32 %v1879_v0, %v1817_v52 }
 0x2c8   :  { %v1947_v48 = vadd.f32 %v1946_v2, %v1916_v46 }
 0x2c9   :  { %v1881_v7 = vadd.f32 %v1880_v3, %v1818_v56 }
 0x2ca   :  { %v1948_v14 = vadd.f32 %v1947_v48, %v1917_v39 }
 0x2cb   :  { %v1882_v6 = vadd.f32 %v1881_v7, %v1819_v34 }
 0x2cc   :  { %v1949_v19 = vadd.f32 %v1948_v14, %v1918_v12 }
 0x2cd   :  { %v1883_v51 = vrot.slane %v1882_v6, 4 }
 0x2ce   :  { %v1950_v4 = vadd.f32 %v1949_v19, %v1919_v32 }
 0x2cf   :  { %v1884_v55 = vadd.f32 %v1883_v51, %v1882_v6 }
 0x2d0   :  { %v1951_v54 = vadd.f32 %v1950_v4, %v1920_v24 }
 0x2d1   :  { %v1885_v11 = vrot.slane %v1884_v55, 2 }
 0x2d2   :  { %v1952_v36 = vrot.slane %v1951_v54, 4 }
 0x2d3   :  { %v1886_v8 = vadd.f32 %v1885_v11, %v1884_v55 }
 0x2d4   :  { %v1953_v5 = vadd.f32 %v1952_v36, %v1951_v54 }
 0x2d5   :  { %v1887_v35 = vrot.slane %v1886_v8, 1 }
 0x2d6   :  { %v1954_v13 = vrot.slane %v1953_v5, 2 }
 0x2d7   :  { %v1888_v23 = vadd.f32 %v1887_v35, %v1886_v8 }
 0x2d8   :  { %v1955_v38 = vadd.f32 %v1954_v13, %v1953_v5 }
 0x2da   :  { %v1956_v41 = vrot.slane %v1955_v38, 1 }
 0x2dc   :  { %v1957_v17 = vadd.f32 %v1956_v41, %v1955_v38 }
 0x2de   :  { %v1958_v45 = vsel %vm4857_vm14, %v1888_v23, %v1957_v17 }
 0x2df   :  { %1959 = vst [vmem:[#allocation11] sm:$0x3] %v1958_v45 }
 0x2e0   :  { %1983 = dma.vmem_to_hbm [thread:$0]  %s1979_s25, 32, %s1981_s28, [#allocation12]  }
 0x2e1   :  { %2361 = dma.done.wait [#allocation4], 4096  }
 0x2e2   :  { %2362 = vsyncadd [#allocation4], 4294963200 }
 0x2e3   :  { %2363 = dma.done.wait [#allocation12], 32  }
 0x2e4   :  { %2364 = vsyncadd [#allocation12], 4294967264 }
 0x2e5   :  { %1992 = vsyncpa [#allocation3], 1 }
 0x2e6   :  { %1993 = vsyncpa [#allocation6], 1 }
 0x2e7   :  { %1994 = vsyncpa [#allocation9], 1 }
 0x2e8   :  { %1995 = vsyncpa [#allocation4], 1 }
 0x2e9   :  { %1996 = vsyncpa [#allocation12], 1 }

</bundles_post_ra>
